<compile_context>
chip_gen: v6e
topology: v6e:2x2x1
jax: 0.10.0
libtpu: 0.0.40
codegen_flags: <defaults>
</compile_context>

<pallas_src>
import functools

import jax
import jax.numpy as jnp
from jax.experimental import pallas as pl
from jax.experimental.pallas import tpu as pltpu


# ----------------------------------------------------------------------------
# Fused kernel: one grid step handles `tile_batch` batches.
#   x0_ref   : (N, TB*F)    packed features (batch-major / feature-minor lanes)
#   sup_ref  : (S, N, N)    dense supports (resident across the grid)
#   w_ref    : (M*F, O)     projection weight, pre-flattened m-major/f-minor
#   b_ref    : (1, O)       bias (f32, resident)
#   o_ref    : (TB, N, O)   output tile
#   stage_ref: (TB, N, M*F) VMEM staging scratch for the diffusion outputs
# S, K, TB, F are static Python ints (closed over) => loops fully unroll and
# every ref index / slice is static.
# ----------------------------------------------------------------------------
def _fused_diffusion_gc_kernel(
    x0_ref, sup_ref, w_ref, b_ref, o_ref, stage_ref, *,
    num_supports, max_step, tile_batch, input_size, compute_dtype,
):
    f = input_size
    tb = tile_batch

    def stage(x_c, m_idx):
        # Scatter the packed (N, TB*F) diffusion output into the per-batch
        # staging scratch at lane offset m_idx*F.  All slices are static; when
        # F % 128 == 0 (demo) these are full, unmasked vector stores.
        base = m_idx * f
        for t in range(tb):
            stage_ref[t, :, base:base + f] = x_c[:, t * f:(t + 1) * f]

    x0 = x0_ref[...]                         # (N, TB*F) f32 carry
    x0_c = x0.astype(compute_dtype)          # cast once; reused by every A-dot
    stage(x0_c, 0)                           # m = 0 identity term

    if max_step > 0:
        m_idx = 1
        for si in range(num_supports):
            a = sup_ref[si]                  # (N, N), compute dtype
            x1 = jnp.dot(a, x0_c, preferred_element_type=jnp.float32)
            x1_c = x1.astype(compute_dtype)
            stage(x1_c, m_idx)
            m_idx += 1
            if max_step >= 2:
                a2 = a * 2                   # fold Chebyshev 2x into A (exact)
                xk_2, xk_1, xk_1_c = x0, x1, x1_c
                for _ in range(2, max_step + 1):
                    # Combine stays f32; only the MXU operands are compute dtype.
                    x2 = jnp.dot(a2, xk_1_c,
                                 preferred_element_type=jnp.float32) - xk_2
                    x2_c = x2.astype(compute_dtype)
                    stage(x2_c, m_idx)
                    m_idx += 1
                    xk_2, xk_1, xk_1_c = xk_1, x2, x2_c

    # Fused projection: ONE deep-K (K = M*F) MXU matmul per batch in the tile,
    # f32 accumulation, bias added in f32, stored straight to the output tile
    # (no per-m accumulators pinned in vregs across the unrolled body).
    bias = b_ref[...]                        # (1, O) f32
    w_flat = w_ref[...]                      # (M*F, O) compute dtype
    for t in range(tb):
        res = jnp.dot(stage_ref[t], w_flat, preferred_element_type=jnp.float32)
        o_ref[t] = (res + bias).astype(o_ref.dtype)


def _pick_tile_batch(batch, num_nodes, input_size, num_matrices, output_dim,
                     csize, *, target_lanes=256, min_grid=2,
                     tile_budget=24 * 1024 * 1024):
    """Pick the batch tile size.

    Preferences (in order):
      * lane width tb*F a multiple of 128 (unmasked loads/stores);
      * tb*F >= target_lanes so the diffusion matmul RHS fills the 256-wide
        v6e/v7x MXU;
      * grid = batch // tb >= min_grid so the "parallel" axis can feed both
        v7x TensorCores and the x0/out tiles get pipelined;
      * the LARGEST remaining tb (fewer, fatter steps; helps v5e/v6e).
    A rough per-tile VMEM budget keeps tb from blowing v7x's 64 MiB VMEM.
    """
    def tile_bytes(tb):
        x_tile = 2 * num_nodes * tb * input_size * 4           # dbl-buffered x0
        o_tile = 2 * tb * num_nodes * output_dim * 4           # dbl-buffered out
        stg = tb * num_nodes * num_matrices * input_size * csize
        return x_tile + o_tile + stg

    divisors = [tb for tb in range(1, batch + 1) if batch % tb == 0]
    aligned = [tb for tb in divisors if (tb * input_size) % 128 == 0] or divisors
    in_budget = [tb for tb in aligned if tile_bytes(tb) <= tile_budget] or aligned[:1]

    for need_lanes, need_grid in ((True, True), (True, False),
                                  (False, True), (False, False)):
        sel = [tb for tb in in_budget
               if (not need_lanes or tb * input_size >= target_lanes)
               and (not need_grid or batch // tb >= min_grid)]
        if sel:
            return max(sel)
    return in_budget[-1]


def diffusion_graph_conv(inputs, state, supports, weight, biases, *,
                         num_nodes, max_diffusion_step, output_dim,
                         tile_batch=None, compute_dtype=jnp.bfloat16):
    """Pallas implementation of DiffusionGraphConv.forward."""
    batch = inputs.shape[0]
    n = num_nodes
    inputs = inputs.reshape(batch, n, -1)
    state = state.reshape(batch, n, -1)
    ias = jnp.concatenate([inputs, state], axis=2).astype(jnp.float32)  # (B,N,F)
    f = ias.shape[2]
    s = supports.shape[0]
    k = max_diffusion_step
    m = s * k + 1
    o = output_dim
    assert weight.shape == (f * m, o) and biases.shape == (o,)

    # (B, N, F) -> (N, B, F) -> (N, B*F): batch-major / feature-minor lanes.
    # Column order is irrelevant to the diffusion recursion (columns are
    # independent); the projection below is derived consistently with it.
    x0 = jnp.transpose(ias, (1, 0, 2)).reshape(n, batch * f)

    # Reference weight rows are (f-major, m-minor); re-order to m-major /
    # f-minor and flatten to (M*F, O) so the fused projection is one deep-K
    # matmul per batch against the staged (N, M*F) diffusion outputs.
    w_flat = (jnp.transpose(weight.reshape(f, m, o), (1, 0, 2))
              .reshape(m * f, o).astype(compute_dtype))
    sup = supports.astype(compute_dtype)        # bf16 halves resident VMEM/HBM
    bias2d = biases.reshape(1, o).astype(jnp.float32)

    # Lane-dense output: pad O to a multiple of 128 so the final stores are
    # full (unmasked) vst's; the pad is sliced off after the call.
    o_pad = o if o % 128 == 0 else ((o + 127) // 128) * 128
    if o_pad != o:
        w_flat = jnp.pad(w_flat, ((0, 0), (0, o_pad - o)))
        bias2d = jnp.pad(bias2d, ((0, 0), (0, o_pad - o)))

    csize = jnp.dtype(compute_dtype).itemsize
    if tile_batch is None:
        tile_batch = _pick_tile_batch(batch, n, f, m, o_pad, csize)
    tb = tile_batch
    assert batch % tb == 0, "tile_batch must divide batch"
    # (8,128) rule: a partial batch tile must give a 128-multiple lane width;
    # tb == batch (full last dim) is always legal (lane-masked if batch*f is
    # not a multiple of 128 -- slow, not wrong).
    assert (tb * f) % 128 == 0 or tb == batch, (
        "tile_batch*input_size must be a multiple of 128 (or tile the full batch)")
    grid = (batch // tb,)

    # VMEM budget: double-buffered x0/out tiles, staging scratch, residents
    # (counted twice: constant index maps are still double-buffered by the
    # default pipeline), plus in-kernel live values (f32 recursion carries,
    # compute-dtype copies, one (N, O) dot result).
    tile_x = n * tb * f * 4
    tile_o = tb * n * o_pad * 4
    stage_bytes = tb * n * (m * f) * csize
    resident = s * n * n * csize + (m * f) * o_pad * csize + o_pad * 4
    live = 3 * tile_x + 2 * n * tb * f * csize + n * o_pad * 4
    vmem_estimate = 2 * (tile_x + tile_o) + 2 * resident + stage_bytes + live
    # Cap safely below v7x's 64 MiB physical per-TC VMEM (v5e/v6e have 128 MiB,
    # but 56 MiB is plenty for these tile plans and portable).
    vmem_limit = int(min(max(2 * vmem_estimate, 16 * 1024 * 1024),
                         56 * 1024 * 1024))

    flops = int(2 * s * k * n * n * (batch * f) + 2 * batch * n * (m * f) * o_pad)
    bytes_accessed = int(n * batch * f * 4 + s * n * n * csize
                         + (m * f) * o_pad * csize + o_pad * 4
                         + batch * n * o_pad * 4)

    kernel = functools.partial(
        _fused_diffusion_gc_kernel,
        num_supports=s, max_step=k, tile_batch=tb, input_size=f,
        compute_dtype=compute_dtype,
    )

    out = pl.pallas_call(
        kernel,
        out_shape=jax.ShapeDtypeStruct((batch, n, o_pad), jnp.float32),
        grid_spec=pltpu.PrefetchScalarGridSpec(
            num_scalar_prefetch=0,
            grid=grid,
            in_specs=[
                pl.BlockSpec((n, tb * f), lambda j: (0, j)),      # x0 tile (pipelined)
                pl.BlockSpec((s, n, n), lambda j: (0, 0, 0)),     # supports (resident)
                pl.BlockSpec((m * f, o_pad), lambda j: (0, 0)),   # weight   (resident)
                pl.BlockSpec((1, o_pad), lambda j: (0, 0)),       # bias     (resident)
            ],
            out_specs=pl.BlockSpec((tb, n, o_pad), lambda j: (j, 0, 0)),
            scratch_shapes=[pltpu.VMEM((tb, n, m * f), compute_dtype)],
        ),
        compiler_params=pltpu.CompilerParams(
            dimension_semantics=("parallel",),    # shard batch tiles across v7x TCs
            vmem_limit_bytes=vmem_limit,
        ),
        cost_estimate=pl.CostEstimate(
            flops=flops, transcendentals=0, bytes_accessed=bytes_accessed),
    )(x0, sup, w_flat, bias2d)

    if o_pad != o:
        out = out[:, :, :o]
    return out.reshape(batch, n * o)


# ----------------------------------------------------------------------------
# Pure-JAX reference (mirrors the PyTorch code line by line) for sanity check.
# ----------------------------------------------------------------------------
def _reference(inputs, state, supports, weight, biases, *,
               num_nodes, max_diffusion_step, output_dim):
    batch_size = inputs.shape[0]
    n = num_nodes
    inputs = inputs.reshape(batch_size, n, -1)
    state = state.reshape(batch_size, n, -1)
    x = jnp.concatenate([inputs, state], axis=2)
    input_size = x.shape[2]
    x0 = jnp.transpose(x, (1, 2, 0)).reshape(n, input_size * batch_size)
    xs = [x0]
    if max_diffusion_step > 0:
        for si in range(supports.shape[0]):
            a = supports[si]
            x1 = a @ x0
            xs.append(x1)
            xk_2, xk_1 = x0, x1
            for _ in range(2, max_diffusion_step + 1):
                x2 = 2.0 * (a @ xk_1) - xk_2
                xs.append(x2)
                xk_2, xk_1 = xk_1, x2
    num_matrices = len(xs)
    x = jnp.stack(xs, axis=0).reshape(num_matrices, n, input_size, batch_size)
    x = jnp.transpose(x, (3, 1, 2, 0)).reshape(
        batch_size * n, input_size * num_matrices)
    x = x @ weight + biases
    return x.reshape(batch_size, n * output_dim)


if __name__ == "__main__":
    # Lane-friendly small config: F = input_dim + hid_dim = 128, so the staged
    # projection writes are lane-aligned, tb=4 gives a 512-wide diffusion RHS
    # and grid = 2 "parallel" steps; N and output_dim are 128.
    batch = 8
    num_nodes = 128
    input_dim = 32
    hid_dim = 96
    max_diffusion_step = 2
    output_dim = 128
    num_supports = 2

    input_size = input_dim + hid_dim
    num_matrices = num_supports * max_diffusion_step + 1

    key = jax.random.PRNGKey(0)
    k_in, k_st, k_sup, k_w = jax.random.split(key, 4)

    inputs = jax.random.normal(k_in, (batch, num_nodes * input_dim), jnp.float32)
    state = jax.random.normal(k_st, (batch, num_nodes * hid_dim), jnp.float32)

    # Deterministic "supports": row-normalized random non-negative matrices
    # (stand-ins for random-walk transition matrices).
    raw = jnp.abs(jax.random.normal(k_sup, (num_supports, num_nodes, num_nodes)))
    supports = (raw / jnp.sum(raw, axis=-1, keepdims=True)).astype(jnp.float32)

    # Xavier-normal weight (gain=1.414), constant bias (bias_start=0.1).
    fan_in = input_size * num_matrices
    fan_out = output_dim
    std = 1.414 * (2.0 / (fan_in + fan_out)) ** 0.5
    weight = (std * jax.random.normal(k_w, (fan_in, fan_out))).astype(jnp.float32)
    biases = jnp.full((output_dim,), 0.1, dtype=jnp.float32)

    ref = _reference(
        inputs, state, supports, weight, biases,
        num_nodes=num_nodes, max_diffusion_step=max_diffusion_step,
        output_dim=output_dim)

    # f32 MXU operands: tight check against the reference.
    out_f32 = diffusion_graph_conv(
        inputs, state, supports, weight, biases,
        num_nodes=num_nodes, max_diffusion_step=max_diffusion_step,
        output_dim=output_dim, compute_dtype=jnp.float32)
    out_f32 = jax.block_until_ready(out_f32)
    assert out_f32.shape == (batch, num_nodes * output_dim)
    assert jnp.allclose(out_f32, ref, atol=2e-3, rtol=2e-3), (
        float(jnp.max(jnp.abs(out_f32 - ref))))

    # Default path: bf16 MXU operands (fast on v5e/v6e/v7x) with f32
    # accumulation and f32 recursion combine; check relative error.
    out_bf16 = diffusion_graph_conv(
        inputs, state, supports, weight, biases,
        num_nodes=num_nodes, max_diffusion_step=max_diffusion_step,
        output_dim=output_dim)
    out_bf16 = jax.block_until_ready(out_bf16)
    rel = float(jnp.linalg.norm(out_bf16 - ref) / jnp.linalg.norm(ref))
    assert rel < 3e-2, rel

    print("KERNEL_OK")
</pallas_src>

<mosaic_0001>
module attributes {stable_mosaic.version = 11 : i64} {
  func.func @_fused_diffusion_gc_kernel(%arg0: i32, %arg1: memref<128x512xf32, #tpu.memory_space<vmem>>, %arg2: memref<2x128x128xf32, #tpu.memory_space<vmem>>, %arg3: memref<640x128xf32, #tpu.memory_space<vmem>>, %arg4: memref<1x128xf32, #tpu.memory_space<vmem>>, %arg5: memref<4x128x128xf32, #tpu.memory_space<vmem>>, %arg6: memref<4x128x640xf32, #tpu.memory_space<vmem>>) attributes {dimension_semantics = [#tpu.dimension_semantics<parallel>], iteration_bounds = array<i64: 2>, scalar_prefetch = 0 : i64, scratch_operands = 1 : i64, tpu.core_type = #tpu.core_type<tc>, window_params = [{transform_indices = @transform_0, window_bounds = array<i64: 128, 512>}, {pipeline_mode = #tpu.pipeline_mode<synchronous>, transform_indices = @transform_1, window_bounds = array<i64: 2, 128, 128>}, {pipeline_mode = #tpu.pipeline_mode<synchronous>, transform_indices = @transform_2, window_bounds = array<i64: 640, 128>}, {pipeline_mode = #tpu.pipeline_mode<synchronous>, transform_indices = @transform_3, window_bounds = array<i64: 1, 128>}, {transform_indices = @transform_4, window_bounds = array<i64: 4, 128, 128>}]} {
    %c0 = arith.constant 0 : index
    %c0_0 = arith.constant 0 : index
    %0 = vector.load %arg1[%c0, %c0_0] : memref<128x512xf32, #tpu.memory_space<vmem>>, vector<128x512xf32>
    %1 = vector.extract_strided_slice %0 {offsets = [0, 0], sizes = [128, 128], strides = [1, 1]} : vector<128x512xf32> to vector<128x128xf32>
    %c0_1 = arith.constant 0 : index
    %c0_2 = arith.constant 0 : index
    %c0_3 = arith.constant 0 : index
    %2 = vector.load %arg6[%c0_1, %c0_2, %c0_3] : memref<4x128x640xf32, #tpu.memory_space<vmem>>, vector<1x128x128xf32>
    %3 = vector.shape_cast %2 : vector<1x128x128xf32> to vector<128x128xf32>
    %4 = vector.shape_cast %1 : vector<128x128xf32> to vector<1x128x128xf32>
    tpu.vector_store %arg6[%c0_1, %c0_2, %c0_3], %4 {strides = array<i32>} : memref<4x128x640xf32, #tpu.memory_space<vmem>>, vector<1x128x128xf32>,
    %5 = vector.extract_strided_slice %0 {offsets = [0, 128], sizes = [128, 128], strides = [1, 1]} : vector<128x512xf32> to vector<128x128xf32>
    %c1 = arith.constant 1 : index
    %c0_4 = arith.constant 0 : index
    %c0_5 = arith.constant 0 : index
    %6 = vector.load %arg6[%c1, %c0_4, %c0_5] : memref<4x128x640xf32, #tpu.memory_space<vmem>>, vector<1x128x128xf32>
    %7 = vector.shape_cast %6 : vector<1x128x128xf32> to vector<128x128xf32>
    %8 = vector.shape_cast %5 : vector<128x128xf32> to vector<1x128x128xf32>
    tpu.vector_store %arg6[%c1, %c0_4, %c0_5], %8 {strides = array<i32>} : memref<4x128x640xf32, #tpu.memory_space<vmem>>, vector<1x128x128xf32>,
    %9 = vector.extract_strided_slice %0 {offsets = [0, 256], sizes = [128, 128], strides = [1, 1]} : vector<128x512xf32> to vector<128x128xf32>
    %c2 = arith.constant 2 : index
    %c0_6 = arith.constant 0 : index
    %c0_7 = arith.constant 0 : index
    %10 = vector.load %arg6[%c2, %c0_6, %c0_7] : memref<4x128x640xf32, #tpu.memory_space<vmem>>, vector<1x128x128xf32>
    %11 = vector.shape_cast %10 : vector<1x128x128xf32> to vector<128x128xf32>
    %12 = vector.shape_cast %9 : vector<128x128xf32> to vector<1x128x128xf32>
    tpu.vector_store %arg6[%c2, %c0_6, %c0_7], %12 {strides = array<i32>} : memref<4x128x640xf32, #tpu.memory_space<vmem>>, vector<1x128x128xf32>,
    %13 = vector.extract_strided_slice %0 {offsets = [0, 384], sizes = [128, 128], strides = [1, 1]} : vector<128x512xf32> to vector<128x128xf32>
    %c3 = arith.constant 3 : index
    %c0_8 = arith.constant 0 : index
    %c0_9 = arith.constant 0 : index
    %14 = vector.load %arg6[%c3, %c0_8, %c0_9] : memref<4x128x640xf32, #tpu.memory_space<vmem>>, vector<1x128x128xf32>
    %15 = vector.shape_cast %14 : vector<1x128x128xf32> to vector<128x128xf32>
    %16 = vector.shape_cast %13 : vector<128x128xf32> to vector<1x128x128xf32>
    tpu.vector_store %arg6[%c3, %c0_8, %c0_9], %16 {strides = array<i32>} : memref<4x128x640xf32, #tpu.memory_space<vmem>>, vector<1x128x128xf32>,
    %c0_10 = arith.constant 0 : index
    %c0_11 = arith.constant 0 : index
    %c0_12 = arith.constant 0 : index
    %17 = vector.load %arg2[%c0_10, %c0_11, %c0_12] : memref<2x128x128xf32, #tpu.memory_space<vmem>>, vector<1x128x128xf32>
    %18 = vector.shape_cast %17 : vector<1x128x128xf32> to vector<128x128xf32>
    %cst = arith.constant dense<0.000000e+00> : vector<128x512xf32>
    %19 = tpu.matmul %18, %0, %cst {dimension_numbers = #tpu.dot_dimension_numbers<[1], [0], [0], [1], [0, 0, 1, 1], [], []>} : vector<128x128xf32>, vector<128x512xf32>, vector<128x512xf32> -> vector<128x512xf32>
    %20 = vector.extract_strided_slice %19 {offsets = [0, 0], sizes = [128, 128], strides = [1, 1]} : vector<128x512xf32> to vector<128x128xf32>
    %c0_13 = arith.constant 0 : index
    %c0_14 = arith.constant 0 : index
    %c128 = arith.constant 128 : index
    %21 = vector.load %arg6[%c0_13, %c0_14, %c128] : memref<4x128x640xf32, #tpu.memory_space<vmem>>, vector<1x128x128xf32>
    %22 = vector.shape_cast %21 : vector<1x128x128xf32> to vector<128x128xf32>
    %23 = vector.shape_cast %20 : vector<128x128xf32> to vector<1x128x128xf32>
    tpu.vector_store %arg6[%c0_13, %c0_14, %c128], %23 {strides = array<i32>} : memref<4x128x640xf32, #tpu.memory_space<vmem>>, vector<1x128x128xf32>,
    %24 = vector.extract_strided_slice %19 {offsets = [0, 128], sizes = [128, 128], strides = [1, 1]} : vector<128x512xf32> to vector<128x128xf32>
    %c1_15 = arith.constant 1 : index
    %c0_16 = arith.constant 0 : index
    %c128_17 = arith.constant 128 : index
    %25 = vector.load %arg6[%c1_15, %c0_16, %c128_17] : memref<4x128x640xf32, #tpu.memory_space<vmem>>, vector<1x128x128xf32>
    %26 = vector.shape_cast %25 : vector<1x128x128xf32> to vector<128x128xf32>
    %27 = vector.shape_cast %24 : vector<128x128xf32> to vector<1x128x128xf32>
    tpu.vector_store %arg6[%c1_15, %c0_16, %c128_17], %27 {strides = array<i32>} : memref<4x128x640xf32, #tpu.memory_space<vmem>>, vector<1x128x128xf32>,
    %28 = vector.extract_strided_slice %19 {offsets = [0, 256], sizes = [128, 128], strides = [1, 1]} : vector<128x512xf32> to vector<128x128xf32>
    %c2_18 = arith.constant 2 : index
    %c0_19 = arith.constant 0 : index
    %c128_20 = arith.constant 128 : index
    %29 = vector.load %arg6[%c2_18, %c0_19, %c128_20] : memref<4x128x640xf32, #tpu.memory_space<vmem>>, vector<1x128x128xf32>
    %30 = vector.shape_cast %29 : vector<1x128x128xf32> to vector<128x128xf32>
    %31 = vector.shape_cast %28 : vector<128x128xf32> to vector<1x128x128xf32>
    tpu.vector_store %arg6[%c2_18, %c0_19, %c128_20], %31 {strides = array<i32>} : memref<4x128x640xf32, #tpu.memory_space<vmem>>, vector<1x128x128xf32>,
    %32 = vector.extract_strided_slice %19 {offsets = [0, 384], sizes = [128, 128], strides = [1, 1]} : vector<128x512xf32> to vector<128x128xf32>
    %c3_21 = arith.constant 3 : index
    %c0_22 = arith.constant 0 : index
    %c128_23 = arith.constant 128 : index
    %33 = vector.load %arg6[%c3_21, %c0_22, %c128_23] : memref<4x128x640xf32, #tpu.memory_space<vmem>>, vector<1x128x128xf32>
    %34 = vector.shape_cast %33 : vector<1x128x128xf32> to vector<128x128xf32>
    %35 = vector.shape_cast %32 : vector<128x128xf32> to vector<1x128x128xf32>
    tpu.vector_store %arg6[%c3_21, %c0_22, %c128_23], %35 {strides = array<i32>} : memref<4x128x640xf32, #tpu.memory_space<vmem>>, vector<1x128x128xf32>,
    %cst_24 = arith.constant 2.000000e+00 : f32
    %36 = vector.broadcast %cst_24 : f32 to vector<128x128xf32>
    %37 = arith.mulf %18, %36 : vector<128x128xf32>
    %cst_25 = arith.constant dense<0.000000e+00> : vector<128x512xf32>
    %38 = tpu.matmul %37, %19, %cst_25 {dimension_numbers = #tpu.dot_dimension_numbers<[1], [0], [0], [1], [0, 0, 1, 1], [], []>} : vector<128x128xf32>, vector<128x512xf32>, vector<128x512xf32> -> vector<128x512xf32>
    %39 = arith.subf %38, %0 : vector<128x512xf32>
    %40 = vector.extract_strided_slice %39 {offsets = [0, 0], sizes = [128, 128], strides = [1, 1]} : vector<128x512xf32> to vector<128x128xf32>
    %c0_26 = arith.constant 0 : index
    %c0_27 = arith.constant 0 : index
    %c256 = arith.constant 256 : index
    %41 = vector.load %arg6[%c0_26, %c0_27, %c256] : memref<4x128x640xf32, #tpu.memory_space<vmem>>, vector<1x128x128xf32>
    %42 = vector.shape_cast %41 : vector<1x128x128xf32> to vector<128x128xf32>
    %43 = vector.shape_cast %40 : vector<128x128xf32> to vector<1x128x128xf32>
    tpu.vector_store %arg6[%c0_26, %c0_27, %c256], %43 {strides = array<i32>} : memref<4x128x640xf32, #tpu.memory_space<vmem>>, vector<1x128x128xf32>,
    %44 = vector.extract_strided_slice %39 {offsets = [0, 128], sizes = [128, 128], strides = [1, 1]} : vector<128x512xf32> to vector<128x128xf32>
    %c1_28 = arith.constant 1 : index
    %c0_29 = arith.constant 0 : index
    %c256_30 = arith.constant 256 : index
    %45 = vector.load %arg6[%c1_28, %c0_29, %c256_30] : memref<4x128x640xf32, #tpu.memory_space<vmem>>, vector<1x128x128xf32>
    %46 = vector.shape_cast %45 : vector<1x128x128xf32> to vector<128x128xf32>
    %47 = vector.shape_cast %44 : vector<128x128xf32> to vector<1x128x128xf32>
    tpu.vector_store %arg6[%c1_28, %c0_29, %c256_30], %47 {strides = array<i32>} : memref<4x128x640xf32, #tpu.memory_space<vmem>>, vector<1x128x128xf32>,
    %48 = vector.extract_strided_slice %39 {offsets = [0, 256], sizes = [128, 128], strides = [1, 1]} : vector<128x512xf32> to vector<128x128xf32>
    %c2_31 = arith.constant 2 : index
    %c0_32 = arith.constant 0 : index
    %c256_33 = arith.constant 256 : index
    %49 = vector.load %arg6[%c2_31, %c0_32, %c256_33] : memref<4x128x640xf32, #tpu.memory_space<vmem>>, vector<1x128x128xf32>
    %50 = vector.shape_cast %49 : vector<1x128x128xf32> to vector<128x128xf32>
    %51 = vector.shape_cast %48 : vector<128x128xf32> to vector<1x128x128xf32>
    tpu.vector_store %arg6[%c2_31, %c0_32, %c256_33], %51 {strides = array<i32>} : memref<4x128x640xf32, #tpu.memory_space<vmem>>, vector<1x128x128xf32>,
    %52 = vector.extract_strided_slice %39 {offsets = [0, 384], sizes = [128, 128], strides = [1, 1]} : vector<128x512xf32> to vector<128x128xf32>
    %c3_34 = arith.constant 3 : index
    %c0_35 = arith.constant 0 : index
    %c256_36 = arith.constant 256 : index
    %53 = vector.load %arg6[%c3_34, %c0_35, %c256_36] : memref<4x128x640xf32, #tpu.memory_space<vmem>>, vector<1x128x128xf32>
    %54 = vector.shape_cast %53 : vector<1x128x128xf32> to vector<128x128xf32>
    %55 = vector.shape_cast %52 : vector<128x128xf32> to vector<1x128x128xf32>
    tpu.vector_store %arg6[%c3_34, %c0_35, %c256_36], %55 {strides = array<i32>} : memref<4x128x640xf32, #tpu.memory_space<vmem>>, vector<1x128x128xf32>,
    %c1_37 = arith.constant 1 : index
    %c0_38 = arith.constant 0 : index
    %c0_39 = arith.constant 0 : index
    %56 = vector.load %arg2[%c1_37, %c0_38, %c0_39] : memref<2x128x128xf32, #tpu.memory_space<vmem>>, vector<1x128x128xf32>
    %57 = vector.shape_cast %56 : vector<1x128x128xf32> to vector<128x128xf32>
    %cst_40 = arith.constant dense<0.000000e+00> : vector<128x512xf32>
    %58 = tpu.matmul %57, %0, %cst_40 {dimension_numbers = #tpu.dot_dimension_numbers<[1], [0], [0], [1], [0, 0, 1, 1], [], []>} : vector<128x128xf32>, vector<128x512xf32>, vector<128x512xf32> -> vector<128x512xf32>
    %59 = vector.extract_strided_slice %58 {offsets = [0, 0], sizes = [128, 128], strides = [1, 1]} : vector<128x512xf32> to vector<128x128xf32>
    %c0_41 = arith.constant 0 : index
    %c0_42 = arith.constant 0 : index
    %c384 = arith.constant 384 : index
    %60 = vector.load %arg6[%c0_41, %c0_42, %c384] : memref<4x128x640xf32, #tpu.memory_space<vmem>>, vector<1x128x128xf32>
    %61 = vector.shape_cast %60 : vector<1x128x128xf32> to vector<128x128xf32>
    %62 = vector.shape_cast %59 : vector<128x128xf32> to vector<1x128x128xf32>
    tpu.vector_store %arg6[%c0_41, %c0_42, %c384], %62 {strides = array<i32>} : memref<4x128x640xf32, #tpu.memory_space<vmem>>, vector<1x128x128xf32>,
    %63 = vector.extract_strided_slice %58 {offsets = [0, 128], sizes = [128, 128], strides = [1, 1]} : vector<128x512xf32> to vector<128x128xf32>
    %c1_43 = arith.constant 1 : index
    %c0_44 = arith.constant 0 : index
    %c384_45 = arith.constant 384 : index
    %64 = vector.load %arg6[%c1_43, %c0_44, %c384_45] : memref<4x128x640xf32, #tpu.memory_space<vmem>>, vector<1x128x128xf32>
    %65 = vector.shape_cast %64 : vector<1x128x128xf32> to vector<128x128xf32>
    %66 = vector.shape_cast %63 : vector<128x128xf32> to vector<1x128x128xf32>
    tpu.vector_store %arg6[%c1_43, %c0_44, %c384_45], %66 {strides = array<i32>} : memref<4x128x640xf32, #tpu.memory_space<vmem>>, vector<1x128x128xf32>,
    %67 = vector.extract_strided_slice %58 {offsets = [0, 256], sizes = [128, 128], strides = [1, 1]} : vector<128x512xf32> to vector<128x128xf32>
    %c2_46 = arith.constant 2 : index
    %c0_47 = arith.constant 0 : index
    %c384_48 = arith.constant 384 : index
    %68 = vector.load %arg6[%c2_46, %c0_47, %c384_48] : memref<4x128x640xf32, #tpu.memory_space<vmem>>, vector<1x128x128xf32>
    %69 = vector.shape_cast %68 : vector<1x128x128xf32> to vector<128x128xf32>
    %70 = vector.shape_cast %67 : vector<128x128xf32> to vector<1x128x128xf32>
    tpu.vector_store %arg6[%c2_46, %c0_47, %c384_48], %70 {strides = array<i32>} : memref<4x128x640xf32, #tpu.memory_space<vmem>>, vector<1x128x128xf32>,
    %71 = vector.extract_strided_slice %58 {offsets = [0, 384], sizes = [128, 128], strides = [1, 1]} : vector<128x512xf32> to vector<128x128xf32>
    %c3_49 = arith.constant 3 : index
    %c0_50 = arith.constant 0 : index
    %c384_51 = arith.constant 384 : index
    %72 = vector.load %arg6[%c3_49, %c0_50, %c384_51] : memref<4x128x640xf32, #tpu.memory_space<vmem>>, vector<1x128x128xf32>
    %73 = vector.shape_cast %72 : vector<1x128x128xf32> to vector<128x128xf32>
    %74 = vector.shape_cast %71 : vector<128x128xf32> to vector<1x128x128xf32>
    tpu.vector_store %arg6[%c3_49, %c0_50, %c384_51], %74 {strides = array<i32>} : memref<4x128x640xf32, #tpu.memory_space<vmem>>, vector<1x128x128xf32>,
    %cst_52 = arith.constant 2.000000e+00 : f32
    %75 = vector.broadcast %cst_52 : f32 to vector<128x128xf32>
    %76 = arith.mulf %57, %75 : vector<128x128xf32>
    %cst_53 = arith.constant dense<0.000000e+00> : vector<128x512xf32>
    %77 = tpu.matmul %76, %58, %cst_53 {dimension_numbers = #tpu.dot_dimension_numbers<[1], [0], [0], [1], [0, 0, 1, 1], [], []>} : vector<128x128xf32>, vector<128x512xf32>, vector<128x512xf32> -> vector<128x512xf32>
    %78 = arith.subf %77, %0 : vector<128x512xf32>
    %79 = vector.extract_strided_slice %78 {offsets = [0, 0], sizes = [128, 128], strides = [1, 1]} : vector<128x512xf32> to vector<128x128xf32>
    %c0_54 = arith.constant 0 : index
    %c0_55 = arith.constant 0 : index
    %c512 = arith.constant 512 : index
    %80 = vector.load %arg6[%c0_54, %c0_55, %c512] : memref<4x128x640xf32, #tpu.memory_space<vmem>>, vector<1x128x128xf32>
    %81 = vector.shape_cast %80 : vector<1x128x128xf32> to vector<128x128xf32>
    %82 = vector.shape_cast %79 : vector<128x128xf32> to vector<1x128x128xf32>
    tpu.vector_store %arg6[%c0_54, %c0_55, %c512], %82 {strides = array<i32>} : memref<4x128x640xf32, #tpu.memory_space<vmem>>, vector<1x128x128xf32>,
    %83 = vector.extract_strided_slice %78 {offsets = [0, 128], sizes = [128, 128], strides = [1, 1]} : vector<128x512xf32> to vector<128x128xf32>
    %c1_56 = arith.constant 1 : index
    %c0_57 = arith.constant 0 : index
    %c512_58 = arith.constant 512 : index
    %84 = vector.load %arg6[%c1_56, %c0_57, %c512_58] : memref<4x128x640xf32, #tpu.memory_space<vmem>>, vector<1x128x128xf32>
    %85 = vector.shape_cast %84 : vector<1x128x128xf32> to vector<128x128xf32>
    %86 = vector.shape_cast %83 : vector<128x128xf32> to vector<1x128x128xf32>
    tpu.vector_store %arg6[%c1_56, %c0_57, %c512_58], %86 {strides = array<i32>} : memref<4x128x640xf32, #tpu.memory_space<vmem>>, vector<1x128x128xf32>,
    %87 = vector.extract_strided_slice %78 {offsets = [0, 256], sizes = [128, 128], strides = [1, 1]} : vector<128x512xf32> to vector<128x128xf32>
    %c2_59 = arith.constant 2 : index
    %c0_60 = arith.constant 0 : index
    %c512_61 = arith.constant 512 : index
    %88 = vector.load %arg6[%c2_59, %c0_60, %c512_61] : memref<4x128x640xf32, #tpu.memory_space<vmem>>, vector<1x128x128xf32>
    %89 = vector.shape_cast %88 : vector<1x128x128xf32> to vector<128x128xf32>
    %90 = vector.shape_cast %87 : vector<128x128xf32> to vector<1x128x128xf32>
    tpu.vector_store %arg6[%c2_59, %c0_60, %c512_61], %90 {strides = array<i32>} : memref<4x128x640xf32, #tpu.memory_space<vmem>>, vector<1x128x128xf32>,
    %91 = vector.extract_strided_slice %78 {offsets = [0, 384], sizes = [128, 128], strides = [1, 1]} : vector<128x512xf32> to vector<128x128xf32>
    %c3_62 = arith.constant 3 : index
    %c0_63 = arith.constant 0 : index
    %c512_64 = arith.constant 512 : index
    %92 = vector.load %arg6[%c3_62, %c0_63, %c512_64] : memref<4x128x640xf32, #tpu.memory_space<vmem>>, vector<1x128x128xf32>
    %93 = vector.shape_cast %92 : vector<1x128x128xf32> to vector<128x128xf32>
    %94 = vector.shape_cast %91 : vector<128x128xf32> to vector<1x128x128xf32>
    tpu.vector_store %arg6[%c3_62, %c0_63, %c512_64], %94 {strides = array<i32>} : memref<4x128x640xf32, #tpu.memory_space<vmem>>, vector<1x128x128xf32>,
    %c0_65 = arith.constant 0 : index
    %c0_66 = arith.constant 0 : index
    %95 = vector.load %arg4[%c0_65, %c0_66] : memref<1x128xf32, #tpu.memory_space<vmem>>, vector<1x128xf32>
    %c0_67 = arith.constant 0 : index
    %c0_68 = arith.constant 0 : index
    %96 = vector.load %arg3[%c0_67, %c0_68] : memref<640x128xf32, #tpu.memory_space<vmem>>, vector<640x128xf32>
    %c0_69 = arith.constant 0 : index
    %c0_70 = arith.constant 0 : index
    %c0_71 = arith.constant 0 : index
    %97 = vector.load %arg6[%c0_69, %c0_70, %c0_71] : memref<4x128x640xf32, #tpu.memory_space<vmem>>, vector<1x128x640xf32>
    %98 = vector.shape_cast %97 : vector<1x128x640xf32> to vector<128x640xf32>
    %cst_72 = arith.constant dense<0.000000e+00> : vector<128x128xf32>
    %99 = tpu.matmul %98, %96, %cst_72 {dimension_numbers = #tpu.dot_dimension_numbers<[1], [0], [0], [1], [0, 0, 1, 1], [], []>} : vector<128x640xf32>, vector<640x128xf32>, vector<128x128xf32> -> vector<128x128xf32>
    %100 = vector.broadcast %95 : vector<1x128xf32> to vector<128x128xf32>
    %101 = arith.addf %99, %100 : vector<128x128xf32>
    %c0_73 = arith.constant 0 : index
    %c0_74 = arith.constant 0 : index
    %c0_75 = arith.constant 0 : index
    %102 = vector.load %arg5[%c0_73, %c0_74, %c0_75] : memref<4x128x128xf32, #tpu.memory_space<vmem>>, vector<1x128x128xf32>
    %103 = vector.shape_cast %102 : vector<1x128x128xf32> to vector<128x128xf32>
    %104 = vector.shape_cast %101 : vector<128x128xf32> to vector<1x128x128xf32>
    tpu.vector_store %arg5[%c0_73, %c0_74, %c0_75], %104 {strides = array<i32>} : memref<4x128x128xf32, #tpu.memory_space<vmem>>, vector<1x128x128xf32>,
    %c1_76 = arith.constant 1 : index
    %c0_77 = arith.constant 0 : index
    %c0_78 = arith.constant 0 : index
    %105 = vector.load %arg6[%c1_76, %c0_77, %c0_78] : memref<4x128x640xf32, #tpu.memory_space<vmem>>, vector<1x128x640xf32>
    %106 = vector.shape_cast %105 : vector<1x128x640xf32> to vector<128x640xf32>
    %cst_79 = arith.constant dense<0.000000e+00> : vector<128x128xf32>
    %107 = tpu.matmul %106, %96, %cst_79 {dimension_numbers = #tpu.dot_dimension_numbers<[1], [0], [0], [1], [0, 0, 1, 1], [], []>} : vector<128x640xf32>, vector<640x128xf32>, vector<128x128xf32> -> vector<128x128xf32>
    %108 = vector.broadcast %95 : vector<1x128xf32> to vector<128x128xf32>
    %109 = arith.addf %107, %108 : vector<128x128xf32>
    %c1_80 = arith.constant 1 : index
    %c0_81 = arith.constant 0 : index
    %c0_82 = arith.constant 0 : index
    %110 = vector.load %arg5[%c1_80, %c0_81, %c0_82] : memref<4x128x128xf32, #tpu.memory_space<vmem>>, vector<1x128x128xf32>
    %111 = vector.shape_cast %110 : vector<1x128x128xf32> to vector<128x128xf32>
    %112 = vector.shape_cast %109 : vector<128x128xf32> to vector<1x128x128xf32>
    tpu.vector_store %arg5[%c1_80, %c0_81, %c0_82], %112 {strides = array<i32>} : memref<4x128x128xf32, #tpu.memory_space<vmem>>, vector<1x128x128xf32>,
    %c2_83 = arith.constant 2 : index
    %c0_84 = arith.constant 0 : index
    %c0_85 = arith.constant 0 : index
    %113 = vector.load %arg6[%c2_83, %c0_84, %c0_85] : memref<4x128x640xf32, #tpu.memory_space<vmem>>, vector<1x128x640xf32>
    %114 = vector.shape_cast %113 : vector<1x128x640xf32> to vector<128x640xf32>
    %cst_86 = arith.constant dense<0.000000e+00> : vector<128x128xf32>
    %115 = tpu.matmul %114, %96, %cst_86 {dimension_numbers = #tpu.dot_dimension_numbers<[1], [0], [0], [1], [0, 0, 1, 1], [], []>} : vector<128x640xf32>, vector<640x128xf32>, vector<128x128xf32> -> vector<128x128xf32>
    %116 = vector.broadcast %95 : vector<1x128xf32> to vector<128x128xf32>
    %117 = arith.addf %115, %116 : vector<128x128xf32>
    %c2_87 = arith.constant 2 : index
    %c0_88 = arith.constant 0 : index
    %c0_89 = arith.constant 0 : index
    %118 = vector.load %arg5[%c2_87, %c0_88, %c0_89] : memref<4x128x128xf32, #tpu.memory_space<vmem>>, vector<1x128x128xf32>
    %119 = vector.shape_cast %118 : vector<1x128x128xf32> to vector<128x128xf32>
    %120 = vector.shape_cast %117 : vector<128x128xf32> to vector<1x128x128xf32>
    tpu.vector_store %arg5[%c2_87, %c0_88, %c0_89], %120 {strides = array<i32>} : memref<4x128x128xf32, #tpu.memory_space<vmem>>, vector<1x128x128xf32>,
    %c3_90 = arith.constant 3 : index
    %c0_91 = arith.constant 0 : index
    %c0_92 = arith.constant 0 : index
    %121 = vector.load %arg6[%c3_90, %c0_91, %c0_92] : memref<4x128x640xf32, #tpu.memory_space<vmem>>, vector<1x128x640xf32>
    %122 = vector.shape_cast %121 : vector<1x128x640xf32> to vector<128x640xf32>
    %cst_93 = arith.constant dense<0.000000e+00> : vector<128x128xf32>
    %123 = tpu.matmul %122, %96, %cst_93 {dimension_numbers = #tpu.dot_dimension_numbers<[1], [0], [0], [1], [0, 0, 1, 1], [], []>} : vector<128x640xf32>, vector<640x128xf32>, vector<128x128xf32> -> vector<128x128xf32>
    %124 = vector.broadcast %95 : vector<1x128xf32> to vector<128x128xf32>
    %125 = arith.addf %123, %124 : vector<128x128xf32>
    %c3_94 = arith.constant 3 : index
    %c0_95 = arith.constant 0 : index
    %c0_96 = arith.constant 0 : index
    %126 = vector.load %arg5[%c3_94, %c0_95, %c0_96] : memref<4x128x128xf32, #tpu.memory_space<vmem>>, vector<1x128x128xf32>
    %127 = vector.shape_cast %126 : vector<1x128x128xf32> to vector<128x128xf32>
    %128 = vector.shape_cast %125 : vector<128x128xf32> to vector<1x128x128xf32>
    tpu.vector_store %arg5[%c3_94, %c0_95, %c0_96], %128 {strides = array<i32>} : memref<4x128x128xf32, #tpu.memory_space<vmem>>, vector<1x128x128xf32>,
    return
  }
  func.func @transform_0(%arg0: i32) -> (i32, i32) {
    %c0_i32 = arith.constant 0 : i32
    %c0_i32_0 = arith.constant 0 : i32
    return %c0_i32, %arg0 : i32, i32
  }
  func.func @transform_1(%arg0: i32) -> (i32, i32, i32) {
    %c0_i32 = arith.constant 0 : i32
    %c0_i32_0 = arith.constant 0 : i32
    %c0_i32_1 = arith.constant 0 : i32
    %c0_i32_2 = arith.constant 0 : i32
    return %c0_i32, %c0_i32_0, %c0_i32_1 : i32, i32, i32
  }
  func.func @transform_2(%arg0: i32) -> (i32, i32) {
    %c0_i32 = arith.constant 0 : i32
    %c0_i32_0 = arith.constant 0 : i32
    %c0_i32_1 = arith.constant 0 : i32
    return %c0_i32, %c0_i32_0 : i32, i32
  }
  func.func @transform_3(%arg0: i32) -> (i32, i32) {
    %c0_i32 = arith.constant 0 : i32
    %c0_i32_0 = arith.constant 0 : i32
    %c0_i32_1 = arith.constant 0 : i32
    return %c0_i32, %c0_i32_0 : i32, i32
  }
  func.func @transform_4(%arg0: i32) -> (i32, i32, i32) {
    %c0_i32 = arith.constant 0 : i32
    %c0_i32_0 = arith.constant 0 : i32
    %c0_i32_1 = arith.constant 0 : i32
    return %arg0, %c0_i32, %c0_i32_0 : i32, i32, i32
  }
}

</mosaic_0001>

<bundles_post_ra>
// kernel: tpu_custom_call.1
= control target key start
LH: loop header
LB: loop body
LE: loop exit
PB: predicated region body
PF: predicated region fallthrough
CT: control target
= control target key end

     0   :  { %9 = vsyncpa [#allocation4], 0  ;;  %s8945_s0 = inlined_call_operand.hbm [shape: f32[128,1024], index: 0, kind: input, shape index: {}]   ;;  %s8946_s1 = inlined_call_operand.hbm [shape: f32[2,128,128], index: 1, kind: input, shape index: {}]   ;;  %s8947_s2 = inlined_call_operand.hbm [shape: f32[640,128], index: 2, kind: input, shape index: {}]   ;;  %s8948_s3 = inlined_call_operand.vmem [shape: f32[1,128], index: 3, kind: input, shape index: {}]   ;;  %s8949_s4 = inlined_call_operand.hbm [shape: f32[8,128,128], index: 4, kind: output, shape index: {}]  }
   0x1   :  { %11 = vsyncpa [#allocation4 + $0x1], 0 }
   0x2   :  { %12 = vsyncpa [#allocation7], 0 }
   0x3   :  { %13 = vsyncpa [#allocation5], 0 }
   0x4   :  { %15 = vsyncpa [#allocation5 + $0x1], 0  ;;  %s5906_s15 = smov 0   ;;  %s5908_s16 = smov 0  }
   0x5   :  { %s5910_s17 = smov 0   ;;  %s5912_s18 = smov 0  }
   0x6 LB: > { %s5927_s19 = sadd.s32 4294967295, %s5867_s18   ;;  %s4436_s20 = sadd.s32 4294967294, %s5867_s18   ;;  %s5867_s18 = sphi %s5912_s18, %s10064_s18   ;;  %s5863_s17 = sphi %s5910_s17, %s10063_s17   ;;  %s5859_s16 = sphi %s5908_s16, %s10062_s16   ;;  %s5855_s15 = sphi %s5906_s15, %s10061_s15  }
   0x7   : > { %s5931_s21 = sadd.s32 1, %s5867_s18   ;;  %s28_s22 = sadd.s32 1, %s5863_s17 }
   0x8   : > { %s25_s23 = ssub.s32 %s5867_s18, %s5931_s21  ;;  %p35_p0 = scmp.ne.s32.totalorder %s5863_s17, %s5859_s16 }
   0x9   : > { %p26_p1 = scmp.eq.s32.totalorder %s25_s23, 0  ;;  %p36_p2 = scmp.eq.s32.totalorder %s5867_s18, 0 }
   0xa   : > { %p41_p3 = scmp.ne.s32.totalorder %s5859_s16, %s5855_s15  ;;  %p8951_p4 = scmp.eq.s32.totalorder %s5927_s19, 0 }
   0xb   : > { %s5943_s24 = scalar_select %p26_p1, %s5863_s17, %s28_s22  }
   0xc   : > { %p5945_p5 = por %p36_p2, %p35_p0  ;;  %p5951_p6 = por %p8951_p4, %p41_p3 }
   0xd   : > { %p128_p7 = scmp.eq.s32.totalorder %s5927_s19, 1  ;;  %p134_p8 = scmp.eq.s32.totalorder %s4436_s20, 1 }
   0xe   : > { %s9225_s26 = scalar_select %p5951_p6, 1, 0 }
   0xf   : > { %p4437_p9 = scmp.ge.s32.totalorder %s5867_s18, 1  ;;  %p141_p10 = scmp.lt.s32.totalorder %s5867_s18, 3 }
  0x10   : > { %p5958_p11 = por %p128_p7, %p35_p0  ;;  %p5962_p12 = por %p134_p8, %p41_p3 }
  0x11   : > { %p5966_p13 = pnand %p4437_p9, %p141_p10  ;;  %s5869_s30 = smov [#allocation6]  }
  0x12   : > { %s9226_s27 = scalar_select %p5958_p11, 1, 0 }
  0x13   : > { %s9227_s28 = scalar_select %p5962_p12, 1, 0 }
  0x14   : > { %s9228_s29 = scalar_select %p5966_p13, 1, 0 }
  0x15   : > { %p5511_p1 = pneg %p5966_p13  ;;  %s153_s5 = sshll.u32 %s5869_s30, 4  ;;  %s154_s5 = int_to_ptr.vmem [resolvable:$true] %s153_s5 }
  0x16   : > { %p5528_p3 = scmp.lt.s32.totalorder %s5867_s18, 2  ;;  %s5870_s7 = smov [#allocation8]  }
  0x17   : > { %p5974_p2 = pnand %p5511_p1, %p8951_p4  ;;  %s166_s8 = sshll.u32 %s5870_s7, 4  ;;  %s167_s8 = int_to_ptr.vmem [resolvable:$true] %s166_s8 }
  0x18   : > { %s5730_s9 = scalar_lea.vmem %s154_s5, 4096  ;;  %p5738_p12 = scmp.lt.s32.totalorder %s154_s5, %s154_s5 }
  0x19   : > { %p5721_p7 = pneg %p5974_p2  ;;  %p5731_p8 = scmp.ne.s32.totalorder %s154_s5, %s5730_s9 }
  0x1a   : > { %p5739_p11 = scmp.lt.s32.totalorder %s5730_s9, %s5730_s9 }
  0x1b   : > { %p5733_p9 = pnand %p5731_p8, %p5721_p7 }
  0x1c   : > { %p5740_p1 = por %p5739_p11, %p5738_p12 }
  0x1d   : > { %p5734_p10 = pneg %p5733_p9 }
  0x1f   : > { %p5741_p4 = pnand %p5740_p1, %p5734_p10 }
  0x21   : > { %5744 = shalt.err (!%p5741_p4)
}
  0x22   : > { %s5871_s10 = smov 128   ;;  %s5872_s11 = smov 8  }
  0x23   : > { %5514 = dma.hbm_to_vmem [thread:$0]  (!%p5974_p2), %s8946_s1, 4096, %s154_s5, [#allocation7], %s5871_s10, %s5871_s10, %s5872_s11  }
  0x24   : > { %p5994_p8 = pnand %p5528_p3, %p5945_p5  ;;  %s5756_s20 = scalar_lea.vmem %s167_s8, 10240 }
  0x25   : > { %p5757_p4 = scmp.ne.s32.totalorder %s167_s8, %s5756_s20  ;;  %p5764_p9 = scmp.lt.s32.totalorder %s167_s8, %s167_s8 }
  0x26   : > { %p5765_p10 = scmp.lt.s32.totalorder %s5756_s20, %s5756_s20 }
  0x27   : > { %p5759_p11 = pnand %p5757_p4, %p5721_p7 }
  0x28   : > { %p5766_p1 = por %p5765_p10, %p5764_p9 }
  0x29   : > { %p5760_p12 = pneg %p5759_p11 }
  0x2b   : > { %p5767_p0 = pnand %p5766_p1, %p5760_p12 }
  0x2d   : > { %5770 = shalt.err (!%p5767_p0)
}
  0x2e   : > { %5517 = dma.hbm_to_vmem [thread:$0]  (!%p5974_p2), %s8947_s2, 10240, %s167_s8, [#allocation7], %s5871_s10, %s5871_s10, %s5872_s11  }
  0x2f   : > { %s183_s25 = sand.u32 1, %s5863_s17   ;;  %s4504_s5 = sshll.u32 %s5867_s18, 9 }
  0x30   : > { %s4441_s30 = sshll.u32 %s183_s25, 9  ;;  %s6011_s12 = scalar_lea.hbm %s8945_s0, %s4504_s5 }
  0x31   : > { %s187_s13 = scalar_lea.vmem [#allocation3], %s4441_s30  ;;  %s6015_s20 = scalar_lea.sflag [#allocation4], %s183_s25 }
  0x32   : > { %s194_s6 = sshll.u32 %s187_s13, 4  ;;  %s5771_s22 = scalar_lea.hbm %s6011_s12, 8192  ;;  %s6013_s6 = int_to_ptr.vmem [resolvable:$true] %s194_s6 }
  0x33   : > { %p5772_p5 = scmp.ne.s32.totalorder %s6011_s12, %s5771_s22  ;;  %p5773_p2 = pneg %p5994_p8 }
  0x34   : > { %s5776_s11 = scalar_lea.hbm %s8945_s0, 16384  ;;  %p5777_p7 = scmp.lt.s32.totalorder %s6011_s12, %s8945_s0 }
  0x35   : > { %p5774_p0 = pnand %p5773_p2, %p5772_p5  ;;  %p5778_p4 = scmp.lt.s32.totalorder %s5776_s11, %s5771_s22 }
  0x37   : > { %p5775_p3 = pneg %p5774_p0  ;;  %p5779_p11 = por %p5778_p4, %p5777_p7 }
  0x39   : > { %p5780_p12 = pnand %p5779_p11, %p5775_p3 }
  0x3b   : > { %5783 = shalt.err (!%p5780_p12)
}
  0x3c   : > { %s5784_s25 = scalar_lea.vmem %s6013_s6, 8192  ;;  %s5873_s30 = smov [#allocation3]  }
  0x3d   : > { %p5785_p9 = scmp.ne.s32.totalorder %s6013_s6, %s5784_s25  ;;  %s5789_s7 = sshll.u32 %s5873_s30, 4  ;;  %s5790_s7 = int_to_ptr.vmem [resolvable:$false] %s5789_s7 }
  0x3e   : > { %s5791_s9 = scalar_lea.vmem %s5790_s7, 16384  ;;  %p5792_p5 = scmp.lt.s32.totalorder %s6013_s6, %s5790_s7 }
  0x3f   : > { %p5787_p10 = pnand %p5785_p9, %p5773_p2  ;;  %p5793_p0 = scmp.lt.s32.totalorder %s5791_s9, %s5784_s25 }
  0x41   : > { %p5788_p1 = pneg %p5787_p10  ;;  %p5794_p6 = por %p5793_p0, %p5792_p5 }
  0x43   : > { %p5795_p13 = pnand %p5794_p6, %p5788_p1 }
  0x45   : > { %5798 = shalt.err (!%p5795_p13)
}
  0x46   : > { %s5874_s13 = smov 1024   ;;  %s5875_s22 = smov 512  }
  0x47   : > { %s5876_s8 = smov 32   ;;  %p9231_p2 = scmp.ne.s32.totalorder %s9228_s29, 0 }
  0x48   : > { %5521 = dma.hbm_to_vmem [thread:$0]  (!%p5994_p8), %s6011_s12, 8192, %s6013_s6, %s6015_s20, %s5874_s13, %s5875_s22, %s5876_s8  }
  0x49   : > { %206 = sbr.rel (%p9231_p2) target bundleno = 1451 (0x5ab), region = 36 }
  0x4e   : > { %s6039_s10 = sand.u32 1, %s5859_s16   ;;  %p9232_p6 = scmp.ne.s32.totalorder %s9225_s26, 0 }
  0x4f   : > { %s4445_s11 = sshll.u32 %s6039_s10, 9  ;;  %s209_s23 = scalar_lea.sflag [#allocation4], %s6039_s10 }
  0x50   : > { %s6045_s5 = scalar_lea.vmem [#allocation3], %s4445_s11 }
  0x51   : > { %5842 = dma.done.wait (%p9232_p6), %s209_s23, 8192  }
  0x52   : > { %5844 = vsyncadd (%p9232_p6), %s209_s23, 4294959104  ;;  %p9233_p13 = scmp.eq.s32.totalorder %s5927_s19, 0 }
  0x54   : > { %5846 = dma.done.wait (%p9233_p13), [#allocation7], 14336   ;;  %p9234_p8 = pmov %p9233_p13 }
  0x55   : > { %v8954_v0 = vmov 0.0   ;;  %v6058_v1 = vld [vmem:[%s6045_s5 + $0x1e8] sm:$0xff]  ;;  %v6061_v2 = vld [vmem:[%s6045_s5 + $0x1f8] sm:$0xff]  ;;  %v6064_v3 = vld [vmem:[%s6045_s5 + $0x1e0] sm:$0xff]  ;;  %s8351_s14 = scalar_lea.vmem [#allocation9], %s4445_s11  ;;  %s4506_s20 = sshll.u32 %s5927_s19, 13 }
  0x56   : > { %5848 = vsyncadd (%p9234_p8), [#allocation7], 4294952960  ;;  %458 = vmatprep.mubr.f32.mxu0 %v8954_v0  ;;  %619 = vmatprep.mubr.f32.mxu1 %v8954_v0  ;;  %9235 = vst [vmem:[#allocation13_spill] sm:$0xff] %v6058_v1  ;;  %v6069_v4 = vld [vmem:[%s6045_s5 + $0x1f0] sm:$0xff]  ;;  %v6072_v5 = vld [vmem:[%s6045_s5 + $0x1c8] sm:$0xff]  ;;  %s4344_s25 = sshll.u32 %s8351_s14, 4  ;;  %s8899_s9 = scalar_lea.hbm %s8949_s4, %s4506_s20  ;;  %s8901_s25 = int_to_ptr.vmem [resolvable:$true] %s4344_s25 }
  0x57   : > { %9236 = vst [vmem:[#allocation14_spill] sm:$0xff] %v6061_v2  ;;  %9237 = vst [vmem:[#allocation15_spill] sm:$0xff] %v6064_v3  ;;  %394 = vmatprep.subr.mxu0 %v6058_v1  ;;  %555 = vmatprep.subr.mxu1 %v6061_v2  ;;  %v6075_v6 = vld [vmem:[%s6045_s5 + $0x1d8] sm:$0xff]  ;;  %v6080_v7 = vld [vmem:[%s6045_s5 + $0x1c0] sm:$0xff]  ;;  %s4330_s13 = scalar_lea.sflag [#allocation5], %s6039_s10  ;;  %s5799_s22 = scalar_lea.vmem %s8901_s25, 8192 }
  0x58   : > { %9238 = vst [vmem:[#allocation16_spill] sm:$0xff] %v6069_v4  ;;  %9239 = vst [vmem:[#allocation17_spill] sm:$0xff] %v6072_v5  ;;  %395 = vmatpush1.msra.mxu0 %v6064_v3  ;;  %556 = vmatpush1.msra.mxu1 %v6069_v4  ;;  %v6083_v8 = vld [vmem:[%s6045_s5 + $0x1d0] sm:$0xff]  ;;  %v6086_v9 = vld [vmem:[%s6045_s5 + $0x1a8] sm:$0xff]  ;;  %p5800_p3 = scmp.ne.s32.totalorder %s8901_s25, %s5799_s22  ;;  %p10058_p7 = scmp.ne.s32.totalorder %s9226_s27, 0 }
  0x59   : > { %9240 = vst [vmem:[#allocation18_spill] sm:$0xff] %v6075_v6  ;;  %9241 = vst [vmem:[#allocation19_spill] sm:$0xff] %v6080_v7  ;;  %396 = vmatprep.subr.mxu0 %v6072_v5  ;;  %557 = vmatprep.subr.mxu1 %v6075_v6  ;;  %v6091_v10 = vld [vmem:[%s6045_s5 + $0x1b8] sm:$0xff]  ;;  %v6094_v11 = vld [vmem:[%s6045_s5 + $0x1a0] sm:$0xff]  ;;  %s5878_s19 = smov [#allocation9]  }
  0x5a   : > { %9242 = vst [vmem:[#allocation20_spill] sm:$0xff] %v6083_v8  ;;  %9243 = vst [vmem:[#allocation21_spill] sm:$0xff] %v6086_v9  ;;  %v6097_v12 = vld [vmem:[%s6045_s5 + $0x1b0] sm:$0xff]  ;;  %397 = vmatpush1.msra.mxu0 %v6080_v7  ;;  %558 = vmatpush1.msra.mxu1 %v6083_v8  ;;  %v6102_v13 = vld [vmem:[%s6045_s5 + $0x188] sm:$0xff]  ;;  %p5801_p4 = pnand %p5800_p3, %p10058_p7  ;;  %s5803_s8 = sshll.u32 %s5878_s19, 4  ;;  %s5804_s8 = int_to_ptr.vmem [resolvable:$false] %s5803_s8 }
  0x5b   : > { %9244 = vst [vmem:[#allocation22_spill] sm:$0xff] %v6091_v10  ;;  %9245 = vst [vmem:[#allocation23_spill] sm:$0xff] %v6094_v11  ;;  %v6105_v14 = vld [vmem:[%s6045_s5 + $0x198] sm:$0xff]  ;;  %398 = vmatprep.subr.mxu0 %v6086_v9  ;;  %559 = vmatprep.subr.mxu1 %v6091_v10  ;;  %v6110_v15 = vld [vmem:[%s6045_s5 + $0x180] sm:$0xff]  ;;  %s5805_s11 = scalar_lea.vmem %s5804_s8, 16384  ;;  %p5806_p12 = scmp.lt.s32.totalorder %s8901_s25, %s5804_s8 }
  0x5c   : > { %9246 = vst [vmem:[#allocation24_spill] sm:$0xff] %v6097_v12  ;;  %9247 = vst [vmem:[#allocation25_spill] sm:$0xff] %v6102_v13  ;;  %v6113_v16 = vld [vmem:[%s6045_s5 + $0x190] sm:$0xff]  ;;  %399 = vmatpush1.msra.mxu0 %v6094_v11  ;;  %560 = vmatpush1.msra.mxu1 %v6097_v12  ;;  %v6118_v17 = vld [vmem:[%s6045_s5 + $0x168] sm:$0xff]  ;;  %p5802_p11 = pneg %p5801_p4  ;;  %p5807_p9 = scmp.lt.s32.totalorder %s5805_s11, %s5799_s22 }
  0x5d   : > { %9248 = vst [vmem:[#allocation26_spill] sm:$0xff] %v6105_v14  ;;  %9249 = vst [vmem:[#allocation27_spill] sm:$0xff] %v6110_v15  ;;  %v6121_v18 = vld [vmem:[%s6045_s5 + $0x178] sm:$0xff]  ;;  %400 = vmatprep.subr.mxu0 %v6102_v13  ;;  %561 = vmatprep.subr.mxu1 %v6105_v14  ;;  %v6126_v19 = vld [vmem:[%s6045_s5 + $0x160] sm:$0xff] }
  0x5e   : > { %9250 = vst [vmem:[#allocation28_spill] sm:$0xff] %v6113_v16  ;;  %9251 = vst [vmem:[#allocation29_spill] sm:$0xff] %v6118_v17  ;;  %v6129_v20 = vld [vmem:[%s6045_s5 + $0x170] sm:$0xff]  ;;  %401 = vmatpush1.msra.mxu0 %v6110_v15  ;;  %562 = vmatpush1.msra.mxu1 %v6113_v16  ;;  %v6134_v21 = vld [vmem:[%s6045_s5 + $0x148] sm:$0xff]  ;;  %p5808_p10 = por %p5807_p9, %p5806_p12 }
  0x5f   : > { %9252 = vst [vmem:[#allocation30_spill] sm:$0xff] %v6121_v18  ;;  %9253 = vst [vmem:[#allocation31_spill] sm:$0xff] %v6126_v19  ;;  %v6137_v22 = vld [vmem:[%s6045_s5 + $0x158] sm:$0xff]  ;;  %402 = vmatprep.subr.mxu0 %v6118_v17  ;;  %563 = vmatprep.subr.mxu1 %v6121_v18  ;;  %v6142_v23 = vld [vmem:[%s6045_s5 + $0x140] sm:$0xff] }
  0x60   : > { %9254 = vst [vmem:[#allocation32_spill] sm:$0xff] %v6129_v20  ;;  %9255 = vst [vmem:[#allocation33_spill] sm:$0xff] %v6134_v21  ;;  %v6145_v24 = vld [vmem:[%s6045_s5 + $0x150] sm:$0xff]  ;;  %403 = vmatpush1.msra.mxu0 %v6126_v19  ;;  %564 = vmatpush1.msra.mxu1 %v6129_v20  ;;  %v6150_v25 = vld [vmem:[%s6045_s5 + $0x128] sm:$0xff]  ;;  %p5809_p1 = pnand %p5808_p10, %p5802_p11 }
  0x61   : > { %9256 = vst [vmem:[#allocation34_spill] sm:$0xff] %v6137_v22  ;;  %9257 = vst [vmem:[#allocation35_spill] sm:$0xff] %v6142_v23  ;;  %v6153_v26 = vld [vmem:[%s6045_s5 + $0x138] sm:$0xff]  ;;  %404 = vmatprep.subr.mxu0 %v6134_v21  ;;  %565 = vmatprep.subr.mxu1 %v6137_v22  ;;  %v6158_v27 = vld [vmem:[%s6045_s5 + $0x120] sm:$0xff] }
  0x62   : > { %9258 = vst [vmem:[#allocation36_spill] sm:$0xff] %v6145_v24  ;;  %9259 = vst [vmem:[#allocation37_spill] sm:$0xff] %v6150_v25  ;;  %v6161_v28 = vld [vmem:[%s6045_s5 + $0x130] sm:$0xff]  ;;  %405 = vmatpush1.msra.mxu0 %v6142_v23  ;;  %566 = vmatpush1.msra.mxu1 %v6145_v24  ;;  %v6166_v29 = vld [vmem:[%s6045_s5 + $0x108] sm:$0xff] }
  0x63   : > { %9260 = vst [vmem:[#allocation38_spill] sm:$0xff] %v6153_v26  ;;  %9261 = vst [vmem:[#allocation39_spill] sm:$0xff] %v6158_v27  ;;  %v6169_v30 = vld [vmem:[%s6045_s5 + $0x118] sm:$0xff]  ;;  %406 = vmatprep.subr.mxu0 %v6150_v25  ;;  %567 = vmatprep.subr.mxu1 %v6153_v26  ;;  %v6174_v31 = vld [vmem:[%s6045_s5 + $0x100] sm:$0xff] }
  0x64   : > { %9262 = vst [vmem:[#allocation40_spill] sm:$0xff] %v6161_v28  ;;  %9263 = vst [vmem:[#allocation41_spill] sm:$0xff] %v6166_v29  ;;  %v6177_v32 = vld [vmem:[%s6045_s5 + $0x110] sm:$0xff]  ;;  %407 = vmatpush1.msra.mxu0 %v6158_v27  ;;  %568 = vmatpush1.msra.mxu1 %v6161_v28  ;;  %v6182_v33 = vld [vmem:[%s6045_s5 + $0xe8] sm:$0xff] }
  0x65   : > { %9264 = vst [vmem:[#allocation42_spill] sm:$0xff] %v6169_v30  ;;  %9265 = vst [vmem:[#allocation43_spill] sm:$0xff] %v6174_v31  ;;  %v6185_v34 = vld [vmem:[%s6045_s5 + $0xf8] sm:$0xff]  ;;  %408 = vmatprep.subr.mxu0 %v6166_v29  ;;  %569 = vmatprep.subr.mxu1 %v6169_v30  ;;  %v6190_v35 = vld [vmem:[%s6045_s5 + $0xe0] sm:$0xff] }
  0x66   : > { %9266 = vst [vmem:[#allocation44_spill] sm:$0xff] %v6177_v32  ;;  %9267 = vst [vmem:[#allocation45_spill] sm:$0xff] %v6182_v33  ;;  %v6193_v36 = vld [vmem:[%s6045_s5 + $0xf0] sm:$0xff]  ;;  %409 = vmatpush1.msra.mxu0 %v6174_v31  ;;  %570 = vmatpush1.msra.mxu1 %v6177_v32  ;;  %v6198_v37 = vld [vmem:[%s6045_s5 + $0xc8] sm:$0xff] }
  0x67   : > { %9268 = vst [vmem:[#allocation46_spill] sm:$0xff] %v6185_v34  ;;  %9269 = vst [vmem:[#allocation47_spill] sm:$0xff] %v6190_v35  ;;  %v6201_v38 = vld [vmem:[%s6045_s5 + $0xd8] sm:$0xff]  ;;  %410 = vmatprep.subr.mxu0 %v6182_v33  ;;  %571 = vmatprep.subr.mxu1 %v6185_v34  ;;  %v6206_v39 = vld [vmem:[%s6045_s5 + $0xc0] sm:$0xff] }
  0x68   : > { %9270 = vst [vmem:[#allocation48_spill] sm:$0xff] %v6193_v36  ;;  %9271 = vst [vmem:[#allocation49_spill] sm:$0xff] %v6198_v37  ;;  %v6209_v40 = vld [vmem:[%s6045_s5 + $0xd0] sm:$0xff]  ;;  %411 = vmatpush1.msra.mxu0 %v6190_v35  ;;  %572 = vmatpush1.msra.mxu1 %v6193_v36  ;;  %v6214_v41 = vld [vmem:[%s6045_s5 + $0xa8] sm:$0xff] }
  0x69   : > { %9272 = vst [vmem:[#allocation50_spill] sm:$0xff] %v6201_v38  ;;  %9273 = vst [vmem:[#allocation51_spill] sm:$0xff] %v6206_v39  ;;  %v6217_v42 = vld [vmem:[%s6045_s5 + $0xb8] sm:$0xff]  ;;  %412 = vmatprep.subr.mxu0 %v6198_v37  ;;  %573 = vmatprep.subr.mxu1 %v6201_v38  ;;  %v6222_v43 = vld [vmem:[%s6045_s5 + $0xa0] sm:$0xff] }
  0x6a   : > { %9274 = vst [vmem:[#allocation52_spill] sm:$0xff] %v6209_v40  ;;  %9275 = vst [vmem:[#allocation53_spill] sm:$0xff] %v6214_v41  ;;  %v6225_v44 = vld [vmem:[%s6045_s5 + $0xb0] sm:$0xff]  ;;  %413 = vmatpush1.msra.mxu0 %v6206_v39  ;;  %574 = vmatpush1.msra.mxu1 %v6209_v40  ;;  %v6230_v45 = vld [vmem:[%s6045_s5 + $0x88] sm:$0xff] }
  0x6b   : > { %9276 = vst [vmem:[#allocation54_spill] sm:$0xff] %v6217_v42  ;;  %9277 = vst [vmem:[#allocation55_spill] sm:$0xff] %v6222_v43  ;;  %v6233_v46 = vld [vmem:[%s6045_s5 + $0x98] sm:$0xff]  ;;  %414 = vmatprep.subr.mxu0 %v6214_v41  ;;  %575 = vmatprep.subr.mxu1 %v6217_v42  ;;  %v6238_v47 = vld [vmem:[%s6045_s5 + $0x80] sm:$0xff] }
  0x6c   : > { %9278 = vst [vmem:[#allocation56_spill] sm:$0xff] %v6225_v44  ;;  %9279 = vst [vmem:[#allocation57_spill] sm:$0xff] %v6230_v45  ;;  %v6241_v48 = vld [vmem:[%s6045_s5 + $0x90] sm:$0xff]  ;;  %415 = vmatpush1.msra.mxu0 %v6222_v43  ;;  %576 = vmatpush1.msra.mxu1 %v6225_v44  ;;  %v6246_v49 = vld [vmem:[%s6045_s5 + $0x68] sm:$0xff] }
  0x6d   : > { %9280 = vst [vmem:[#allocation58_spill] sm:$0xff] %v6233_v46  ;;  %9281 = vst [vmem:[#allocation59_spill] sm:$0xff] %v6238_v47  ;;  %v6249_v50 = vld [vmem:[%s6045_s5 + $0x78] sm:$0xff]  ;;  %416 = vmatprep.subr.mxu0 %v6230_v45  ;;  %577 = vmatprep.subr.mxu1 %v6233_v46  ;;  %v6254_v51 = vld [vmem:[%s6045_s5 + $0x60] sm:$0xff] }
  0x6e   : > { %9282 = vst [vmem:[#allocation60_spill] sm:$0xff] %v6241_v48  ;;  %9283 = vst [vmem:[#allocation61_spill] sm:$0xff] %v6246_v49  ;;  %v6257_v52 = vld [vmem:[%s6045_s5 + $0x70] sm:$0xff]  ;;  %417 = vmatpush1.msra.mxu0 %v6238_v47  ;;  %578 = vmatpush1.msra.mxu1 %v6241_v48  ;;  %v6262_v53 = vld [vmem:[%s6045_s5 + $0x48] sm:$0xff] }
  0x6f   : > { %9284 = vst [vmem:[#allocation62_spill] sm:$0xff] %v6249_v50  ;;  %9285 = vst [vmem:[#allocation63_spill] sm:$0xff] %v6254_v51  ;;  %v6265_v54 = vld [vmem:[%s6045_s5 + $0x58] sm:$0xff]  ;;  %418 = vmatprep.subr.mxu0 %v6246_v49  ;;  %579 = vmatprep.subr.mxu1 %v6249_v50  ;;  %v6270_v55 = vld [vmem:[%s6045_s5 + $0x40] sm:$0xff] }
  0x70   : > { %9286 = vst [vmem:[#allocation64_spill] sm:$0xff] %v6257_v52  ;;  %9287 = vst [vmem:[#allocation65_spill] sm:$0xff] %v6262_v53  ;;  %v6273_v56 = vld [vmem:[%s6045_s5 + $0x50] sm:$0xff]  ;;  %419 = vmatpush1.msra.mxu0 %v6254_v51  ;;  %580 = vmatpush1.msra.mxu1 %v6257_v52  ;;  %v6278_v57 = vld [vmem:[%s6045_s5 + $0x28] sm:$0xff] }
  0x71   : > { %9288 = vst [vmem:[#allocation66_spill] sm:$0xff] %v6265_v54  ;;  %9289 = vst [vmem:[#allocation67_spill] sm:$0xff] %v6270_v55  ;;  %v6281_v58 = vld [vmem:[%s6045_s5 + $0x38] sm:$0xff]  ;;  %420 = vmatprep.subr.mxu0 %v6262_v53  ;;  %581 = vmatprep.subr.mxu1 %v6265_v54  ;;  %v6286_v59 = vld [vmem:[%s6045_s5 + $0x20] sm:$0xff] }
  0x72   : > { %9290 = vst [vmem:[#allocation68_spill] sm:$0xff] %v6273_v56  ;;  %9291 = vst [vmem:[#allocation69_spill] sm:$0xff] %v6278_v57  ;;  %v6289_v60 = vld [vmem:[%s6045_s5 + $0x30] sm:$0xff]  ;;  %421 = vmatpush1.msra.mxu0 %v6270_v55  ;;  %582 = vmatpush1.msra.mxu1 %v6273_v56  ;;  %v6294_v61 = vld [vmem:[%s6045_s5 + $0x8] sm:$0xff] }
  0x73   : > { %9292 = vst [vmem:[#allocation70_spill] sm:$0xff] %v6281_v58  ;;  %9293 = vst [vmem:[#allocation71_spill] sm:$0xff] %v6286_v59  ;;  %v6297_v62 = vld [vmem:[%s6045_s5 + $0x18] sm:$0xff]  ;;  %422 = vmatprep.subr.mxu0 %v6278_v57  ;;  %583 = vmatprep.subr.mxu1 %v6281_v58  ;;  %v6302_v63 = vld [vmem:[%s6045_s5] sm:$0xff]  ;;  %v9299_v58 = vmov 0.0  }
  0x74   : > { %9294 = vst [vmem:[#allocation72_spill] sm:$0xff] %v6289_v60  ;;  %9295 = vst [vmem:[#allocation73_spill] sm:$0xff] %v6294_v61  ;;  %v6305_v0 = vld [vmem:[%s6045_s5 + $0x10] sm:$0xff]  ;;  %423 = vmatpush1.msra.mxu0 %v6286_v59  ;;  %584 = vmatpush1.msra.mxu1 %v6289_v60  ;;  %v6309_v54 = vld [vmem:[#allocation6] sm:$0xff] }
  0x75   : > { %9296 = vst [vmem:[#allocation74_spill] sm:$0xff] %v6297_v62  ;;  %9297 = vst [vmem:[#allocation75_spill] sm:$0xff] %v6302_v63  ;;  %424 = vmatprep.subr.mxu0 %v6294_v61  ;;  %585 = vmatprep.subr.mxu1 %v6297_v62  ;;  %v6319_v59 = vld [vmem:[#allocation6 + $0x8] sm:$0xff]  ;;  %v6337_v62 = vld [vmem:[#allocation6 + $0x20] sm:$0xff] }
  0x76   : > { %9298 = vst [vmem:[#allocation76_spill] sm:$0xff] %v6305_v0  ;;  %425 = vmatpush1.msra.mxu0 %v6302_v63  ;;  %586 = vmatpush1.msra.mxu1 %v6305_v0  ;;  %9300 = vst [vmem:[#allocation77_spill] sm:$0xff] %v6319_v59  ;;  %v6325_v63 = vld [vmem:[#allocation6 + $0x10] sm:$0xff]  ;;  %v6331_v0 = vld [vmem:[#allocation6 + $0x18] sm:$0xff] }
  0x77   : > { %459 = vmatmul.mubr.f32.vlgmr.msra.gmra.mxu0 %v6309_v54  ;;  %620 = vmatmul.mubr.f32.vlgmr.msra.gmra.mxu1 %v6309_v54  ;;  %9301 = vst [vmem:[#allocation78_spill] sm:$0xff] %v6325_v63  ;;  %9302 = vst [vmem:[#allocation79_spill] sm:$0xff] %v6331_v0  ;;  %v6343_v61 = vld [vmem:[#allocation6 + $0x28] sm:$0xff]  ;;  %v6349_v60 = vld [vmem:[#allocation6 + $0x30] sm:$0xff] }
  0x78   : > { %464 = vmatprep.mubr.f32.mxu0 %v9299_v58  ;;  %625 = vmatprep.mubr.f32.mxu1 %v9299_v58  ;;  %9303 = vst [vmem:[#allocation80_spill] sm:$0xff] %v6337_v62  ;;  %9304 = vst [vmem:[#allocation81_spill] sm:$0xff] %v6343_v61  ;;  %v6355_v57 = vld [vmem:[#allocation6 + $0x38] sm:$0xff]  ;;  %v6361_v56 = vld [vmem:[#allocation6 + $0x40] sm:$0xff] }
  0x79   : > { %9305 = vst [vmem:[#allocation82_spill] sm:$0xff] %v6349_v60  ;;  %9306 = vst [vmem:[#allocation83_spill] sm:$0xff] %v6355_v57  ;;  %v6367_v55 = vld [vmem:[#allocation6 + $0x48] sm:$0xff]  ;;  %v6373_v53 = vld [vmem:[#allocation6 + $0x50] sm:$0xff] }
  0x7a   : > { %9307 = vst [vmem:[#allocation84_spill] sm:$0xff] %v6361_v56  ;;  %9308 = vst [vmem:[#allocation85_spill] sm:$0xff] %v6367_v55  ;;  %v6379_v52 = vld [vmem:[#allocation6 + $0x58] sm:$0xff]  ;;  %v6385_v51 = vld [vmem:[#allocation6 + $0x60] sm:$0xff] }
  0x7b   : > { %465 = vmatmul.mubr.f32.gmra.mxu0 %v6319_v59  ;;  %626 = vmatmul.mubr.f32.gmra.mxu1 %v6319_v59  ;;  %9309 = vst [vmem:[#allocation86_spill] sm:$0xff] %v6373_v53  ;;  %9310 = vst [vmem:[#allocation87_spill] sm:$0xff] %v6379_v52  ;;  %v6391_v50 = vld [vmem:[#allocation6 + $0x68] sm:$0xff]  ;;  %v6397_v49 = vld [vmem:[#allocation6 + $0x70] sm:$0xff] }
  0x7c   : > { %470 = vmatprep.mubr.f32.mxu0 %v9299_v58  ;;  %631 = vmatprep.mubr.f32.mxu1 %v9299_v58  ;;  %9311 = vst [vmem:[#allocation88_spill] sm:$0xff] %v6385_v51  ;;  %9312 = vst [vmem:[#allocation89_spill] sm:$0xff] %v6391_v50  ;;  %v6403_v48 = vld [vmem:[#allocation6 + $0x78] sm:$0xff] }
  0x7d   : > { %9313 = vst [vmem:[#allocation90_spill] sm:$0xff] %v6397_v49  ;;  %9314 = vst [vmem:[#allocation91_spill] sm:$0xff] %v6403_v48 }
  0x7f   : > { %471 = vmatmul.mubr.f32.gmra.mxu0 %v6325_v63  ;;  %632 = vmatmul.mubr.f32.gmra.mxu1 %v6325_v63 }
  0x80   : > { %476 = vmatprep.mubr.f32.mxu0 %v9299_v58  ;;  %637 = vmatprep.mubr.f32.mxu1 %v9299_v58 }
  0x83   : > { %477 = vmatmul.mubr.f32.gmra.mxu0 %v6331_v0  ;;  %638 = vmatmul.mubr.f32.gmra.mxu1 %v6331_v0 }
  0x84   : > { %482 = vmatprep.mubr.f32.mxu0 %v9299_v58  ;;  %643 = vmatprep.mubr.f32.mxu1 %v9299_v58 }
  0x87   : > { %483 = vmatmul.mubr.f32.gmra.mxu0 %v6337_v62  ;;  %644 = vmatmul.mubr.f32.gmra.mxu1 %v6337_v62 }
  0x88   : > { %488 = vmatprep.mubr.f32.mxu0 %v9299_v58  ;;  %649 = vmatprep.mubr.f32.mxu1 %v9299_v58 }
  0x8b   : > { %489 = vmatmul.mubr.f32.gmra.mxu0 %v6343_v61  ;;  %650 = vmatmul.mubr.f32.gmra.mxu1 %v6343_v61 }
  0x8c   : > { %494 = vmatprep.mubr.f32.mxu0 %v9299_v58  ;;  %655 = vmatprep.mubr.f32.mxu1 %v9299_v58 }
  0x8f   : > { %495 = vmatmul.mubr.f32.gmra.mxu0 %v6349_v60  ;;  %656 = vmatmul.mubr.f32.gmra.mxu1 %v6349_v60 }
  0x90   : > { %500 = vmatprep.mubr.f32.mxu0 %v9299_v58  ;;  %661 = vmatprep.mubr.f32.mxu1 %v9299_v58 }
  0x93   : > { %501 = vmatmul.mubr.f32.gmra.mxu0 %v6355_v57  ;;  %662 = vmatmul.mubr.f32.gmra.mxu1 %v6355_v57 }
  0x94   : > { %506 = vmatprep.mubr.f32.mxu0 %v9299_v58  ;;  %667 = vmatprep.mubr.f32.mxu1 %v9299_v58 }
  0x97   : > { %507 = vmatmul.mubr.f32.gmra.mxu0 %v6361_v56  ;;  %668 = vmatmul.mubr.f32.gmra.mxu1 %v6361_v56 }
  0x98   : > { %512 = vmatprep.mubr.f32.mxu0 %v9299_v58  ;;  %673 = vmatprep.mubr.f32.mxu1 %v9299_v58 }
  0x9b   : > { %513 = vmatmul.mubr.f32.gmra.mxu0 %v6367_v55  ;;  %674 = vmatmul.mubr.f32.gmra.mxu1 %v6367_v55 }
  0x9c   : > { %518 = vmatprep.mubr.f32.mxu0 %v9299_v58  ;;  %679 = vmatprep.mubr.f32.mxu1 %v9299_v58 }
  0x9f   : > { %519 = vmatmul.mubr.f32.gmra.mxu0 %v6373_v53  ;;  %680 = vmatmul.mubr.f32.gmra.mxu1 %v6373_v53 }
  0xa0   : > { %524 = vmatprep.mubr.f32.mxu0 %v9299_v58  ;;  %685 = vmatprep.mubr.f32.mxu1 %v9299_v58 }
  0xa3   : > { %525 = vmatmul.mubr.f32.gmra.mxu0 %v6379_v52  ;;  %686 = vmatmul.mubr.f32.gmra.mxu1 %v6379_v52 }
  0xa4   : > { %530 = vmatprep.mubr.f32.mxu0 %v9299_v58  ;;  %691 = vmatprep.mubr.f32.mxu1 %v9299_v58 }
  0xa7   : > { %531 = vmatmul.mubr.f32.gmra.mxu0 %v6385_v51  ;;  %692 = vmatmul.mubr.f32.gmra.mxu1 %v6385_v51 }
  0xa8   : > { %536 = vmatprep.mubr.f32.mxu0 %v9299_v58  ;;  %697 = vmatprep.mubr.f32.mxu1 %v9299_v58 }
  0xab   : > { %537 = vmatmul.mubr.f32.gmra.mxu0 %v6391_v50  ;;  %698 = vmatmul.mubr.f32.gmra.mxu1 %v6391_v50 }
  0xac   : > { %542 = vmatprep.mubr.f32.mxu0 %v9299_v58  ;;  %703 = vmatprep.mubr.f32.mxu1 %v9299_v58 }
  0xaf   : > { %543 = vmatmul.mubr.f32.gmra.mxu0 %v6397_v49  ;;  %704 = vmatmul.mubr.f32.gmra.mxu1 %v6397_v49 }
  0xb0   : > { %548 = vmatprep.mubr.f32.mxu0 %v9299_v58  ;;  %709 = vmatprep.mubr.f32.mxu1 %v9299_v58 }
  0xb3   : > { %549 = vmatmul.mubr.f32.gmra.mxu0 %v6403_v48  ;;  %710 = vmatmul.mubr.f32.gmra.mxu1 %v6403_v48 }
  0xb4   : > { %860 = vmatprep.mubr.f32.mxu0 %v9299_v58  ;;  %1021 = vmatprep.mubr.f32.mxu1 %v9299_v58 }
 0x137   : > { %v6409_v50 = vpop.f32.mrf.mxu0  ;;  %v6411_v47 = vpop.f32.mrf.mxu1 }
 0x138   : > { %9315 = vst [vmem:[#allocation92_spill] sm:$0xff] %v6409_v50  ;;  %9316 = vst [vmem:[#allocation93_spill] sm:$0xff] %v6411_v47 }
 0x139   : > { %v6413_v46 = vpop.f32.mrf.mxu0  ;;  %v6415_v49 = vpop.f32.mrf.mxu1 }
 0x13a   : > { %9317 = vst [vmem:[#allocation94_spill] sm:$0xff] %v6413_v46  ;;  %9318 = vst [vmem:[#allocation95_spill] sm:$0xff] %v6415_v49 }
 0x13b   : > { %v6417_v45 = vpop.f32.mrf.mxu0  ;;  %v6419_v51 = vpop.f32.mrf.mxu1 }
 0x13c   : > { %9319 = vst [vmem:[#allocation96_spill] sm:$0xff] %v6417_v45  ;;  %9320 = vst [vmem:[#allocation97_spill] sm:$0xff] %v6419_v51 }
 0x13d   : > { %v6421_v44 = vpop.f32.mrf.mxu0  ;;  %v6423_v43 = vpop.f32.mrf.mxu1 }
 0x13e   : > { %9321 = vst [vmem:[#allocation98_spill] sm:$0xff] %v6421_v44  ;;  %9322 = vst [vmem:[#allocation99_spill] sm:$0xff] %v6423_v43 }
 0x13f   : > { %v6425_v48 = vpop.f32.mrf.mxu0  ;;  %v6427_v42 = vpop.f32.mrf.mxu1 }
 0x140   : > { %9323 = vst [vmem:[#allocation100_spill] sm:$0xff] %v6425_v48  ;;  %9324 = vst [vmem:[#allocation101_spill] sm:$0xff] %v6427_v42 }
 0x141   : > { %v6429_v41 = vpop.f32.mrf.mxu0  ;;  %v6431_v52 = vpop.f32.mrf.mxu1 }
 0x142   : > { %9325 = vst [vmem:[#allocation102_spill] sm:$0xff] %v6429_v41  ;;  %9326 = vst [vmem:[#allocation103_spill] sm:$0xff] %v6431_v52 }
 0x143   : > { %v6433_v40 = vpop.f32.mrf.mxu0  ;;  %v6435_v39 = vpop.f32.mrf.mxu1 }
 0x144   : > { %9327 = vst [vmem:[#allocation104_spill] sm:$0xff] %v6433_v40  ;;  %9328 = vst [vmem:[#allocation105_spill] sm:$0xff] %v6435_v39 }
 0x145   : > { %v6437_v38 = vpop.f32.mrf.mxu0  ;;  %v6439_v37 = vpop.f32.mrf.mxu1 }
 0x146   : > { %9329 = vst [vmem:[#allocation106_spill] sm:$0xff] %v6437_v38  ;;  %9330 = vst [vmem:[#allocation107_spill] sm:$0xff] %v6439_v37 }
 0x147   : > { %v6441_v53 = vpop.f32.mrf.mxu0  ;;  %v6443_v36 = vpop.f32.mrf.mxu1 }
 0x148   : > { %9331 = vst [vmem:[#allocation108_spill] sm:$0xff] %v6441_v53  ;;  %9332 = vst [vmem:[#allocation109_spill] sm:$0xff] %v6443_v36 }
 0x149   : > { %v6445_v35 = vpop.f32.mrf.mxu0  ;;  %v6447_v34 = vpop.f32.mrf.mxu1 }
 0x14a   : > { %9333 = vst [vmem:[#allocation110_spill] sm:$0xff] %v6445_v35  ;;  %9334 = vst [vmem:[#allocation111_spill] sm:$0xff] %v6447_v34 }
 0x14b   : > { %v6449_v33 = vpop.f32.mrf.mxu0  ;;  %v6451_v55 = vpop.f32.mrf.mxu1 }
 0x14c   : > { %9335 = vst [vmem:[#allocation112_spill] sm:$0xff] %v6449_v33  ;;  %9336 = vst [vmem:[#allocation113_spill] sm:$0xff] %v6451_v55 }
 0x14d   : > { %v6453_v32 = vpop.f32.mrf.mxu0  ;;  %v6455_v31 = vpop.f32.mrf.mxu1 }
 0x14e   : > { %9337 = vst [vmem:[#allocation114_spill] sm:$0xff] %v6453_v32  ;;  %9338 = vst [vmem:[#allocation115_spill] sm:$0xff] %v6455_v31 }
 0x14f   : > { %v6457_v30 = vpop.f32.mrf.mxu0  ;;  %v6459_v29 = vpop.f32.mrf.mxu1 }
 0x150   : > { %9339 = vst [vmem:[#allocation116_spill] sm:$0xff] %v6457_v30  ;;  %9340 = vst [vmem:[#allocation117_spill] sm:$0xff] %v6459_v29 }
 0x151   : > { %v6461_v56 = vpop.f32.mrf.mxu0  ;;  %v6463_v28 = vpop.f32.mrf.mxu1 }
 0x152   : > { %9341 = vst [vmem:[#allocation118_spill] sm:$0xff] %v6461_v56  ;;  %9342 = vst [vmem:[#allocation119_spill] sm:$0xff] %v6463_v28 }
 0x153   : > { %v6465_v27 = vpop.f32.mrf.mxu0  ;;  %v6467_v26 = vpop.f32.mrf.mxu1 }
 0x154   : > { %9343 = vst [vmem:[#allocation120_spill] sm:$0xff] %v6465_v27  ;;  %9344 = vst [vmem:[#allocation121_spill] sm:$0xff] %v6467_v26 }
 0x155   : > { %v6469_v25 = vpop.f32.mrf.mxu0  ;;  %v6471_v57 = vpop.f32.mrf.mxu1 }
 0x156   : > { %9345 = vst [vmem:[#allocation122_spill] sm:$0xff] %v6469_v25  ;;  %9346 = vst [vmem:[#allocation123_spill] sm:$0xff] %v6471_v57 }
 0x157   : > { %v6473_v24 = vpop.f32.mrf.mxu0  ;;  %v6475_v23 = vpop.f32.mrf.mxu1 }
 0x158   : > { %9347 = vst [vmem:[#allocation124_spill] sm:$0xff] %v6473_v24  ;;  %9348 = vst [vmem:[#allocation125_spill] sm:$0xff] %v6475_v23 }
 0x159   : > { %v6477_v22 = vpop.f32.mrf.mxu0  ;;  %v6479_v21 = vpop.f32.mrf.mxu1 }
 0x15a   : > { %9349 = vst [vmem:[#allocation126_spill] sm:$0xff] %v6477_v22  ;;  %9350 = vst [vmem:[#allocation127_spill] sm:$0xff] %v6479_v21 }
 0x15b   : > { %v6481_v60 = vpop.f32.mrf.mxu0  ;;  %v6483_v20 = vpop.f32.mrf.mxu1 }
 0x15c   : > { %9351 = vst [vmem:[#allocation128_spill] sm:$0xff] %v6481_v60  ;;  %9352 = vst [vmem:[#allocation129_spill] sm:$0xff] %v6483_v20 }
 0x15d   : > { %v6485_v19 = vpop.f32.mrf.mxu0  ;;  %v6487_v18 = vpop.f32.mrf.mxu1 }
 0x15e   : > { %9353 = vst [vmem:[#allocation130_spill] sm:$0xff] %v6485_v19  ;;  %9354 = vst [vmem:[#allocation131_spill] sm:$0xff] %v6487_v18 }
 0x15f   : > { %v6489_v17 = vpop.f32.mrf.mxu0  ;;  %v6491_v61 = vpop.f32.mrf.mxu1 }
 0x160   : > { %9355 = vst [vmem:[#allocation132_spill] sm:$0xff] %v6489_v17  ;;  %9356 = vst [vmem:[#allocation133_spill] sm:$0xff] %v6491_v61 }
 0x161   : > { %v6493_v16 = vpop.f32.mrf.mxu0  ;;  %v6495_v15 = vpop.f32.mrf.mxu1 }
 0x162   : > { %9357 = vst [vmem:[#allocation134_spill] sm:$0xff] %v6493_v16  ;;  %9358 = vst [vmem:[#allocation135_spill] sm:$0xff] %v6495_v15 }
 0x163   : > { %v6497_v14 = vpop.f32.mrf.mxu0  ;;  %v6499_v13 = vpop.f32.mrf.mxu1 }
 0x164   : > { %9359 = vst [vmem:[#allocation136_spill] sm:$0xff] %v6497_v14  ;;  %9360 = vst [vmem:[#allocation137_spill] sm:$0xff] %v6499_v13 }
 0x165   : > { %v6501_v62 = vpop.f32.mrf.mxu0  ;;  %v6503_v12 = vpop.f32.mrf.mxu1 }
 0x166   : > { %9361 = vst [vmem:[#allocation138_spill] sm:$0xff] %v6501_v62  ;;  %9362 = vst [vmem:[#allocation139_spill] sm:$0xff] %v6503_v12 }
 0x167   : > { %v6505_v11 = vpop.f32.mrf.mxu0  ;;  %v6507_v10 = vpop.f32.mrf.mxu1 }
 0x168   : > { %9363 = vst [vmem:[#allocation140_spill] sm:$0xff] %v6505_v11  ;;  %9364 = vst [vmem:[#allocation141_spill] sm:$0xff] %v6507_v10 }
 0x169   : > { %v6509_v9 = vpop.f32.mrf.mxu0  ;;  %v6511_v0 = vpop.f32.mrf.mxu1 }
 0x16a   : > { %9365 = vst [vmem:[#allocation142_spill] sm:$0xff] %v6509_v9  ;;  %9366 = vst [vmem:[#allocation143_spill] sm:$0xff] %v6511_v0 }
 0x16b   : > { %v6513_v8 = vpop.f32.mrf.mxu0  ;;  %v6515_v7 = vpop.f32.mrf.mxu1 }
 0x16c   : > { %9367 = vst [vmem:[#allocation144_spill] sm:$0xff] %v6513_v8  ;;  %9368 = vst [vmem:[#allocation145_spill] sm:$0xff] %v6515_v7 }
 0x16d   : > { %v6517_v6 = vpop.f32.mrf.mxu0  ;;  %v6519_v5 = vpop.f32.mrf.mxu1 }
 0x16e   : > { %9369 = vst [vmem:[#allocation146_spill] sm:$0xff] %v6517_v6  ;;  %9370 = vst [vmem:[#allocation147_spill] sm:$0xff] %v6519_v5 }
 0x16f   : > { %v6521_v63 = vpop.f32.mrf.mxu0  ;;  %v6523_v4 = vpop.f32.mrf.mxu1 }
 0x170   : > { %9371 = vst [vmem:[#allocation148_spill] sm:$0xff] %v6521_v63  ;;  %9372 = vst [vmem:[#allocation149_spill] sm:$0xff] %v6523_v4 }
 0x171   : > { %v6525_v3 = vpop.f32.mrf.mxu0  ;;  %v6527_v2 = vpop.f32.mrf.mxu1 }
 0x172   : > { %9373 = vst [vmem:[#allocation150_spill] sm:$0xff] %v6525_v3  ;;  %9374 = vst [vmem:[#allocation151_spill] sm:$0xff] %v6527_v2 }
 0x173   : > { %v6529_v1 = vpop.f32.mrf.mxu0  ;;  %v6531_v58 = vpop.f32.mrf.mxu1 }
 0x174   : > { %9375 = vst [vmem:[#allocation152_spill] sm:$0xff] %v6529_v1  ;;  %9376 = vst [vmem:[#allocation153_spill] sm:$0xff] %v6531_v58 }
 0x175   : > { %v6533_v59 = vpop.f32.mrf.mxu0  ;;  %v6535_v47 = vpop.f32.mrf.mxu1 }
 0x176   : > { %9377 = vst [vmem:[#allocation154_spill] sm:$0xff] %v6533_v59  ;;  %9378 = vst [vmem:[#allocation155_spill] sm:$0xff] %v6535_v47  ;;  %796 = vmatprep.subr.mxu0 %v6533_v59  ;;  %957 = vmatprep.subr.mxu1 %v6535_v47  ;;  %v780_v47 = vmul.f32 2.0, %v6309_v54 }
 0x177   : > { %797 = vmatpush1.msra.mxu0 %v6529_v1  ;;  %958 = vmatpush1.msra.mxu1 %v6531_v58  ;;  %v9379_v58 = vld [vmem:[#allocation93_spill] sm:$0xff] }
 0x178   : > { %798 = vmatprep.subr.mxu0 %v6525_v3  ;;  %959 = vmatprep.subr.mxu1 %v6527_v2  ;;  %v9380_v2 = vld [vmem:[#allocation77_spill] sm:$0xff] }
 0x179   : > { %799 = vmatpush1.msra.mxu0 %v6521_v63  ;;  %960 = vmatpush1.msra.mxu1 %v6523_v4  ;;  %v781_v54 = vmul.f32 2.0, %v9380_v2  ;;  %v9381_v4 = vmov 0.0   ;;  %v9387_v2 = vld [vmem:[#allocation17_spill] sm:$0xff] }
 0x17a   : > { %800 = vmatprep.subr.mxu0 %v6517_v6  ;;  %961 = vmatprep.subr.mxu1 %v6519_v5  ;;  %v9382_v5 = vld [vmem:[#allocation13_spill] sm:$0xff] }
 0x17b   : > { %801 = vmatpush1.msra.mxu0 %v6513_v8  ;;  %962 = vmatpush1.msra.mxu1 %v6515_v7  ;;  %v9383_v7 = vld [vmem:[#allocation14_spill] sm:$0xff] }
 0x17c   : > { %802 = vmatprep.subr.mxu0 %v6509_v9  ;;  %963 = vmatprep.subr.mxu1 %v6511_v0  ;;  %v9384_v0 = vld [vmem:[#allocation15_spill] sm:$0xff] }
 0x17d   : > { %803 = vmatpush1.msra.mxu0 %v6505_v11  ;;  %964 = vmatpush1.msra.mxu1 %v6507_v10  ;;  %v9385_v10 = vld [vmem:[#allocation16_spill] sm:$0xff] }
 0x17e   : > { %804 = vmatprep.subr.mxu0 %v6501_v62  ;;  %965 = vmatprep.subr.mxu1 %v6503_v12  ;;  %v9386_v12 = vld [vmem:[#allocation78_spill] sm:$0xff] }
 0x17f   : > { %805 = vmatpush1.msra.mxu0 %v6497_v14  ;;  %966 = vmatpush1.msra.mxu1 %v6499_v13  ;;  %v782_v13 = vmul.f32 2.0, %v9386_v12  ;;  %v9393_v12 = vld [vmem:[#allocation22_spill] sm:$0xff] }
 0x180   : > { %806 = vmatprep.subr.mxu0 %v6493_v16  ;;  %967 = vmatprep.subr.mxu1 %v6495_v15  ;;  %v9389_v15 = vld [vmem:[#allocation19_spill] sm:$0xff] }
 0x181   : > { %807 = vmatpush1.msra.mxu0 %v6489_v17  ;;  %968 = vmatpush1.msra.mxu1 %v6491_v61  ;;  %v6773_v61 = vld [vmem:[#allocation6 + $0xd0] sm:$0xff] }
 0x182   : > { %808 = vmatprep.subr.mxu0 %v6485_v19  ;;  %969 = vmatprep.subr.mxu1 %v6487_v18  ;;  %v6779_v18 = vld [vmem:[#allocation6 + $0xd8] sm:$0xff] }
 0x183   : > { %809 = vmatpush1.msra.mxu0 %v6481_v60  ;;  %970 = vmatpush1.msra.mxu1 %v6483_v20  ;;  %v6785_v20 = vld [vmem:[#allocation6 + $0xe0] sm:$0xff] }
 0x184   : > { %810 = vmatprep.subr.mxu0 %v6477_v22  ;;  %971 = vmatprep.subr.mxu1 %v6479_v21  ;;  %v6791_v21 = vld [vmem:[#allocation6 + $0xe8] sm:$0xff] }
 0x185   : > { %811 = vmatpush1.msra.mxu0 %v6473_v24  ;;  %972 = vmatpush1.msra.mxu1 %v6475_v23  ;;  %9472 = vst [vmem:[#allocation22_spill] sm:$0xff] %v6791_v21  ;;  %v6797_v23 = vld [vmem:[#allocation6 + $0xf0] sm:$0xff] }
 0x186   : > { %812 = vmatprep.subr.mxu0 %v6469_v25  ;;  %973 = vmatprep.subr.mxu1 %v6471_v57  ;;  %v6803_v57 = vld [vmem:[#allocation6 + $0xf8] sm:$0xff] }
 0x187   : > { %813 = vmatpush1.msra.mxu0 %v6465_v27  ;;  %974 = vmatpush1.msra.mxu1 %v6467_v26 }
 0x188   : > { %814 = vmatprep.subr.mxu0 %v6461_v56  ;;  %975 = vmatprep.subr.mxu1 %v6463_v28 }
 0x189   : > { %815 = vmatpush1.msra.mxu0 %v6457_v30  ;;  %976 = vmatpush1.msra.mxu1 %v6459_v29 }
 0x18a   : > { %816 = vmatprep.subr.mxu0 %v6453_v32  ;;  %977 = vmatprep.subr.mxu1 %v6455_v31 }
 0x18b   : > { %817 = vmatpush1.msra.mxu0 %v6449_v33  ;;  %978 = vmatpush1.msra.mxu1 %v6451_v55 }
 0x18c   : > { %818 = vmatprep.subr.mxu0 %v6445_v35  ;;  %979 = vmatprep.subr.mxu1 %v6447_v34 }
 0x18d   : > { %819 = vmatpush1.msra.mxu0 %v6441_v53  ;;  %980 = vmatpush1.msra.mxu1 %v6443_v36 }
 0x18e   : > { %820 = vmatprep.subr.mxu0 %v6437_v38  ;;  %981 = vmatprep.subr.mxu1 %v6439_v37 }
 0x18f   : > { %821 = vmatpush1.msra.mxu0 %v6433_v40  ;;  %982 = vmatpush1.msra.mxu1 %v6435_v39 }
 0x190   : > { %822 = vmatprep.subr.mxu0 %v6429_v41  ;;  %983 = vmatprep.subr.mxu1 %v6431_v52 }
 0x191   : > { %823 = vmatpush1.msra.mxu0 %v6425_v48  ;;  %984 = vmatpush1.msra.mxu1 %v6427_v42 }
 0x192   : > { %824 = vmatprep.subr.mxu0 %v6421_v44  ;;  %985 = vmatprep.subr.mxu1 %v6423_v43 }
 0x193   : > { %825 = vmatpush1.msra.mxu0 %v6417_v45  ;;  %986 = vmatpush1.msra.mxu1 %v6419_v51 }
 0x194   : > { %826 = vmatprep.subr.mxu0 %v6413_v46  ;;  %987 = vmatprep.subr.mxu1 %v6415_v49 }
 0x195   : > { %827 = vmatpush1.msra.mxu0 %v6409_v50  ;;  %988 = vmatpush1.msra.mxu1 %v9379_v58 }
 0x196   : > { %861 = vmatmul.mubr.f32.vlgmr.msra.gmra.mxu0 %v780_v47  ;;  %1022 = vmatmul.mubr.f32.vlgmr.msra.gmra.mxu1 %v780_v47  ;;  %v9388_v47 = vld [vmem:[#allocation18_spill] sm:$0xff] }
 0x197   : > { %866 = vmatprep.mubr.f32.mxu0 %v9381_v4  ;;  %1027 = vmatprep.mubr.f32.mxu1 %v9381_v4 }
 0x198   : > { %1263 = vmatprep.subr.mxu0 %v9382_v5  ;;  %1424 = vmatprep.subr.mxu1 %v9383_v7  ;;  %v9390_v5 = vld [vmem:[#allocation20_spill] sm:$0xff] }
 0x199   : > { %1264 = vmatpush1.msra.mxu0 %v9384_v0  ;;  %1425 = vmatpush1.msra.mxu1 %v9385_v10  ;;  %v9391_v0 = vld [vmem:[#allocation79_spill] sm:$0xff]  ;;  %v9392_v10 = vld [vmem:[#allocation21_spill] sm:$0xff]  ;;  %9469 = vst [vmem:[#allocation20_spill] sm:$0xff] %v6773_v61 }
 0x19a   : > { %867 = vmatmul.mubr.f32.gmra.mxu0 %v781_v54  ;;  %1028 = vmatmul.mubr.f32.gmra.mxu1 %v781_v54  ;;  %v783_v7 = vmul.f32 2.0, %v9391_v0  ;;  %v9394_v54 = vld [vmem:[#allocation23_spill] sm:$0xff]  ;;  %9470 = vst [vmem:[#allocation79_spill] sm:$0xff] %v6779_v18  ;;  %9471 = vst [vmem:[#allocation21_spill] sm:$0xff] %v6785_v20 }
 0x19b   : > { %872 = vmatprep.mubr.f32.mxu0 %v9381_v4  ;;  %1033 = vmatprep.mubr.f32.mxu1 %v9381_v4  ;;  %v9399_v0 = vld [vmem:[#allocation27_spill] sm:$0xff]  ;;  %9473 = vst [vmem:[#allocation23_spill] sm:$0xff] %v6797_v23 }
 0x19c   : > { %1265 = vmatprep.subr.mxu0 %v9387_v2  ;;  %1426 = vmatprep.subr.mxu1 %v9388_v47  ;;  %v9395_v2 = vld [vmem:[#allocation24_spill] sm:$0xff] }
 0x19d   : > { %1266 = vmatpush1.msra.mxu0 %v9389_v15  ;;  %1427 = vmatpush1.msra.mxu1 %v9390_v5  ;;  %v9396_v15 = vld [vmem:[#allocation80_spill] sm:$0xff]  ;;  %v9398_v5 = vld [vmem:[#allocation26_spill] sm:$0xff]  ;;  %9474 = vst [vmem:[#allocation24_spill] sm:$0xff] %v6803_v57 }
 0x19e   : > { %873 = vmatmul.mubr.f32.gmra.mxu0 %v782_v13  ;;  %1034 = vmatmul.mubr.f32.gmra.mxu1 %v782_v13  ;;  %v784_v47 = vmul.f32 2.0, %v9396_v15  ;;  %v9397_v13 = vld [vmem:[#allocation25_spill] sm:$0xff]  ;;  %v9404_v15 = vld [vmem:[#allocation31_spill] sm:$0xff] }
 0x19f   : > { %878 = vmatprep.mubr.f32.mxu0 %v9381_v4  ;;  %1039 = vmatprep.mubr.f32.mxu1 %v9381_v4 }
 0x1a0   : > { %1267 = vmatprep.subr.mxu0 %v9392_v10  ;;  %1428 = vmatprep.subr.mxu1 %v9393_v12  ;;  %v9400_v10 = vld [vmem:[#allocation28_spill] sm:$0xff]  ;;  %v9401_v12 = vld [vmem:[#allocation81_spill] sm:$0xff] }
 0x1a1   : > { %1268 = vmatpush1.msra.mxu0 %v9394_v54  ;;  %1429 = vmatpush1.msra.mxu1 %v9395_v2  ;;  %v785_v54 = vmul.f32 2.0, %v9401_v12  ;;  %v9403_v2 = vld [vmem:[#allocation30_spill] sm:$0xff]  ;;  %v9409_v12 = vld [vmem:[#allocation35_spill] sm:$0xff] }
 0x1a2   : > { %879 = vmatmul.mubr.f32.gmra.mxu0 %v783_v7  ;;  %1040 = vmatmul.mubr.f32.gmra.mxu1 %v783_v7  ;;  %v9402_v7 = vld [vmem:[#allocation29_spill] sm:$0xff] }
 0x1a3   : > { %884 = vmatprep.mubr.f32.mxu0 %v9381_v4  ;;  %1045 = vmatprep.mubr.f32.mxu1 %v9381_v4 }
 0x1a4   : > { %1269 = vmatprep.subr.mxu0 %v9397_v13  ;;  %1430 = vmatprep.subr.mxu1 %v9398_v5  ;;  %v9405_v13 = vld [vmem:[#allocation32_spill] sm:$0xff]  ;;  %v9406_v5 = vld [vmem:[#allocation82_spill] sm:$0xff] }
 0x1a5   : > { %1270 = vmatpush1.msra.mxu0 %v9399_v0  ;;  %1431 = vmatpush1.msra.mxu1 %v9400_v10  ;;  %v786_v0 = vmul.f32 2.0, %v9406_v5  ;;  %v9408_v10 = vld [vmem:[#allocation34_spill] sm:$0xff]  ;;  %v9414_v5 = vld [vmem:[#allocation39_spill] sm:$0xff] }
 0x1a6   : > { %885 = vmatmul.mubr.f32.gmra.mxu0 %v784_v47  ;;  %1046 = vmatmul.mubr.f32.gmra.mxu1 %v784_v47  ;;  %v9407_v47 = vld [vmem:[#allocation33_spill] sm:$0xff] }
 0x1a7   : > { %890 = vmatprep.mubr.f32.mxu0 %v9381_v4  ;;  %1051 = vmatprep.mubr.f32.mxu1 %v9381_v4 }
 0x1a8   : > { %1271 = vmatprep.subr.mxu0 %v9402_v7  ;;  %1432 = vmatprep.subr.mxu1 %v9403_v2  ;;  %v9410_v7 = vld [vmem:[#allocation36_spill] sm:$0xff]  ;;  %v9411_v2 = vld [vmem:[#allocation83_spill] sm:$0xff] }
 0x1a9   : > { %1272 = vmatpush1.msra.mxu0 %v9404_v15  ;;  %1433 = vmatpush1.msra.mxu1 %v9405_v13  ;;  %v787_v15 = vmul.f32 2.0, %v9411_v2  ;;  %v9413_v13 = vld [vmem:[#allocation38_spill] sm:$0xff]  ;;  %v9419_v2 = vld [vmem:[#allocation43_spill] sm:$0xff] }
 0x1aa   : > { %891 = vmatmul.mubr.f32.gmra.mxu0 %v785_v54  ;;  %1052 = vmatmul.mubr.f32.gmra.mxu1 %v785_v54  ;;  %v9412_v54 = vld [vmem:[#allocation37_spill] sm:$0xff] }
 0x1ab   : > { %896 = vmatprep.mubr.f32.mxu0 %v9381_v4  ;;  %1057 = vmatprep.mubr.f32.mxu1 %v9381_v4 }
 0x1ac   : > { %1273 = vmatprep.subr.mxu0 %v9407_v47  ;;  %1434 = vmatprep.subr.mxu1 %v9408_v10  ;;  %v9415_v47 = vld [vmem:[#allocation40_spill] sm:$0xff] }
 0x1ad   : > { %1274 = vmatpush1.msra.mxu0 %v9409_v12  ;;  %1435 = vmatpush1.msra.mxu1 %v9410_v7  ;;  %v9416_v10 = vld [vmem:[#allocation84_spill] sm:$0xff]  ;;  %v9418_v7 = vld [vmem:[#allocation42_spill] sm:$0xff] }
 0x1ae   : > { %897 = vmatmul.mubr.f32.gmra.mxu0 %v786_v0  ;;  %1058 = vmatmul.mubr.f32.gmra.mxu1 %v786_v0  ;;  %v788_v12 = vmul.f32 2.0, %v9416_v10  ;;  %v9417_v0 = vld [vmem:[#allocation41_spill] sm:$0xff]  ;;  %v9424_v10 = vld [vmem:[#allocation47_spill] sm:$0xff] }
 0x1af   : > { %902 = vmatprep.mubr.f32.mxu0 %v9381_v4  ;;  %1063 = vmatprep.mubr.f32.mxu1 %v9381_v4 }
 0x1b0   : > { %1275 = vmatprep.subr.mxu0 %v9412_v54  ;;  %1436 = vmatprep.subr.mxu1 %v9413_v13  ;;  %v9420_v54 = vld [vmem:[#allocation44_spill] sm:$0xff]  ;;  %v9421_v13 = vld [vmem:[#allocation85_spill] sm:$0xff] }
 0x1b1   : > { %1276 = vmatpush1.msra.mxu0 %v9414_v5  ;;  %1437 = vmatpush1.msra.mxu1 %v9415_v47  ;;  %v789_v5 = vmul.f32 2.0, %v9421_v13  ;;  %v9423_v47 = vld [vmem:[#allocation46_spill] sm:$0xff]  ;;  %v9429_v13 = vld [vmem:[#allocation51_spill] sm:$0xff] }
 0x1b2   : > { %903 = vmatmul.mubr.f32.gmra.mxu0 %v787_v15  ;;  %1064 = vmatmul.mubr.f32.gmra.mxu1 %v787_v15  ;;  %v9422_v15 = vld [vmem:[#allocation45_spill] sm:$0xff] }
 0x1b3   : > { %908 = vmatprep.mubr.f32.mxu0 %v9381_v4  ;;  %1069 = vmatprep.mubr.f32.mxu1 %v9381_v4 }
 0x1b4   : > { %1277 = vmatprep.subr.mxu0 %v9417_v0  ;;  %1438 = vmatprep.subr.mxu1 %v9418_v7  ;;  %v9425_v0 = vld [vmem:[#allocation48_spill] sm:$0xff]  ;;  %v9426_v7 = vld [vmem:[#allocation86_spill] sm:$0xff] }
 0x1b5   : > { %1278 = vmatpush1.msra.mxu0 %v9419_v2  ;;  %1439 = vmatpush1.msra.mxu1 %v9420_v54  ;;  %v790_v2 = vmul.f32 2.0, %v9426_v7  ;;  %v9428_v54 = vld [vmem:[#allocation50_spill] sm:$0xff]  ;;  %v9434_v7 = vld [vmem:[#allocation55_spill] sm:$0xff] }
 0x1b6   : > { %909 = vmatmul.mubr.f32.gmra.mxu0 %v788_v12  ;;  %1070 = vmatmul.mubr.f32.gmra.mxu1 %v788_v12  ;;  %v9427_v12 = vld [vmem:[#allocation49_spill] sm:$0xff] }
 0x1b7   : > { %914 = vmatprep.mubr.f32.mxu0 %v9381_v4  ;;  %1075 = vmatprep.mubr.f32.mxu1 %v9381_v4 }
 0x1b8   : > { %1279 = vmatprep.subr.mxu0 %v9422_v15  ;;  %1440 = vmatprep.subr.mxu1 %v9423_v47  ;;  %v9430_v15 = vld [vmem:[#allocation52_spill] sm:$0xff]  ;;  %v9431_v47 = vld [vmem:[#allocation87_spill] sm:$0xff] }
 0x1b9   : > { %1280 = vmatpush1.msra.mxu0 %v9424_v10  ;;  %1441 = vmatpush1.msra.mxu1 %v9425_v0  ;;  %v791_v10 = vmul.f32 2.0, %v9431_v47  ;;  %v9433_v0 = vld [vmem:[#allocation54_spill] sm:$0xff]  ;;  %v9439_v47 = vld [vmem:[#allocation59_spill] sm:$0xff] }
 0x1ba   : > { %915 = vmatmul.mubr.f32.gmra.mxu0 %v789_v5  ;;  %1076 = vmatmul.mubr.f32.gmra.mxu1 %v789_v5  ;;  %v9432_v5 = vld [vmem:[#allocation53_spill] sm:$0xff] }
 0x1bb   : > { %920 = vmatprep.mubr.f32.mxu0 %v9381_v4  ;;  %1081 = vmatprep.mubr.f32.mxu1 %v9381_v4 }
 0x1bc   : > { %1281 = vmatprep.subr.mxu0 %v9427_v12  ;;  %1442 = vmatprep.subr.mxu1 %v9428_v54  ;;  %v9435_v12 = vld [vmem:[#allocation56_spill] sm:$0xff] }
 0x1bd   : > { %1282 = vmatpush1.msra.mxu0 %v9429_v13  ;;  %1443 = vmatpush1.msra.mxu1 %v9430_v15  ;;  %v9436_v54 = vld [vmem:[#allocation88_spill] sm:$0xff]  ;;  %v9438_v15 = vld [vmem:[#allocation58_spill] sm:$0xff] }
 0x1be   : > { %921 = vmatmul.mubr.f32.gmra.mxu0 %v790_v2  ;;  %1082 = vmatmul.mubr.f32.gmra.mxu1 %v790_v2  ;;  %v792_v13 = vmul.f32 2.0, %v9436_v54  ;;  %v9437_v2 = vld [vmem:[#allocation57_spill] sm:$0xff]  ;;  %v9444_v54 = vld [vmem:[#allocation63_spill] sm:$0xff] }
 0x1bf   : > { %926 = vmatprep.mubr.f32.mxu0 %v9381_v4  ;;  %1087 = vmatprep.mubr.f32.mxu1 %v9381_v4 }
 0x1c0   : > { %1283 = vmatprep.subr.mxu0 %v9432_v5  ;;  %1444 = vmatprep.subr.mxu1 %v9433_v0  ;;  %v9440_v5 = vld [vmem:[#allocation60_spill] sm:$0xff]  ;;  %v9441_v0 = vld [vmem:[#allocation89_spill] sm:$0xff] }
 0x1c1   : > { %1284 = vmatpush1.msra.mxu0 %v9434_v7  ;;  %1445 = vmatpush1.msra.mxu1 %v9435_v12  ;;  %v793_v7 = vmul.f32 2.0, %v9441_v0  ;;  %v9443_v12 = vld [vmem:[#allocation62_spill] sm:$0xff]  ;;  %v9449_v0 = vld [vmem:[#allocation67_spill] sm:$0xff] }
 0x1c2   : > { %927 = vmatmul.mubr.f32.gmra.mxu0 %v791_v10  ;;  %1088 = vmatmul.mubr.f32.gmra.mxu1 %v791_v10  ;;  %v9442_v10 = vld [vmem:[#allocation61_spill] sm:$0xff] }
 0x1c3   : > { %932 = vmatprep.mubr.f32.mxu0 %v9381_v4  ;;  %1093 = vmatprep.mubr.f32.mxu1 %v9381_v4 }
 0x1c4   : > { %1285 = vmatprep.subr.mxu0 %v9437_v2  ;;  %1446 = vmatprep.subr.mxu1 %v9438_v15  ;;  %v9445_v2 = vld [vmem:[#allocation64_spill] sm:$0xff]  ;;  %v9446_v15 = vld [vmem:[#allocation90_spill] sm:$0xff] }
 0x1c5   : > { %1286 = vmatpush1.msra.mxu0 %v9439_v47  ;;  %1447 = vmatpush1.msra.mxu1 %v9440_v5  ;;  %v794_v47 = vmul.f32 2.0, %v9446_v15  ;;  %v9448_v5 = vld [vmem:[#allocation66_spill] sm:$0xff]  ;;  %v9454_v15 = vld [vmem:[#allocation71_spill] sm:$0xff] }
 0x1c6   : > { %933 = vmatmul.mubr.f32.gmra.mxu0 %v792_v13  ;;  %1094 = vmatmul.mubr.f32.gmra.mxu1 %v792_v13  ;;  %v9447_v13 = vld [vmem:[#allocation65_spill] sm:$0xff] }
 0x1c7   : > { %938 = vmatprep.mubr.f32.mxu0 %v9381_v4  ;;  %1099 = vmatprep.mubr.f32.mxu1 %v9381_v4 }
 0x1c8   : > { %1287 = vmatprep.subr.mxu0 %v9442_v10  ;;  %1448 = vmatprep.subr.mxu1 %v9443_v12  ;;  %v9450_v10 = vld [vmem:[#allocation68_spill] sm:$0xff]  ;;  %v9451_v12 = vld [vmem:[#allocation91_spill] sm:$0xff] }
 0x1c9   : > { %1288 = vmatpush1.msra.mxu0 %v9444_v54  ;;  %1449 = vmatpush1.msra.mxu1 %v9445_v2  ;;  %v795_v54 = vmul.f32 2.0, %v9451_v12  ;;  %v9453_v2 = vld [vmem:[#allocation70_spill] sm:$0xff]  ;;  %v9459_v12 = vld [vmem:[#allocation76_spill] sm:$0xff] }
 0x1ca   : > { %939 = vmatmul.mubr.f32.gmra.mxu0 %v793_v7  ;;  %1100 = vmatmul.mubr.f32.gmra.mxu1 %v793_v7  ;;  %v9452_v7 = vld [vmem:[#allocation69_spill] sm:$0xff] }
 0x1cb   : > { %944 = vmatprep.mubr.f32.mxu0 %v9381_v4  ;;  %1105 = vmatprep.mubr.f32.mxu1 %v9381_v4 }
 0x1cc   : > { %1289 = vmatprep.subr.mxu0 %v9447_v13  ;;  %1450 = vmatprep.subr.mxu1 %v9448_v5  ;;  %v9455_v13 = vld [vmem:[#allocation72_spill] sm:$0xff]  ;;  %v9456_v5 = vld [vmem:[#allocation73_spill] sm:$0xff] }
 0x1cd   : > { %1290 = vmatpush1.msra.mxu0 %v9449_v0  ;;  %1451 = vmatpush1.msra.mxu1 %v9450_v10  ;;  %v9457_v0 = vld [vmem:[#allocation74_spill] sm:$0xff]  ;;  %v9458_v10 = vld [vmem:[#allocation75_spill] sm:$0xff] }
 0x1ce   : > { %945 = vmatmul.mubr.f32.gmra.mxu0 %v794_v47  ;;  %1106 = vmatmul.mubr.f32.gmra.mxu1 %v794_v47  ;;  %v6709_v47 = vld [vmem:[#allocation6 + $0x80] sm:$0xff] }
 0x1cf   : > { %950 = vmatprep.mubr.f32.mxu0 %v9381_v4  ;;  %1111 = vmatprep.mubr.f32.mxu1 %v9381_v4 }
 0x1d0   : > { %1291 = vmatprep.subr.mxu0 %v9452_v7  ;;  %1452 = vmatprep.subr.mxu1 %v9453_v2  ;;  %v6725_v7 = vld [vmem:[#allocation6 + $0x90] sm:$0xff]  ;;  %v6731_v2 = vld [vmem:[#allocation6 + $0x98] sm:$0xff] }
 0x1d1   : > { %1292 = vmatpush1.msra.mxu0 %v9454_v15  ;;  %1453 = vmatpush1.msra.mxu1 %v9455_v13  ;;  %9461 = vst [vmem:[#allocation13_spill] sm:$0xff] %v6725_v7  ;;  %9462 = vst [vmem:[#allocation14_spill] sm:$0xff] %v6731_v2  ;;  %v6737_v15 = vld [vmem:[#allocation6 + $0xa0] sm:$0xff]  ;;  %v6743_v13 = vld [vmem:[#allocation6 + $0xa8] sm:$0xff] }
 0x1d2   : > { %951 = vmatmul.mubr.f32.gmra.mxu0 %v795_v54  ;;  %1112 = vmatmul.mubr.f32.gmra.mxu1 %v795_v54  ;;  %v6719_v54 = vld [vmem:[#allocation6 + $0x88] sm:$0xff]  ;;  %9463 = vst [vmem:[#allocation15_spill] sm:$0xff] %v6737_v15  ;;  %9464 = vst [vmem:[#allocation16_spill] sm:$0xff] %v6743_v13 }
 0x1d3   : > { %1293 = vmatprep.subr.mxu0 %v9456_v5  ;;  %1454 = vmatprep.subr.mxu1 %v9457_v0  ;;  %9460 = vst [vmem:[#allocation77_spill] sm:$0xff] %v6719_v54  ;;  %v6749_v5 = vld [vmem:[#allocation6 + $0xb0] sm:$0xff]  ;;  %v6755_v0 = vld [vmem:[#allocation6 + $0xb8] sm:$0xff] }
 0x1d4   : > { %1294 = vmatpush1.msra.mxu0 %v9458_v10  ;;  %1327 = vmatprep.mubr.f32.mxu0 %v9381_v4  ;;  %9465 = vst [vmem:[#allocation78_spill] sm:$0xff] %v6749_v5  ;;  %9466 = vst [vmem:[#allocation17_spill] sm:$0xff] %v6755_v0  ;;  %v6761_v10 = vld [vmem:[#allocation6 + $0xc0] sm:$0xff] }
 0x1d5   : > { %1455 = vmatpush1.msra.mxu1 %v9459_v12  ;;  %1488 = vmatprep.mubr.f32.mxu1 %v9381_v4  ;;  %9467 = vst [vmem:[#allocation18_spill] sm:$0xff] %v6761_v10  ;;  %v6767_v12 = vld [vmem:[#allocation6 + $0xc8] sm:$0xff] }
 0x1d6   : > { %1328 = vmatmul.mubr.f32.vlgmr.msra.gmra.mxu0 %v6709_v47  ;;  %1489 = vmatmul.mubr.f32.vlgmr.msra.gmra.mxu1 %v6709_v47  ;;  %9468 = vst [vmem:[#allocation19_spill] sm:$0xff] %v6767_v12 }
 0x1d7   : > { %1333 = vmatprep.mubr.f32.mxu0 %v9381_v4  ;;  %1494 = vmatprep.mubr.f32.mxu1 %v9381_v4 }
 0x1da   : > { %1334 = vmatmul.mubr.f32.gmra.mxu0 %v6719_v54  ;;  %1495 = vmatmul.mubr.f32.gmra.mxu1 %v6719_v54 }
 0x1db   : > { %1339 = vmatprep.mubr.f32.mxu0 %v9381_v4  ;;  %1500 = vmatprep.mubr.f32.mxu1 %v9381_v4 }
 0x1de   : > { %1340 = vmatmul.mubr.f32.gmra.mxu0 %v6725_v7  ;;  %1501 = vmatmul.mubr.f32.gmra.mxu1 %v6725_v7 }
 0x1df   : > { %1345 = vmatprep.mubr.f32.mxu0 %v9381_v4  ;;  %1506 = vmatprep.mubr.f32.mxu1 %v9381_v4 }
 0x1e2   : > { %1346 = vmatmul.mubr.f32.gmra.mxu0 %v6731_v2  ;;  %1507 = vmatmul.mubr.f32.gmra.mxu1 %v6731_v2 }
 0x1e3   : > { %1351 = vmatprep.mubr.f32.mxu0 %v9381_v4  ;;  %1512 = vmatprep.mubr.f32.mxu1 %v9381_v4 }
 0x1e6   : > { %1352 = vmatmul.mubr.f32.gmra.mxu0 %v6737_v15  ;;  %1513 = vmatmul.mubr.f32.gmra.mxu1 %v6737_v15 }
 0x1e7   : > { %1357 = vmatprep.mubr.f32.mxu0 %v9381_v4  ;;  %1518 = vmatprep.mubr.f32.mxu1 %v9381_v4 }
 0x1ea   : > { %1358 = vmatmul.mubr.f32.gmra.mxu0 %v6743_v13  ;;  %1519 = vmatmul.mubr.f32.gmra.mxu1 %v6743_v13 }
 0x1eb   : > { %1363 = vmatprep.mubr.f32.mxu0 %v9381_v4  ;;  %1524 = vmatprep.mubr.f32.mxu1 %v9381_v4 }
 0x1ee   : > { %1364 = vmatmul.mubr.f32.gmra.mxu0 %v6749_v5  ;;  %1525 = vmatmul.mubr.f32.gmra.mxu1 %v6749_v5 }
 0x1ef   : > { %1369 = vmatprep.mubr.f32.mxu0 %v9381_v4  ;;  %1530 = vmatprep.mubr.f32.mxu1 %v9381_v4 }
 0x1f2   : > { %1370 = vmatmul.mubr.f32.gmra.mxu0 %v6755_v0  ;;  %1531 = vmatmul.mubr.f32.gmra.mxu1 %v6755_v0 }
 0x1f3   : > { %1375 = vmatprep.mubr.f32.mxu0 %v9381_v4  ;;  %1536 = vmatprep.mubr.f32.mxu1 %v9381_v4 }
 0x1f6   : > { %1376 = vmatmul.mubr.f32.gmra.mxu0 %v6761_v10  ;;  %1537 = vmatmul.mubr.f32.gmra.mxu1 %v6761_v10 }
 0x1f7   : > { %1381 = vmatprep.mubr.f32.mxu0 %v9381_v4  ;;  %1542 = vmatprep.mubr.f32.mxu1 %v9381_v4 }
 0x1fa   : > { %1382 = vmatmul.mubr.f32.gmra.mxu0 %v6767_v12  ;;  %1543 = vmatmul.mubr.f32.gmra.mxu1 %v6767_v12 }
 0x1fb   : > { %1387 = vmatprep.mubr.f32.mxu0 %v9381_v4  ;;  %1548 = vmatprep.mubr.f32.mxu1 %v9381_v4 }
 0x1fe   : > { %1388 = vmatmul.mubr.f32.gmra.mxu0 %v6773_v61  ;;  %1549 = vmatmul.mubr.f32.gmra.mxu1 %v6773_v61 }
 0x1ff   : > { %1393 = vmatprep.mubr.f32.mxu0 %v9381_v4  ;;  %1554 = vmatprep.mubr.f32.mxu1 %v9381_v4 }
 0x202   : > { %1394 = vmatmul.mubr.f32.gmra.mxu0 %v6779_v18  ;;  %1555 = vmatmul.mubr.f32.gmra.mxu1 %v6779_v18 }
 0x203   : > { %1399 = vmatprep.mubr.f32.mxu0 %v9381_v4  ;;  %1560 = vmatprep.mubr.f32.mxu1 %v9381_v4 }
 0x206   : > { %1400 = vmatmul.mubr.f32.gmra.mxu0 %v6785_v20  ;;  %1561 = vmatmul.mubr.f32.gmra.mxu1 %v6785_v20 }
 0x207   : > { %1405 = vmatprep.mubr.f32.mxu0 %v9381_v4  ;;  %1566 = vmatprep.mubr.f32.mxu1 %v9381_v4 }
 0x20a   : > { %1406 = vmatmul.mubr.f32.gmra.mxu0 %v6791_v21  ;;  %1567 = vmatmul.mubr.f32.gmra.mxu1 %v6791_v21 }
 0x20b   : > { %1411 = vmatprep.mubr.f32.mxu0 %v9381_v4  ;;  %1572 = vmatprep.mubr.f32.mxu1 %v9381_v4 }
 0x20e   : > { %1412 = vmatmul.mubr.f32.gmra.mxu0 %v6797_v23  ;;  %1573 = vmatmul.mubr.f32.gmra.mxu1 %v6797_v23 }
 0x20f   : > { %1417 = vmatprep.mubr.f32.mxu0 %v9381_v4  ;;  %1578 = vmatprep.mubr.f32.mxu1 %v9381_v4 }
 0x212   : > { %1418 = vmatmul.mubr.f32.gmra.mxu0 %v6803_v57  ;;  %1579 = vmatmul.mubr.f32.gmra.mxu1 %v6803_v57 }
 0x213   : > { %1729 = vmatprep.mubr.f32.mxu0 %v9381_v4  ;;  %1890 = vmatprep.mubr.f32.mxu1 %v9381_v4 }
 0x256   : > { %v6809_v26 = vpop.f32.mrf.mxu0  ;;  %v6811_v28 = vpop.f32.mrf.mxu1 }
 0x257   : > { %9475 = vst [vmem:[#allocation80_spill] sm:$0xff] %v6809_v26  ;;  %9476 = vst [vmem:[#allocation25_spill] sm:$0xff] %v6811_v28 }
 0x258   : > { %v6813_v29 = vpop.f32.mrf.mxu0  ;;  %v6815_v31 = vpop.f32.mrf.mxu1 }
 0x259   : > { %9477 = vst [vmem:[#allocation26_spill] sm:$0xff] %v6813_v29  ;;  %9478 = vst [vmem:[#allocation27_spill] sm:$0xff] %v6815_v31 }
 0x25a   : > { %v6817_v55 = vpop.f32.mrf.mxu0  ;;  %v6819_v34 = vpop.f32.mrf.mxu1 }
 0x25b   : > { %9479 = vst [vmem:[#allocation28_spill] sm:$0xff] %v6817_v55  ;;  %9480 = vst [vmem:[#allocation81_spill] sm:$0xff] %v6819_v34 }
 0x25c   : > { %v6821_v36 = vpop.f32.mrf.mxu0  ;;  %v6823_v37 = vpop.f32.mrf.mxu1 }
 0x25d   : > { %9481 = vst [vmem:[#allocation29_spill] sm:$0xff] %v6821_v36  ;;  %9482 = vst [vmem:[#allocation30_spill] sm:$0xff] %v6823_v37 }
 0x25e   : > { %v6825_v39 = vpop.f32.mrf.mxu0  ;;  %v6827_v52 = vpop.f32.mrf.mxu1 }
 0x25f   : > { %9483 = vst [vmem:[#allocation31_spill] sm:$0xff] %v6825_v39  ;;  %9484 = vst [vmem:[#allocation32_spill] sm:$0xff] %v6827_v52 }
 0x260   : > { %v6829_v42 = vpop.f32.mrf.mxu0  ;;  %v6831_v43 = vpop.f32.mrf.mxu1 }
 0x261   : > { %9485 = vst [vmem:[#allocation82_spill] sm:$0xff] %v6829_v42  ;;  %9486 = vst [vmem:[#allocation33_spill] sm:$0xff] %v6831_v43 }
 0x262   : > { %v6833_v51 = vpop.f32.mrf.mxu0  ;;  %v6835_v49 = vpop.f32.mrf.mxu1 }
 0x263   : > { %9487 = vst [vmem:[#allocation34_spill] sm:$0xff] %v6833_v51  ;;  %9488 = vst [vmem:[#allocation35_spill] sm:$0xff] %v6835_v49 }
 0x264   : > { %v6837_v31 = vpop.f32.mrf.mxu0  ;;  %v6839_v58 = vpop.f32.mrf.mxu1 }
 0x265   : > { %9489 = vst [vmem:[#allocation36_spill] sm:$0xff] %v6837_v31  ;;  %9490 = vst [vmem:[#allocation83_spill] sm:$0xff] %v6839_v58 }
 0x266   : > { %v6841_v34 = vpop.f32.mrf.mxu0  ;;  %v6843_v36 = vpop.f32.mrf.mxu1 }
 0x267   : > { %9491 = vst [vmem:[#allocation37_spill] sm:$0xff] %v6841_v34  ;;  %9492 = vst [vmem:[#allocation38_spill] sm:$0xff] %v6843_v36 }
 0x268   : > { %v6845_v37 = vpop.f32.mrf.mxu0  ;;  %v6847_v28 = vpop.f32.mrf.mxu1 }
 0x269   : > { %9493 = vst [vmem:[#allocation39_spill] sm:$0xff] %v6845_v37  ;;  %9494 = vst [vmem:[#allocation40_spill] sm:$0xff] %v6847_v28 }
 0x26a   : > { %v6849_v52 = vpop.f32.mrf.mxu0  ;;  %v6851_v42 = vpop.f32.mrf.mxu1 }
 0x26b   : > { %9495 = vst [vmem:[#allocation84_spill] sm:$0xff] %v6849_v52  ;;  %9496 = vst [vmem:[#allocation41_spill] sm:$0xff] %v6851_v42 }
 0x26c   : > { %v6853_v43 = vpop.f32.mrf.mxu0  ;;  %v6855_v29 = vpop.f32.mrf.mxu1 }
 0x26d   : > { %9497 = vst [vmem:[#allocation42_spill] sm:$0xff] %v6853_v43  ;;  %9498 = vst [vmem:[#allocation43_spill] sm:$0xff] %v6855_v29 }
 0x26e   : > { %v6857_v49 = vpop.f32.mrf.mxu0  ;;  %v6859_v31 = vpop.f32.mrf.mxu1 }
 0x26f   : > { %9499 = vst [vmem:[#allocation44_spill] sm:$0xff] %v6857_v49  ;;  %9500 = vst [vmem:[#allocation85_spill] sm:$0xff] %v6859_v31 }
 0x270   : > { %v6861_v58 = vpop.f32.mrf.mxu0  ;;  %v6863_v59 = vpop.f32.mrf.mxu1 }
 0x271   : > { %9501 = vst [vmem:[#allocation45_spill] sm:$0xff] %v6861_v58  ;;  %9502 = vst [vmem:[#allocation46_spill] sm:$0xff] %v6863_v59 }
 0x272   : > { %v6865_v36 = vpop.f32.mrf.mxu0  ;;  %v6867_v37 = vpop.f32.mrf.mxu1 }
 0x273   : > { %9503 = vst [vmem:[#allocation47_spill] sm:$0xff] %v6865_v36  ;;  %9504 = vst [vmem:[#allocation48_spill] sm:$0xff] %v6867_v37 }
 0x274   : > { %v6869_v28 = vpop.f32.mrf.mxu0  ;;  %v6871_v3 = vpop.f32.mrf.mxu1 }
 0x275   : > { %9505 = vst [vmem:[#allocation86_spill] sm:$0xff] %v6869_v28  ;;  %9506 = vst [vmem:[#allocation49_spill] sm:$0xff] %v6871_v3 }
 0x276   : > { %v6873_v42 = vpop.f32.mrf.mxu0  ;;  %v6875_v43 = vpop.f32.mrf.mxu1 }
 0x277   : > { %9507 = vst [vmem:[#allocation50_spill] sm:$0xff] %v6873_v42  ;;  %9508 = vst [vmem:[#allocation51_spill] sm:$0xff] %v6875_v43 }
 0x278   : > { %v6877_v29 = vpop.f32.mrf.mxu0  ;;  %v6879_v6 = vpop.f32.mrf.mxu1 }
 0x279   : > { %9509 = vst [vmem:[#allocation52_spill] sm:$0xff] %v6877_v29  ;;  %9510 = vst [vmem:[#allocation87_spill] sm:$0xff] %v6879_v6 }
 0x27a   : > { %v6881_v31 = vpop.f32.mrf.mxu0  ;;  %v6883_v58 = vpop.f32.mrf.mxu1 }
 0x27b   : > { %9511 = vst [vmem:[#allocation53_spill] sm:$0xff] %v6881_v31  ;;  %9512 = vst [vmem:[#allocation54_spill] sm:$0xff] %v6883_v58 }
 0x27c   : > { %v6885_v59 = vpop.f32.mrf.mxu0  ;;  %v6887_v9 = vpop.f32.mrf.mxu1 }
 0x27d   : > { %9513 = vst [vmem:[#allocation55_spill] sm:$0xff] %v6885_v59  ;;  %9514 = vst [vmem:[#allocation56_spill] sm:$0xff] %v6887_v9 }
 0x27e   : > { %v6889_v37 = vpop.f32.mrf.mxu0  ;;  %v6891_v28 = vpop.f32.mrf.mxu1 }
 0x27f   : > { %9515 = vst [vmem:[#allocation88_spill] sm:$0xff] %v6889_v37  ;;  %9516 = vst [vmem:[#allocation57_spill] sm:$0xff] %v6891_v28 }
 0x280   : > { %v6893_v3 = vpop.f32.mrf.mxu0  ;;  %v6895_v62 = vpop.f32.mrf.mxu1 }
 0x281   : > { %9517 = vst [vmem:[#allocation58_spill] sm:$0xff] %v6893_v3  ;;  %9518 = vst [vmem:[#allocation59_spill] sm:$0xff] %v6895_v62 }
 0x282   : > { %v6897_v43 = vpop.f32.mrf.mxu0  ;;  %v6899_v29 = vpop.f32.mrf.mxu1 }
 0x283   : > { %9519 = vst [vmem:[#allocation60_spill] sm:$0xff] %v6897_v43  ;;  %9520 = vst [vmem:[#allocation89_spill] sm:$0xff] %v6899_v29 }
 0x284   : > { %v6901_v6 = vpop.f32.mrf.mxu0  ;;  %v6903_v16 = vpop.f32.mrf.mxu1 }
 0x285   : > { %9521 = vst [vmem:[#allocation61_spill] sm:$0xff] %v6901_v6  ;;  %9522 = vst [vmem:[#allocation62_spill] sm:$0xff] %v6903_v16 }
 0x286   : > { %v6905_v58 = vpop.f32.mrf.mxu0  ;;  %v6907_v59 = vpop.f32.mrf.mxu1 }
 0x287   : > { %9523 = vst [vmem:[#allocation63_spill] sm:$0xff] %v6905_v58  ;;  %9524 = vst [vmem:[#allocation64_spill] sm:$0xff] %v6907_v59 }
 0x288   : > { %v6909_v9 = vpop.f32.mrf.mxu0  ;;  %v6911_v19 = vpop.f32.mrf.mxu1 }
 0x289   : > { %9525 = vst [vmem:[#allocation90_spill] sm:$0xff] %v6909_v9  ;;  %9526 = vst [vmem:[#allocation65_spill] sm:$0xff] %v6911_v19 }
 0x28a   : > { %v6913_v28 = vpop.f32.mrf.mxu0  ;;  %v6915_v3 = vpop.f32.mrf.mxu1 }
 0x28b   : > { %9527 = vst [vmem:[#allocation66_spill] sm:$0xff] %v6913_v28  ;;  %9528 = vst [vmem:[#allocation67_spill] sm:$0xff] %v6915_v3 }
 0x28c   : > { %v6917_v62 = vpop.f32.mrf.mxu0  ;;  %v6919_v22 = vpop.f32.mrf.mxu1 }
 0x28d   : > { %9529 = vst [vmem:[#allocation68_spill] sm:$0xff] %v6917_v62  ;;  %9530 = vst [vmem:[#allocation91_spill] sm:$0xff] %v6919_v22 }
 0x28e   : > { %v6921_v29 = vpop.f32.mrf.mxu0  ;;  %v6923_v6 = vpop.f32.mrf.mxu1 }
 0x28f   : > { %9531 = vst [vmem:[#allocation69_spill] sm:$0xff] %v6921_v29  ;;  %9532 = vst [vmem:[#allocation70_spill] sm:$0xff] %v6923_v6 }
 0x290   : > { %v6925_v16 = vpop.f32.mrf.mxu0  ;;  %v6927_v25 = vpop.f32.mrf.mxu1 }
 0x291   : > { %9533 = vst [vmem:[#allocation71_spill] sm:$0xff] %v6925_v16  ;;  %9534 = vst [vmem:[#allocation72_spill] sm:$0xff] %v6927_v25 }
 0x292   : > { %v6929_v59 = vpop.f32.mrf.mxu0  ;;  %v6931_v9 = vpop.f32.mrf.mxu1 }
 0x293   : > { %9535 = vst [vmem:[#allocation73_spill] sm:$0xff] %v6929_v59  ;;  %9536 = vst [vmem:[#allocation74_spill] sm:$0xff] %v6931_v9 }
 0x294   : > { %v6933_v19 = vpop.f32.mrf.mxu0  ;;  %v6935_v56 = vpop.f32.mrf.mxu1 }
 0x295   : > { %9537 = vst [vmem:[#allocation75_spill] sm:$0xff] %v6933_v19  ;;  %9538 = vst [vmem:[#allocation76_spill] sm:$0xff] %v6935_v56 }
 0x296   : > { %v6937_v3 = vpop.f32.mrf.mxu0  ;;  %v6939_v62 = vpop.f32.mrf.mxu1 }
 0x297   : > { %9539 = vst [vmem:[#allocation156_spill] sm:$0xff] %v6939_v62 }
 0x298   : > { %v6941_v22 = vpop.f32.mrf.mxu0  ;;  %v6943_v32 = vpop.f32.mrf.mxu1 }
 0x299   : > { %9540 = vst [vmem:[#allocation157_spill] sm:$0xff] %v6941_v22  ;;  %9541 = vst [vmem:[#allocation158_spill] sm:$0xff] %v6943_v32 }
 0x29a   : > { %v6945_v6 = vpop.f32.mrf.mxu0  ;;  %v6947_v16 = vpop.f32.mrf.mxu1 }
 0x29b   : > { %9542 = vst [vmem:[#allocation159_spill] sm:$0xff] %v6947_v16 }
 0x29c   : > { %v6949_v25 = vpop.f32.mrf.mxu0  ;;  %v6951_v35 = vpop.f32.mrf.mxu1 }
 0x29d   : > { %9543 = vst [vmem:[#allocation160_spill] sm:$0xff] %v6949_v25  ;;  %9544 = vst [vmem:[#allocation161_spill] sm:$0xff] %v6951_v35 }
 0x29e   : > { %v6953_v9 = vpop.f32.mrf.mxu0  ;;  %v6955_v19 = vpop.f32.mrf.mxu1 }
 0x29f   : > { %9545 = vst [vmem:[#allocation162_spill] sm:$0xff] %v6955_v19 }
 0x2a0   : > { %v6957_v56 = vpop.f32.mrf.mxu0  ;;  %v6959_v38 = vpop.f32.mrf.mxu1 }
 0x2a1   : > { %9546 = vst [vmem:[#allocation163_spill] sm:$0xff] %v6957_v56  ;;  %9547 = vst [vmem:[#allocation164_spill] sm:$0xff] %v6959_v38 }
 0x2a2   : > { %v6961_v41 = vpop.f32.mrf.mxu0  ;;  %v6963_v44 = vpop.f32.mrf.mxu1 }
 0x2a3   : > { %9548 = vst [vmem:[#allocation165_spill] sm:$0xff] %v6963_v44 }
 0x2a4   : > { %v6965_v46 = vpop.f32.mrf.mxu0  ;;  %v6967_v59 = vpop.f32.mrf.mxu1 }
 0x2a5   : > { %9549 = vst [vmem:[#allocation166_spill] sm:$0xff] %v6965_v46  ;;  %9550 = vst [vmem:[#allocation167_spill] sm:$0xff] %v6967_v59 }
 0x2a6   : > { %v6969_v1 = vpop.f32.mrf.mxu0  ;;  %v6971_v29 = vpop.f32.mrf.mxu1 }
 0x2a7   : > { %9551 = vst [vmem:[#allocation168_spill] sm:$0xff] %v6971_v29 }
 0x2a8   : > { %v6973_v63 = vpop.f32.mrf.mxu0  ;;  %v6975_v28 = vpop.f32.mrf.mxu1 }
 0x2a9   : > { %9552 = vst [vmem:[#allocation169_spill] sm:$0xff] %v6973_v63  ;;  %9553 = vst [vmem:[#allocation170_spill] sm:$0xff] %v6975_v28 }
 0x2aa   : > { %v6977_v8 = vpop.f32.mrf.mxu0  ;;  %v6979_v58 = vpop.f32.mrf.mxu1 }
 0x2ab   : > { %9554 = vst [vmem:[#allocation171_spill] sm:$0xff] %v6979_v58 }
 0x2ac   : > { %v6981_v11 = vpop.f32.mrf.mxu0  ;;  %v6983_v43 = vpop.f32.mrf.mxu1 }
 0x2ad   : > { %9555 = vst [vmem:[#allocation172_spill] sm:$0xff] %v6981_v11  ;;  %9556 = vst [vmem:[#allocation173_spill] sm:$0xff] %v6983_v43 }
 0x2ae   : > { %v6985_v14 = vpop.f32.mrf.mxu0  ;;  %v6987_v37 = vpop.f32.mrf.mxu1 }
 0x2af   : > { %9557 = vst [vmem:[#allocation174_spill] sm:$0xff] %v6987_v37 }
 0x2b0   : > { %v6989_v17 = vpop.f32.mrf.mxu0  ;;  %v6991_v31 = vpop.f32.mrf.mxu1 }
 0x2b1   : > { %9558 = vst [vmem:[#allocation175_spill] sm:$0xff] %v6989_v17  ;;  %9559 = vst [vmem:[#allocation176_spill] sm:$0xff] %v6991_v31 }
 0x2b2   : > { %v6993_v60 = vpop.f32.mrf.mxu0  ;;  %v6995_v42 = vpop.f32.mrf.mxu1 }
 0x2b3   : > { %9560 = vst [vmem:[#allocation177_spill] sm:$0xff] %v6995_v42 }
 0x2b4   : > { %v6997_v24 = vpop.f32.mrf.mxu0  ;;  %v6999_v36 = vpop.f32.mrf.mxu1 }
 0x2b5   : > { %9561 = vst [vmem:[#allocation178_spill] sm:$0xff] %v6997_v24  ;;  %9562 = vst [vmem:[#allocation179_spill] sm:$0xff] %v6999_v36 }
 0x2b6   : > { %v7001_v27 = vpop.f32.mrf.mxu0  ;;  %v7003_v49 = vpop.f32.mrf.mxu1 }
 0x2b7   : > { %9563 = vst [vmem:[#allocation180_spill] sm:$0xff] %v7003_v49 }
 0x2b8   : > { %v7005_v30 = vpop.f32.mrf.mxu0  ;;  %v7007_v52 = vpop.f32.mrf.mxu1 }
 0x2b9   : > { %9564 = vst [vmem:[#allocation181_spill] sm:$0xff] %v7005_v30  ;;  %9565 = vst [vmem:[#allocation182_spill] sm:$0xff] %v7007_v52 }
 0x2ba   : > { %v7009_v33 = vpop.f32.mrf.mxu0  ;;  %v7011_v34 = vpop.f32.mrf.mxu1 }
 0x2bb   : > { %9566 = vst [vmem:[#allocation183_spill] sm:$0xff] %v7011_v34 }
 0x2bc   : > { %v7013_v53 = vpop.f32.mrf.mxu0  ;;  %v7015_v51 = vpop.f32.mrf.mxu1 }
 0x2bd   : > { %9567 = vst [vmem:[#allocation184_spill] sm:$0xff] %v7013_v53  ;;  %9568 = vst [vmem:[#allocation185_spill] sm:$0xff] %v7015_v51 }
 0x2be   : > { %v7017_v40 = vpop.f32.mrf.mxu0  ;;  %v7019_v39 = vpop.f32.mrf.mxu1 }
 0x2bf   : > { %9569 = vst [vmem:[#allocation186_spill] sm:$0xff] %v7019_v39 }
 0x2c0   : > { %v7021_v48 = vpop.f32.mrf.mxu0  ;;  %v7023_v55 = vpop.f32.mrf.mxu1 }
 0x2c1   : > { %9570 = vst [vmem:[#allocation187_spill] sm:$0xff] %v7021_v48  ;;  %9571 = vst [vmem:[#allocation188_spill] sm:$0xff] %v7023_v55 }
 0x2c2   : > { %v7025_v45 = vpop.f32.mrf.mxu0  ;;  %v7027_v26 = vpop.f32.mrf.mxu1 }
 0x2c3   : > { %9572 = vst [vmem:[#allocation189_spill] sm:$0xff] %v7027_v26 }
 0x2c4   : > { %v7029_v50 = vpop.f32.mrf.mxu0  ;;  %v7031_v57 = vpop.f32.mrf.mxu1 }
 0x2c5   : > { %9573 = vst [vmem:[#allocation190_spill] sm:$0xff] %v7029_v50  ;;  %9574 = vst [vmem:[#allocation191_spill] sm:$0xff] %v7031_v57 }
 0x2c6   : > { %v7033_v23 = vpop.f32.mrf.mxu0  ;;  %v7035_v21 = vpop.f32.mrf.mxu1 }
 0x2c7   : > { %9575 = vst [vmem:[#allocation192_spill] sm:$0xff] %v7035_v21 }
 0x2c8   : > { %v7037_v20 = vpop.f32.mrf.mxu0  ;;  %v7039_v18 = vpop.f32.mrf.mxu1 }
 0x2c9   : > { %9576 = vst [vmem:[#allocation193_spill] sm:$0xff] %v7037_v20  ;;  %9577 = vst [vmem:[#allocation194_spill] sm:$0xff] %v7039_v18 }
 0x2ca   : > { %v7041_v61 = vpop.f32.mrf.mxu0  ;;  %v7043_v12 = vpop.f32.mrf.mxu1 }
 0x2cb   : > { %9578 = vst [vmem:[#allocation195_spill] sm:$0xff] %v7043_v12 }
 0x2cc   : > { %v7045_v10 = vpop.f32.mrf.mxu0  ;;  %v7047_v0 = vpop.f32.mrf.mxu1 }
 0x2cd   : > { %9579 = vst [vmem:[#allocation196_spill] sm:$0xff] %v7045_v10  ;;  %9580 = vst [vmem:[#allocation197_spill] sm:$0xff] %v7047_v0 }
 0x2ce   : > { %v7049_v5 = vpop.f32.mrf.mxu0  ;;  %v7051_v13 = vpop.f32.mrf.mxu1 }
 0x2cf   : > { %9581 = vst [vmem:[#allocation198_spill] sm:$0xff] %v7051_v13 }
 0x2d0   : > { %v7053_v15 = vpop.f32.mrf.mxu0  ;;  %v7055_v2 = vpop.f32.mrf.mxu1 }
 0x2d1   : > { %9582 = vst [vmem:[#allocation199_spill] sm:$0xff] %v7053_v15  ;;  %9583 = vst [vmem:[#allocation200_spill] sm:$0xff] %v7055_v2 }
 0x2d2   : > { %v7057_v7 = vpop.f32.mrf.mxu0  ;;  %v7059_v4 = vpop.f32.mrf.mxu1 }
 0x2d3   : > { %9584 = vst [vmem:[#allocation201_spill] sm:$0xff] %v7059_v4 }
 0x2d4   : > { %v7061_v54 = vpop.f32.mrf.mxu0  ;;  %v7063_v62 = vpop.f32.mrf.mxu1 }
 0x2d5   : > { %9585 = vst [vmem:[#allocation202_spill] sm:$0xff] %v7061_v54  ;;  %9586 = vst [vmem:[#allocation203_spill] sm:$0xff] %v7063_v62  ;;  %1665 = vmatprep.subr.mxu0 %v7061_v54  ;;  %1826 = vmatprep.subr.mxu1 %v7063_v62  ;;  %v1649_v62 = vmul.f32 2.0, %v6709_v47  ;;  %v9588_v47 = vld [vmem:[#allocation77_spill] sm:$0xff] }
 0x2d6   : > { %1666 = vmatpush1.msra.mxu0 %v7057_v7  ;;  %1827 = vmatpush1.msra.mxu1 %v7059_v4  ;;  %v7175_v4 = vld [vmem:[#allocation8 + $0xe0] sm:$0xff] }
 0x2d7   : > { %1667 = vmatprep.subr.mxu0 %v7053_v15  ;;  %1828 = vmatprep.subr.mxu1 %v7055_v2  ;;  %v9587_v2 = vld [vmem:[#allocation156_spill] sm:$0xff]  ;;  %v7182_v15 = vld [vmem:[#allocation8 + $0x160] sm:$0xff] }
 0x2d8   : > { %1668 = vmatpush1.msra.mxu0 %v7049_v5  ;;  %1829 = vmatpush1.msra.mxu1 %v7051_v13  ;;  %v7180_v13 = vld [vmem:[#allocation8 + $0x60] sm:$0xff] }
 0x2d9   : > { %1669 = vmatprep.subr.mxu0 %v7045_v10  ;;  %1830 = vmatprep.subr.mxu1 %v7047_v0  ;;  %v7130_v0 = vld [vmem:[#allocation8 + $0xf8] sm:$0xff] }
 0x2da   : > { %1670 = vmatpush1.msra.mxu0 %v7041_v61  ;;  %1831 = vmatpush1.msra.mxu1 %v7043_v12  ;;  %v7190_v12 = vld [vmem:[#allocation8 + $0xd8] sm:$0xff] }
 0x2db   : > { %1671 = vmatprep.subr.mxu0 %v7037_v20  ;;  %1832 = vmatprep.subr.mxu1 %v7039_v18  ;;  %v7132_v18 = vld [vmem:[#allocation8 + $0x1f8] sm:$0xff] }
 0x2dc   : > { %1672 = vmatpush1.msra.mxu0 %v7033_v23  ;;  %1833 = vmatpush1.msra.mxu1 %v7035_v21  ;;  %v7195_v21 = vld [vmem:[#allocation8 + $0x58] sm:$0xff] }
 0x2dd   : > { %1673 = vmatprep.subr.mxu0 %v7029_v50  ;;  %1834 = vmatprep.subr.mxu1 %v7031_v57  ;;  %v1650_v57 = vmul.f32 2.0, %v9588_v47  ;;  %v9590_v47 = vld [vmem:[#allocation13_spill] sm:$0xff]  ;;  %v7197_v20 = vld [vmem:[#allocation8 + $0x158] sm:$0xff] }
 0x2de   : > { %1674 = vmatpush1.msra.mxu0 %v7025_v45  ;;  %1835 = vmatpush1.msra.mxu1 %v7027_v26  ;;  %9595 = vst [vmem:[#allocation13_spill] sm:$0xff] %v7197_v20  ;;  %v7205_v26 = vld [vmem:[#allocation8 + $0xd0] sm:$0xff] }
 0x2df   : > { %1675 = vmatprep.subr.mxu0 %v7021_v48  ;;  %1836 = vmatprep.subr.mxu1 %v7023_v55  ;;  %v7135_v55 = vld [vmem:[#allocation8 + $0x78] sm:$0xff]  ;;  %v7212_v48 = vld [vmem:[#allocation8 + $0x150] sm:$0xff] }
 0x2e0   : > { %1676 = vmatpush1.msra.mxu0 %v7017_v40  ;;  %1837 = vmatpush1.msra.mxu1 %v7019_v39  ;;  %v7210_v39 = vld [vmem:[#allocation8 + $0x50] sm:$0xff] }
 0x2e1   : > { %1677 = vmatprep.subr.mxu0 %v7013_v53  ;;  %1838 = vmatprep.subr.mxu1 %v7015_v51  ;;  %v7137_v51 = vld [vmem:[#allocation8 + $0x178] sm:$0xff] }
 0x2e2   : > { %1678 = vmatpush1.msra.mxu0 %v7009_v33  ;;  %1839 = vmatpush1.msra.mxu1 %v7011_v34  ;;  %v7220_v34 = vld [vmem:[#allocation8 + $0xc8] sm:$0xff] }
 0x2e3   : > { %1679 = vmatprep.subr.mxu0 %v7005_v30  ;;  %1840 = vmatprep.subr.mxu1 %v7007_v52  ;;  %v9589_v52 = vmov 0.0   ;;  %v7227_v30 = vld [vmem:[#allocation8 + $0x148] sm:$0xff] }
 0x2e4   : > { %1680 = vmatpush1.msra.mxu0 %v7001_v27  ;;  %1841 = vmatpush1.msra.mxu1 %v7003_v49  ;;  %v7225_v49 = vld [vmem:[#allocation8 + $0x48] sm:$0xff] }
 0x2e5   : > { %1681 = vmatprep.subr.mxu0 %v6997_v24  ;;  %1842 = vmatprep.subr.mxu1 %v6999_v36  ;;  %v7145_v36 = vld [vmem:[#allocation8 + $0xf0] sm:$0xff] }
 0x2e6   : > { %1682 = vmatpush1.msra.mxu0 %v6993_v60  ;;  %1843 = vmatpush1.msra.mxu1 %v6995_v42  ;;  %v7235_v42 = vld [vmem:[#allocation8 + $0xc0] sm:$0xff] }
 0x2e7   : > { %1683 = vmatprep.subr.mxu0 %v6989_v17  ;;  %1844 = vmatprep.subr.mxu1 %v6991_v31  ;;  %v1651_v31 = vmul.f32 2.0, %v9590_v47  ;;  %v9591_v47 = vld [vmem:[#allocation14_spill] sm:$0xff]  ;;  %v7242_v17 = vld [vmem:[#allocation8 + $0x140] sm:$0xff] }
 0x2e8   : > { %1684 = vmatpush1.msra.mxu0 %v6985_v14  ;;  %1845 = vmatpush1.msra.mxu1 %v6987_v37  ;;  %v7240_v37 = vld [vmem:[#allocation8 + $0x40] sm:$0xff] }
 0x2e9   : > { %1685 = vmatprep.subr.mxu0 %v6981_v11  ;;  %1846 = vmatprep.subr.mxu1 %v6983_v43  ;;  %v7150_v43 = vld [vmem:[#allocation8 + $0x70] sm:$0xff] }
 0x2ea   : > { %1686 = vmatpush1.msra.mxu0 %v6977_v8  ;;  %1847 = vmatpush1.msra.mxu1 %v6979_v58  ;;  %v7250_v58 = vld [vmem:[#allocation8 + $0xb8] sm:$0xff] }
 0x2eb   : > { %1687 = vmatprep.subr.mxu0 %v6973_v63  ;;  %1848 = vmatprep.subr.mxu1 %v6975_v28  ;;  %v7152_v28 = vld [vmem:[#allocation8 + $0x170] sm:$0xff]  ;;  %v7257_v63 = vld [vmem:[#allocation8 + $0x138] sm:$0xff] }
 0x2ec   : > { %1688 = vmatpush1.msra.mxu0 %v6969_v1  ;;  %1849 = vmatpush1.msra.mxu1 %v6971_v29  ;;  %v7255_v29 = vld [vmem:[#allocation8 + $0x38] sm:$0xff] }
 0x2ed   : > { %1689 = vmatprep.subr.mxu0 %v6965_v46  ;;  %1850 = vmatprep.subr.mxu1 %v6967_v59  ;;  %v7160_v59 = vld [vmem:[#allocation8 + $0xe8] sm:$0xff] }
 0x2ee   : > { %1690 = vmatpush1.msra.mxu0 %v6961_v41  ;;  %1851 = vmatpush1.msra.mxu1 %v6963_v44  ;;  %v7265_v44 = vld [vmem:[#allocation8 + $0xb0] sm:$0xff] }
 0x2ef   : > { %1691 = vmatprep.subr.mxu0 %v6957_v56  ;;  %1852 = vmatprep.subr.mxu1 %v6959_v38  ;;  %v1652_v38 = vmul.f32 2.0, %v9591_v47  ;;  %v9592_v47 = vld [vmem:[#allocation15_spill] sm:$0xff] }
 0x2f0   : > { %1692 = vmatpush1.msra.mxu0 %v6953_v9  ;;  %1853 = vmatpush1.msra.mxu1 %v6955_v19  ;;  %v1653_v54 = vmul.f32 2.0, %v9592_v47  ;;  %v9594_v47 = vld [vmem:[#allocation16_spill] sm:$0xff]  ;;  %9598 = vst [vmem:[#allocation15_spill] sm:$0xff] %v7212_v48  ;;  %v7270_v19 = vld [vmem:[#allocation8 + $0x30] sm:$0xff] }
 0x2f1   : > { %1693 = vmatprep.subr.mxu0 %v6949_v25  ;;  %1854 = vmatprep.subr.mxu1 %v6951_v35  ;;  %v7165_v35 = vld [vmem:[#allocation8 + $0x68] sm:$0xff]  ;;  %v1654_v10 = vmul.f32 2.0, %v9594_v47  ;;  %v7272_v56 = vld [vmem:[#allocation8 + $0x130] sm:$0xff] }
 0x2f2   : > { %1694 = vmatpush1.msra.mxu0 %v6945_v6  ;;  %1855 = vmatpush1.msra.mxu1 %v6947_v16  ;;  %v9597_v47 = vld [vmem:[#allocation78_spill] sm:$0xff] }
 0x2f3   : > { %1695 = vmatprep.subr.mxu0 %v6941_v22  ;;  %1856 = vmatprep.subr.mxu1 %v6943_v32  ;;  %v7167_v32 = vld [vmem:[#allocation8 + $0x168] sm:$0xff]  ;;  %v1655_v50 = vmul.f32 2.0, %v9597_v47  ;;  %v9600_v47 = vld [vmem:[#allocation17_spill] sm:$0xff]  ;;  %9601 = vst [vmem:[#allocation78_spill] sm:$0xff] %v7227_v30 }
 0x2f4   : > { %1696 = vmatpush1.msra.mxu0 %v6937_v3  ;;  %1857 = vmatpush1.msra.mxu1 %v9587_v2  ;;  %v1656_v53 = vmul.f32 2.0, %v9600_v47  ;;  %v9603_v47 = vld [vmem:[#allocation18_spill] sm:$0xff] }
 0x2f5   : > { %1730 = vmatmul.mubr.f32.vlgmr.msra.gmra.mxu0 %v1649_v62  ;;  %1891 = vmatmul.mubr.f32.vlgmr.msra.gmra.mxu1 %v1649_v62  ;;  %v7147_v62 = vld [vmem:[#allocation8 + $0x1f0] sm:$0xff]  ;;  %v1657_v24 = vmul.f32 2.0, %v9603_v47  ;;  %9604 = vst [vmem:[#allocation18_spill] sm:$0xff] %v7242_v17  ;;  %v7252_v47 = vld [vmem:[#allocation8 + $0x1b8] sm:$0xff]  ;;  %v7280_v16 = vld [vmem:[#allocation8 + $0xa8] sm:$0xff] }
 0x2f6   : > { %1735 = vmatprep.mubr.f32.mxu0 %v9589_v52  ;;  %1896 = vmatprep.mubr.f32.mxu1 %v9589_v52  ;;  %9605 = vst [vmem:[#allocation204_spill] sm:$0xff] %v7252_v47  ;;  %v7285_v2 = vld [vmem:[#allocation8 + $0x28] sm:$0xff] }
 0x2f7   : > { %4507 = vmatprep.subr.mxu0 %v7130_v0  ;;  %4587 = vmatprep.subr.mxu1 %v7132_v18  ;;  %v7287_v22 = vld [vmem:[#allocation8 + $0x128] sm:$0xff] }
 0x2f8   : > { %4508 = vmatpush3.msra.mxu0 %v7135_v55  ;;  %4588 = vmatpush3.msra.mxu1 %v7137_v51 }
 0x2f9   : > { %1736 = vmatmul.mubr.f32.gmra.mxu0 %v1650_v57  ;;  %1897 = vmatmul.mubr.f32.gmra.mxu1 %v1650_v57  ;;  %v7162_v57 = vld [vmem:[#allocation8 + $0x1e8] sm:$0xff] }
 0x2fa   : > { %1741 = vmatprep.mubr.f32.mxu0 %v9589_v52  ;;  %1902 = vmatprep.mubr.f32.mxu1 %v9589_v52 }
 0x2fb   : > { %4509 = vmatprep.subr.mxu0 %v7145_v36  ;;  %4589 = vmatprep.subr.mxu1 %v7147_v62 }
 0x2fc   : > { %4510 = vmatpush3.msra.mxu0 %v7150_v43  ;;  %4590 = vmatpush3.msra.mxu1 %v7152_v28 }
 0x2fd   : > { %1742 = vmatmul.mubr.f32.gmra.mxu0 %v1651_v31  ;;  %1903 = vmatmul.mubr.f32.gmra.mxu1 %v1651_v31  ;;  %v7177_v31 = vld [vmem:[#allocation8 + $0x1e0] sm:$0xff] }
 0x2fe   : > { %1747 = vmatprep.mubr.f32.mxu0 %v9589_v52  ;;  %1908 = vmatprep.mubr.f32.mxu1 %v9589_v52 }
 0x2ff   : > { %4511 = vmatprep.subr.mxu0 %v7160_v59  ;;  %4591 = vmatprep.subr.mxu1 %v7162_v57 }
 0x300   : > { %4512 = vmatpush3.msra.mxu0 %v7165_v35  ;;  %4592 = vmatpush3.msra.mxu1 %v7167_v32 }
 0x301   : > { %1748 = vmatmul.mubr.f32.gmra.mxu0 %v1652_v38  ;;  %1909 = vmatmul.mubr.f32.gmra.mxu1 %v1652_v38  ;;  %v7192_v38 = vld [vmem:[#allocation8 + $0x1d8] sm:$0xff] }
 0x302   : > { %1753 = vmatprep.mubr.f32.mxu0 %v9589_v52  ;;  %1914 = vmatprep.mubr.f32.mxu1 %v9589_v52  ;;  %9593 = vst [vmem:[#allocation77_spill] sm:$0xff] %v7192_v38 }
 0x303   : > { %4513 = vmatprep.subr.mxu0 %v7175_v4  ;;  %4593 = vmatprep.subr.mxu1 %v7177_v31 }
 0x304   : > { %4514 = vmatpush3.msra.mxu0 %v7180_v13  ;;  %4594 = vmatpush3.msra.mxu1 %v7182_v15 }
 0x305   : > { %1754 = vmatmul.mubr.f32.gmra.mxu0 %v1653_v54  ;;  %1915 = vmatmul.mubr.f32.gmra.mxu1 %v1653_v54  ;;  %v7207_v54 = vld [vmem:[#allocation8 + $0x1d0] sm:$0xff] }
 0x306   : > { %1759 = vmatprep.mubr.f32.mxu0 %v9589_v52  ;;  %1920 = vmatprep.mubr.f32.mxu1 %v9589_v52  ;;  %9596 = vst [vmem:[#allocation14_spill] sm:$0xff] %v7207_v54 }
 0x307   : > { %4515 = vmatprep.subr.mxu0 %v7190_v12  ;;  %4595 = vmatprep.subr.mxu1 %v7192_v38 }
 0x308   : > { %4516 = vmatpush3.msra.mxu0 %v7195_v21  ;;  %4596 = vmatpush3.msra.mxu1 %v7197_v20  ;;  %v9628_v20 = vld [vmem:[#allocation80_spill] sm:$0xff] }
 0x309   : > { %1760 = vmatmul.mubr.f32.gmra.mxu0 %v1654_v10  ;;  %1921 = vmatmul.mubr.f32.gmra.mxu1 %v1654_v10  ;;  %v7222_v10 = vld [vmem:[#allocation8 + $0x1c8] sm:$0xff] }
 0x30a   : > { %1765 = vmatprep.mubr.f32.mxu0 %v9589_v52  ;;  %1926 = vmatprep.mubr.f32.mxu1 %v9589_v52  ;;  %9599 = vst [vmem:[#allocation16_spill] sm:$0xff] %v7222_v10 }
 0x30b   : > { %4517 = vmatprep.subr.mxu0 %v7205_v26  ;;  %4597 = vmatprep.subr.mxu1 %v7207_v54  ;;  %v7347_v54 = vld [vmem:[#allocation8 + $0x108] sm:$0xff] }
 0x30c   : > { %4518 = vmatpush3.msra.mxu0 %v7210_v39  ;;  %4598 = vmatpush3.msra.mxu1 %v7212_v48  ;;  %v7345_v48 = vld [vmem:[#allocation8 + $0x8] sm:$0xff] }
 0x30d   : > { %1766 = vmatmul.mubr.f32.gmra.mxu0 %v1655_v50  ;;  %1927 = vmatmul.mubr.f32.gmra.mxu1 %v1655_v50  ;;  %v7237_v50 = vld [vmem:[#allocation8 + $0x1c0] sm:$0xff] }
 0x30e   : > { %1771 = vmatprep.mubr.f32.mxu0 %v9589_v52  ;;  %1932 = vmatprep.mubr.f32.mxu1 %v9589_v52  ;;  %9602 = vst [vmem:[#allocation17_spill] sm:$0xff] %v7237_v50 }
 0x30f   : > { %4519 = vmatprep.subr.mxu0 %v7220_v34  ;;  %4599 = vmatprep.subr.mxu1 %v7222_v10  ;;  %v7332_v10 = vld [vmem:[#allocation8 + $0x110] sm:$0xff] }
 0x310   : > { %4520 = vmatpush3.msra.mxu0 %v7225_v49  ;;  %4600 = vmatpush3.msra.mxu1 %v7227_v30  ;;  %v7330_v30 = vld [vmem:[#allocation8 + $0x10] sm:$0xff] }
 0x311   : > { %1772 = vmatmul.mubr.f32.gmra.mxu0 %v1656_v53  ;;  %1933 = vmatmul.mubr.f32.gmra.mxu1 %v1656_v53  ;;  %v9606_v53 = vld [vmem:[#allocation19_spill] sm:$0xff] }
 0x312   : > { %1777 = vmatprep.mubr.f32.mxu0 %v9589_v52  ;;  %1938 = vmatprep.mubr.f32.mxu1 %v9589_v52  ;;  %v1658_v11 = vmul.f32 2.0, %v9606_v53  ;;  %9607 = vst [vmem:[#allocation19_spill] sm:$0xff] %v7257_v63  ;;  %v7267_v53 = vld [vmem:[#allocation8 + $0x1b0] sm:$0xff] }
 0x313   : > { %4521 = vmatprep.subr.mxu0 %v7235_v42  ;;  %4601 = vmatprep.subr.mxu1 %v7237_v50  ;;  %9608 = vst [vmem:[#allocation205_spill] sm:$0xff] %v7267_v53  ;;  %v7317_v50 = vld [vmem:[#allocation8 + $0x118] sm:$0xff] }
 0x314   : > { %4522 = vmatpush3.msra.mxu0 %v7240_v37  ;;  %4602 = vmatpush3.msra.mxu1 %v7242_v17  ;;  %v7315_v17 = vld [vmem:[#allocation8 + $0x18] sm:$0xff] }
 0x315   : > { %1778 = vmatmul.mubr.f32.gmra.mxu0 %v1657_v24  ;;  %1939 = vmatmul.mubr.f32.gmra.mxu1 %v1657_v24  ;;  %v9609_v24 = vld [vmem:[#allocation20_spill] sm:$0xff] }
 0x316   : > { %1783 = vmatprep.mubr.f32.mxu0 %v9589_v52  ;;  %1944 = vmatprep.mubr.f32.mxu1 %v9589_v52  ;;  %v1659_v46 = vmul.f32 2.0, %v9609_v24  ;;  %9610 = vst [vmem:[#allocation20_spill] sm:$0xff] %v7272_v56  ;;  %v7282_v24 = vld [vmem:[#allocation8 + $0x1a8] sm:$0xff] }
 0x317   : > { %4523 = vmatprep.subr.mxu0 %v7250_v58  ;;  %4603 = vmatprep.subr.mxu1 %v7252_v47  ;;  %9611 = vst [vmem:[#allocation206_spill] sm:$0xff] %v7282_v24  ;;  %v7302_v47 = vld [vmem:[#allocation8 + $0x120] sm:$0xff] }
 0x318   : > { %4524 = vmatpush3.msra.mxu0 %v7255_v29  ;;  %4604 = vmatpush3.msra.mxu1 %v7257_v63  ;;  %v7300_v63 = vld [vmem:[#allocation8 + $0x20] sm:$0xff] }
 0x319   : > { %1784 = vmatmul.mubr.f32.gmra.mxu0 %v1658_v11  ;;  %1945 = vmatmul.mubr.f32.gmra.mxu1 %v1658_v11  ;;  %v9612_v11 = vld [vmem:[#allocation79_spill] sm:$0xff] }
 0x31a   : > { %1789 = vmatprep.mubr.f32.mxu0 %v9589_v52  ;;  %1950 = vmatprep.mubr.f32.mxu1 %v9589_v52  ;;  %v1660_v25 = vmul.f32 2.0, %v9612_v11  ;;  %9613 = vst [vmem:[#allocation79_spill] sm:$0xff] %v7287_v22  ;;  %v7297_v11 = vld [vmem:[#allocation8 + $0x1a0] sm:$0xff] }
 0x31b   : > { %4525 = vmatprep.subr.mxu0 %v7265_v44  ;;  %4605 = vmatprep.subr.mxu1 %v7267_v53  ;;  %9614 = vst [vmem:[#allocation207_spill] sm:$0xff] %v7297_v11 }
 0x31c   : > { %4526 = vmatpush3.msra.mxu0 %v7270_v19  ;;  %4606 = vmatpush3.msra.mxu1 %v7272_v56  ;;  %v7295_v56 = vld [vmem:[#allocation8 + $0xa0] sm:$0xff] }
 0x31d   : > { %1790 = vmatmul.mubr.f32.gmra.mxu0 %v1659_v46  ;;  %1951 = vmatmul.mubr.f32.gmra.mxu1 %v1659_v46  ;;  %v9615_v46 = vld [vmem:[#allocation21_spill] sm:$0xff] }
 0x31e   : > { %1795 = vmatprep.mubr.f32.mxu0 %v9589_v52  ;;  %1956 = vmatprep.mubr.f32.mxu1 %v9589_v52  ;;  %v1661_v53 = vmul.f32 2.0, %v9615_v46  ;;  %9616 = vst [vmem:[#allocation21_spill] sm:$0xff] %v7302_v47  ;;  %v7312_v46 = vld [vmem:[#allocation8 + $0x198] sm:$0xff] }
 0x31f   : > { %4527 = vmatprep.subr.mxu0 %v7280_v16  ;;  %4607 = vmatprep.subr.mxu1 %v7282_v24  ;;  %9617 = vst [vmem:[#allocation208_spill] sm:$0xff] %v7312_v46 }
 0x320   : > { %4528 = vmatpush3.msra.mxu0 %v7285_v2  ;;  %4608 = vmatpush3.msra.mxu1 %v7287_v22  ;;  %v7310_v22 = vld [vmem:[#allocation8 + $0x98] sm:$0xff] }
 0x321   : > { %1796 = vmatmul.mubr.f32.gmra.mxu0 %v1660_v25  ;;  %1957 = vmatmul.mubr.f32.gmra.mxu1 %v1660_v25  ;;  %v9618_v25 = vld [vmem:[#allocation22_spill] sm:$0xff] }
 0x322   : > { %1801 = vmatprep.mubr.f32.mxu0 %v9589_v52  ;;  %1962 = vmatprep.mubr.f32.mxu1 %v9589_v52  ;;  %v1662_v24 = vmul.f32 2.0, %v9618_v25  ;;  %9619 = vst [vmem:[#allocation22_spill] sm:$0xff] %v7317_v50  ;;  %v7327_v25 = vld [vmem:[#allocation8 + $0x190] sm:$0xff] }
 0x323   : > { %4529 = vmatprep.subr.mxu0 %v7295_v56  ;;  %4609 = vmatprep.subr.mxu1 %v7297_v11  ;;  %9620 = vst [vmem:[#allocation209_spill] sm:$0xff] %v7327_v25 }
 0x324   : > { %4530 = vmatpush3.msra.mxu0 %v7300_v63  ;;  %4610 = vmatpush3.msra.mxu1 %v7302_v47  ;;  %v7325_v47 = vld [vmem:[#allocation8 + $0x90] sm:$0xff] }
 0x325   : > { %1802 = vmatmul.mubr.f32.gmra.mxu0 %v1661_v53  ;;  %1963 = vmatmul.mubr.f32.gmra.mxu1 %v1661_v53  ;;  %v9621_v53 = vld [vmem:[#allocation23_spill] sm:$0xff] }
 0x326   : > { %1807 = vmatprep.mubr.f32.mxu0 %v9589_v52  ;;  %1968 = vmatprep.mubr.f32.mxu1 %v9589_v52  ;;  %v1663_v11 = vmul.f32 2.0, %v9621_v53  ;;  %9622 = vst [vmem:[#allocation23_spill] sm:$0xff] %v7332_v10  ;;  %v7342_v53 = vld [vmem:[#allocation8 + $0x188] sm:$0xff] }
 0x327   : > { %4531 = vmatprep.subr.mxu0 %v7310_v22  ;;  %4611 = vmatprep.subr.mxu1 %v7312_v46  ;;  %9623 = vst [vmem:[#allocation210_spill] sm:$0xff] %v7342_v53 }
 0x328   : > { %4532 = vmatpush3.msra.mxu0 %v7315_v17  ;;  %4612 = vmatpush3.msra.mxu1 %v7317_v50  ;;  %v7340_v50 = vld [vmem:[#allocation8 + $0x88] sm:$0xff] }
 0x329   : > { %1808 = vmatmul.mubr.f32.gmra.mxu0 %v1662_v24  ;;  %1969 = vmatmul.mubr.f32.gmra.mxu1 %v1662_v24  ;;  %v9624_v24 = vld [vmem:[#allocation24_spill] sm:$0xff] }
 0x32a   : > { %1813 = vmatprep.mubr.f32.mxu0 %v9589_v52  ;;  %1974 = vmatprep.mubr.f32.mxu1 %v9589_v52  ;;  %v1664_v46 = vmul.f32 2.0, %v9624_v24  ;;  %9625 = vst [vmem:[#allocation24_spill] sm:$0xff] %v7347_v54  ;;  %v7355_v24 = vld [vmem:[#allocation8 + $0x80] sm:$0xff] }
 0x32b   : > { %4533 = vmatprep.subr.mxu0 %v7325_v47  ;;  %4613 = vmatprep.subr.mxu1 %v7327_v25  ;;  %v7361_v25 = vld [vmem:[#allocation8 + $0x100] sm:$0xff] }
 0x32c   : > { %4534 = vmatpush3.msra.mxu0 %v7330_v30  ;;  %4614 = vmatpush3.msra.mxu1 %v7332_v10  ;;  %v7359_v10 = vld [vmem:[#allocation8] sm:$0xff]  ;;  %9626 = vst [vmem:[#allocation211_spill] sm:$0xff] %v7361_v25 }
 0x32d   : > { %1814 = vmatmul.mubr.f32.gmra.mxu0 %v1663_v11  ;;  %1975 = vmatmul.mubr.f32.gmra.mxu1 %v1663_v11  ;;  %v7357_v11 = vld [vmem:[#allocation8 + $0x180] sm:$0xff] }
 0x32e   : > { %1819 = vmatprep.mubr.f32.mxu0 %v9589_v52  ;;  %1980 = vmatprep.mubr.f32.mxu1 %v9589_v52  ;;  %v9627_v52 = vld [vmem:[#allocation92_spill] sm:$0xff] }
 0x32f   : > { %4535 = vmatprep.subr.mxu0 %v7340_v50  ;;  %4615 = vmatprep.subr.mxu1 %v7342_v53  ;;  %v7366_v53 = vld [vmem:[%s6045_s5] sm:$0xff] }
 0x330   : > { %4536 = vmatpush3.msra.mxu0 %v7345_v48  ;;  %4616 = vmatpush3.msra.mxu1 %v7347_v54  ;;  %v1118_v54 = vsub.f32 %v9628_v20, %v7366_v53  ;;  %v9630_v20 = vld [vmem:[#allocation28_spill] sm:$0xff] }
 0x331   : > { %1820 = vmatmul.mubr.f32.gmra.mxu0 %v1664_v46  ;;  %1981 = vmatmul.mubr.f32.gmra.mxu1 %v1664_v46  ;;  %v7374_v46 = vld [vmem:[#allocation8 + $0x278] sm:$0xff] }
 0x332   : > { %2346 = vmatprep.mubr.f32.mxu0 %v9627_v52  ;;  %2491 = vmatprep.mubr.f32.mxu1 %v6937_v3  ;;  %v9629_v3 = vld [vmem:[#allocation96_spill] sm:$0xff]  ;;  %v7380_v52 = vld [vmem:[%s6045_s5 + $0x20] sm:$0xff] }
 0x333   : > { %4537 = vmatprep.subr.mxu0 %v7355_v24  ;;  %4617 = vmatprep.subr.mxu1 %v7357_v11  ;;  %v1122_v38 = vsub.f32 %v9630_v20, %v7380_v52 }
 0x334   : > { %4538 = vmatpush3.msra.mxu0 %v7359_v10  ;;  %4618 = vmatpush3.msra.mxu1 %v7361_v25  ;;  %v7388_v25 = vld [vmem:[#allocation8 + $0x270] sm:$0xff] }
 0x335   : > { %2347 = vmatmul.mubr.f32.vlgmr.msra.gmra.mxu0 %v7366_v53  ;;  %2492 = vmatmul.mubr.f32.vlgmr.msra.gmra.mxu1 %v1118_v54  ;;  %v7394_v54 = vld [vmem:[%s6045_s5 + $0x40] sm:$0xff] }
 0x336   : > { %2351 = vmatprep.mubr.f32.mxu0 %v9629_v3  ;;  %2496 = vmatprep.mubr.f32.mxu1 %v6945_v6  ;;  %v9631_v6 = vld [vmem:[#allocation100_spill] sm:$0xff] }
 0x337   : > { %4699 = vmatprep.subr.mxu1 %v7130_v0  ;;  %5275 = vmatprep.subr.mxu0 %v7374_v46  ;;  %v9632_v0 = vld [vmem:[#allocation31_spill] sm:$0xff] }
 0x338   : > { %4700 = vmatpush3.msra.mxu1 %v7135_v55  ;;  %5276 = vmatpush3.msra.mxu0 %v7374_v46  ;;  %v1126_v3 = vsub.f32 %v9632_v0, %v7394_v54  ;;  %v7402_v55 = vld [vmem:[#allocation8 + $0x268] sm:$0xff] }
 0x339   : > { %2352 = vmatmul.mubr.f32.gmra.mxu0 %v7380_v52  ;;  %2497 = vmatmul.mubr.f32.gmra.mxu1 %v1122_v38  ;;  %v7408_v38 = vld [vmem:[%s6045_s5 + $0x60] sm:$0xff] }
 0x33a   : > { %2356 = vmatprep.mubr.f32.mxu0 %v9631_v6  ;;  %2501 = vmatprep.mubr.f32.mxu1 %v6953_v9  ;;  %v9633_v9 = vld [vmem:[#allocation104_spill] sm:$0xff]  ;;  %v7422_v6 = vld [vmem:[%s6045_s5 + $0x80] sm:$0xff] }
 0x33b   : > { %4701 = vmatprep.subr.mxu1 %v7145_v36  ;;  %5277 = vmatprep.subr.mxu0 %v7388_v25  ;;  %v9634_v36 = vld [vmem:[#allocation34_spill] sm:$0xff] }
 0x33c   : > { %4702 = vmatpush3.msra.mxu1 %v7150_v43  ;;  %5278 = vmatpush3.msra.mxu0 %v7388_v25  ;;  %v1130_v20 = vsub.f32 %v9634_v36, %v7408_v38  ;;  %v7416_v43 = vld [vmem:[#allocation8 + $0x260] sm:$0xff] }
 0x33d   : > { %2357 = vmatmul.mubr.f32.gmra.mxu0 %v7394_v54  ;;  %2502 = vmatmul.mubr.f32.gmra.mxu1 %v1126_v3  ;;  %v7436_v3 = vld [vmem:[%s6045_s5 + $0xa0] sm:$0xff] }
 0x33e   : > { %2361 = vmatprep.mubr.f32.mxu0 %v9633_v9  ;;  %2506 = vmatprep.mubr.f32.mxu1 %v6961_v41  ;;  %v9635_v41 = vld [vmem:[#allocation108_spill] sm:$0xff]  ;;  %v7450_v36 = vld [vmem:[%s6045_s5 + $0xc0] sm:$0xff] }
 0x33f   : > { %4703 = vmatprep.subr.mxu1 %v7160_v59  ;;  %5279 = vmatprep.subr.mxu0 %v7402_v55  ;;  %v9636_v59 = vld [vmem:[#allocation37_spill] sm:$0xff] }
 0x340   : > { %4704 = vmatpush3.msra.mxu1 %v7165_v35  ;;  %5280 = vmatpush3.msra.mxu0 %v7402_v55  ;;  %v1134_v0 = vsub.f32 %v9636_v59, %v7422_v6  ;;  %v7430_v35 = vld [vmem:[#allocation8 + $0x258] sm:$0xff] }
 0x341   : > { %2362 = vmatmul.mubr.f32.gmra.mxu0 %v7408_v38  ;;  %2507 = vmatmul.mubr.f32.gmra.mxu1 %v1130_v20 }
 0x342   : > { %2366 = vmatprep.mubr.f32.mxu0 %v9635_v41  ;;  %2511 = vmatprep.mubr.f32.mxu1 %v6969_v1  ;;  %v9637_v1 = vld [vmem:[#allocation112_spill] sm:$0xff]  ;;  %v7464_v41 = vld [vmem:[%s6045_s5 + $0xe0] sm:$0xff] }
 0x343   : > { %4705 = vmatprep.subr.mxu1 %v7175_v4  ;;  %5281 = vmatprep.subr.mxu0 %v7416_v43  ;;  %v9638_v4 = vld [vmem:[#allocation84_spill] sm:$0xff] }
 0x344   : > { %4706 = vmatpush3.msra.mxu1 %v7180_v13  ;;  %5282 = vmatpush3.msra.mxu0 %v7416_v43  ;;  %v1138_v9 = vsub.f32 %v9638_v4, %v7436_v3  ;;  %v7444_v13 = vld [vmem:[#allocation8 + $0x250] sm:$0xff]  ;;  %v7492_v4 = vld [vmem:[%s6045_s5 + $0x120] sm:$0xff] }
 0x345   : > { %2367 = vmatmul.mubr.f32.gmra.mxu0 %v7422_v6  ;;  %2512 = vmatmul.mubr.f32.gmra.mxu1 %v1134_v0  ;;  %v7478_v0 = vld [vmem:[%s6045_s5 + $0x100] sm:$0xff] }
 0x346   : > { %2371 = vmatprep.mubr.f32.mxu0 %v9637_v1  ;;  %2516 = vmatprep.mubr.f32.mxu1 %v6977_v8  ;;  %v9639_v8 = vld [vmem:[#allocation116_spill] sm:$0xff] }
 0x347   : > { %4707 = vmatprep.subr.mxu1 %v7190_v12  ;;  %5283 = vmatprep.subr.mxu0 %v7430_v35  ;;  %v9640_v12 = vld [vmem:[#allocation44_spill] sm:$0xff] }
 0x348   : > { %4708 = vmatpush3.msra.mxu1 %v7195_v21  ;;  %5284 = vmatpush3.msra.mxu0 %v7430_v35  ;;  %v1142_v20 = vsub.f32 %v9640_v12, %v7450_v36  ;;  %v7458_v21 = vld [vmem:[#allocation8 + $0x248] sm:$0xff] }
 0x349   : > { %2372 = vmatmul.mubr.f32.gmra.mxu0 %v7436_v3  ;;  %2517 = vmatmul.mubr.f32.gmra.mxu1 %v1138_v9 }
 0x34a   : > { %2376 = vmatprep.mubr.f32.mxu0 %v9639_v8  ;;  %2521 = vmatprep.mubr.f32.mxu1 %v6985_v14  ;;  %v9641_v14 = vld [vmem:[#allocation120_spill] sm:$0xff]  ;;  %v7506_v8 = vld [vmem:[%s6045_s5 + $0x140] sm:$0xff] }
 0x34b   : > { %4709 = vmatprep.subr.mxu1 %v7205_v26  ;;  %5285 = vmatprep.subr.mxu0 %v7444_v13  ;;  %v9642_v26 = vld [vmem:[#allocation47_spill] sm:$0xff] }
 0x34c   : > { %4710 = vmatpush3.msra.mxu1 %v7210_v39  ;;  %5286 = vmatpush3.msra.mxu0 %v7444_v13  ;;  %v1146_v59 = vsub.f32 %v9642_v26, %v7464_v41  ;;  %v7472_v39 = vld [vmem:[#allocation8 + $0x240] sm:$0xff] }
 0x34d   : > { %2377 = vmatmul.mubr.f32.gmra.mxu0 %v7450_v36  ;;  %2522 = vmatmul.mubr.f32.gmra.mxu1 %v1142_v20  ;;  %v7520_v20 = vld [vmem:[%s6045_s5 + $0x160] sm:$0xff] }
 0x34e   : > { %2381 = vmatprep.mubr.f32.mxu0 %v9641_v14  ;;  %2526 = vmatprep.mubr.f32.mxu1 %v6993_v60  ;;  %v9643_v60 = vld [vmem:[#allocation124_spill] sm:$0xff]  ;;  %v7534_v26 = vld [vmem:[%s6045_s5 + $0x180] sm:$0xff] }
 0x34f   : > { %4711 = vmatprep.subr.mxu1 %v7220_v34  ;;  %5287 = vmatprep.subr.mxu0 %v7458_v21  ;;  %v9644_v34 = vld [vmem:[#allocation50_spill] sm:$0xff] }
 0x350   : > { %4712 = vmatpush3.msra.mxu1 %v7225_v49  ;;  %5288 = vmatpush3.msra.mxu0 %v7458_v21  ;;  %v1150_v1 = vsub.f32 %v9644_v34, %v7478_v0  ;;  %v7486_v49 = vld [vmem:[#allocation8 + $0x238] sm:$0xff] }
 0x351   : > { %2382 = vmatmul.mubr.f32.gmra.mxu0 %v7464_v41  ;;  %2527 = vmatmul.mubr.f32.gmra.mxu1 %v1146_v59 }
 0x352   : > { %2386 = vmatprep.mubr.f32.mxu0 %v9643_v60  ;;  %2531 = vmatprep.mubr.f32.mxu1 %v7001_v27  ;;  %v9645_v27 = vld [vmem:[#allocation128_spill] sm:$0xff]  ;;  %v7548_v60 = vld [vmem:[%s6045_s5 + $0x1a0] sm:$0xff] }
 0x353   : > { %4713 = vmatprep.subr.mxu1 %v7235_v42  ;;  %5289 = vmatprep.subr.mxu0 %v7472_v39  ;;  %v9646_v42 = vld [vmem:[#allocation53_spill] sm:$0xff] }
 0x354   : > { %4714 = vmatpush3.msra.mxu1 %v7240_v37  ;;  %5290 = vmatpush3.msra.mxu0 %v7472_v39  ;;  %v1154_v9 = vsub.f32 %v9646_v42, %v7492_v4  ;;  %v7500_v37 = vld [vmem:[#allocation8 + $0x230] sm:$0xff]  ;;  %v9657_v42 = vld [vmem:[#allocation152_spill] sm:$0xff] }
 0x355   : > { %2387 = vmatmul.mubr.f32.gmra.mxu0 %v7478_v0  ;;  %2532 = vmatmul.mubr.f32.gmra.mxu1 %v1150_v1  ;;  %v7562_v1 = vld [vmem:[%s6045_s5 + $0x1c0] sm:$0xff] }
 0x356   : > { %2391 = vmatprep.mubr.f32.mxu0 %v9645_v27  ;;  %2536 = vmatprep.mubr.f32.mxu1 %v7009_v33  ;;  %v9647_v33 = vld [vmem:[#allocation132_spill] sm:$0xff] }
 0x357   : > { %4715 = vmatprep.subr.mxu1 %v7250_v58  ;;  %5291 = vmatprep.subr.mxu0 %v7486_v49  ;;  %v9648_v58 = vld [vmem:[#allocation88_spill] sm:$0xff] }
 0x358   : > { %4716 = vmatpush3.msra.mxu1 %v7255_v29  ;;  %5292 = vmatpush3.msra.mxu0 %v7486_v49  ;;  %v1158_v12 = vsub.f32 %v9648_v58, %v7506_v8  ;;  %v7514_v29 = vld [vmem:[#allocation8 + $0x228] sm:$0xff] }
 0x359   : > { %2392 = vmatmul.mubr.f32.gmra.mxu0 %v7492_v4  ;;  %2537 = vmatmul.mubr.f32.gmra.mxu1 %v1154_v9  ;;  %v9667_v58 = vld [vmem:[#allocation126_spill] sm:$0xff] }
 0x35a   : > { %2396 = vmatprep.mubr.f32.mxu0 %v9647_v33  ;;  %2541 = vmatprep.mubr.f32.mxu1 %v7017_v40  ;;  %v9649_v40 = vld [vmem:[#allocation136_spill] sm:$0xff]  ;;  %v7657_v33 = vld [vmem:[%s6045_s5 + $0xe8] sm:$0xff] }
 0x35b   : > { %4717 = vmatprep.subr.mxu1 %v7265_v44  ;;  %5293 = vmatprep.subr.mxu0 %v7500_v37  ;;  %v9650_v44 = vld [vmem:[#allocation60_spill] sm:$0xff] }
 0x35c   : > { %4718 = vmatpush3.msra.mxu1 %v7270_v19  ;;  %5294 = vmatpush3.msra.mxu0 %v7500_v37  ;;  %v1162_v14 = vsub.f32 %v9650_v44, %v7520_v20  ;;  %v7528_v19 = vld [vmem:[#allocation8 + $0x220] sm:$0xff]  ;;  %v9669_v44 = vld [vmem:[#allocation134_spill] sm:$0xff] }
 0x35d   : > { %2397 = vmatmul.mubr.f32.gmra.mxu0 %v7506_v8  ;;  %2542 = vmatmul.mubr.f32.gmra.mxu1 %v1158_v12  ;;  %v7666_v12 = vld [vmem:[%s6045_s5 + $0x108] sm:$0xff] }
 0x35e   : > { %2401 = vmatprep.mubr.f32.mxu0 %v9649_v40  ;;  %2546 = vmatprep.mubr.f32.mxu1 %v7025_v45  ;;  %v9651_v45 = vld [vmem:[#allocation140_spill] sm:$0xff]  ;;  %v7672_v40 = vld [vmem:[%s6045_s5 + $0x128] sm:$0xff] }
 0x35f   : > { %4719 = vmatprep.subr.mxu1 %v7280_v16  ;;  %5295 = vmatprep.subr.mxu0 %v7514_v29  ;;  %v9652_v16 = vld [vmem:[#allocation63_spill] sm:$0xff] }
 0x360   : > { %4720 = vmatpush3.msra.mxu1 %v7285_v2  ;;  %5296 = vmatpush3.msra.mxu0 %v7514_v29  ;;  %v1166_v59 = vsub.f32 %v9652_v16, %v7534_v26  ;;  %v7542_v2 = vld [vmem:[#allocation8 + $0x218] sm:$0xff]  ;;  %v7687_v16 = vld [vmem:[%s6045_s5 + $0x188] sm:$0xff] }
 0x361   : > { %2402 = vmatmul.mubr.f32.gmra.mxu0 %v7520_v20  ;;  %2547 = vmatmul.mubr.f32.gmra.mxu1 %v1162_v14  ;;  %v7677_v14 = vld [vmem:[%s6045_s5 + $0x148] sm:$0xff] }
 0x362   : > { %2406 = vmatprep.mubr.f32.mxu0 %v9651_v45  ;;  %2551 = vmatprep.mubr.f32.mxu1 %v7033_v23  ;;  %v9653_v23 = vld [vmem:[#allocation144_spill] sm:$0xff]  ;;  %v7682_v45 = vld [vmem:[%s6045_s5 + $0x168] sm:$0xff] }
 0x363   : > { %4721 = vmatprep.subr.mxu1 %v7295_v56  ;;  %5297 = vmatprep.subr.mxu0 %v7528_v19  ;;  %v9654_v56 = vld [vmem:[#allocation66_spill] sm:$0xff] }
 0x364   : > { %4722 = vmatpush3.msra.mxu1 %v7300_v63  ;;  %5298 = vmatpush3.msra.mxu0 %v7528_v19  ;;  %v1170_v34 = vsub.f32 %v9654_v56, %v7548_v60  ;;  %v7556_v63 = vld [vmem:[#allocation8 + $0x210] sm:$0xff]  ;;  %v7697_v56 = vld [vmem:[%s6045_s5 + $0x1c8] sm:$0xff] }
 0x365   : > { %2407 = vmatmul.mubr.f32.gmra.mxu0 %v7534_v26  ;;  %2552 = vmatmul.mubr.f32.gmra.mxu1 %v1166_v59  ;;  %v9672_v59 = vld [vmem:[#allocation146_spill] sm:$0xff] }
 0x366   : > { %2411 = vmatprep.mubr.f32.mxu0 %v9653_v23  ;;  %2556 = vmatprep.mubr.f32.mxu1 %v7041_v61  ;;  %v9655_v61 = vld [vmem:[#allocation148_spill] sm:$0xff]  ;;  %v9673_v23 = vld [vmem:[#allocation150_spill] sm:$0xff] }
 0x367   : > { %4723 = vmatprep.subr.mxu1 %v7310_v22  ;;  %5299 = vmatprep.subr.mxu0 %v7542_v2  ;;  %v9656_v22 = vld [vmem:[#allocation69_spill] sm:$0xff] }
 0x368   : > { %4724 = vmatpush3.msra.mxu1 %v7315_v17  ;;  %5300 = vmatpush3.msra.mxu0 %v7542_v2  ;;  %v1174_v27 = vsub.f32 %v9656_v22, %v7562_v1  ;;  %v7570_v17 = vld [vmem:[#allocation8 + $0x208] sm:$0xff] }
 0x369   : > { %2412 = vmatmul.mubr.f32.gmra.mxu0 %v7548_v60  ;;  %2557 = vmatmul.mubr.f32.gmra.mxu1 %v1170_v34  ;;  %v9674_v34 = vld [vmem:[#allocation154_spill] sm:$0xff] }
 0x36a   : > { %2416 = vmatprep.mubr.f32.mxu0 %v9655_v61  ;;  %2561 = vmatprep.mubr.f32.mxu1 %v7049_v5  ;;  %v7576_v5 = vld [vmem:[%s6045_s5 + $0x1e0] sm:$0xff] }
 0x36b   : > { %4725 = vmatprep.subr.mxu1 %v7325_v47  ;;  %5301 = vmatprep.subr.mxu0 %v7556_v63  ;;  %v9658_v47 = vld [vmem:[#allocation73_spill] sm:$0xff] }
 0x36c   : > { %4726 = vmatpush3.msra.mxu1 %v7330_v30  ;;  %5302 = vmatpush3.msra.mxu0 %v7556_v63  ;;  %v1178_v9 = vsub.f32 %v9658_v47, %v7576_v5  ;;  %v7584_v30 = vld [vmem:[#allocation8 + $0x200] sm:$0xff] }
 0x36d   : > { %2417 = vmatmul.mubr.f32.gmra.mxu0 %v7562_v1  ;;  %2562 = vmatmul.mubr.f32.gmra.mxu1 %v1174_v27 }
 0x36e   : > { %2421 = vmatprep.mubr.f32.mxu0 %v9657_v42  ;;  %2566 = vmatprep.mubr.f32.mxu1 %v7057_v7  ;;  %v9659_v7 = vld [vmem:[#allocation94_spill] sm:$0xff] }
 0x36f   : > { %4727 = vmatprep.subr.mxu1 %v7340_v50  ;;  %5303 = vmatprep.subr.mxu0 %v7570_v17  ;;  %v9660_v50 = vld [vmem:[#allocation98_spill] sm:$0xff] }
 0x370   : > { %4728 = vmatpush3.msra.mxu1 %v7345_v48  ;;  %5304 = vmatpush3.msra.mxu0 %v7570_v17  ;;  %v7594_v48 = vld [vmem:[%s6045_s5 + $0x8] sm:$0xff] }
 0x371   : > { %2422 = vmatmul.mubr.f32.gmra.mxu0 %v7576_v5  ;;  %2567 = vmatmul.mubr.f32.gmra.mxu1 %v1178_v9 }
 0x372   : > { %2877 = vmatprep.mubr.f32.mxu1 %v9659_v7  ;;  %4729 = vmatprep.subr.mxu1 %v7355_v24  ;;  %v9661_v24 = vld [vmem:[#allocation102_spill] sm:$0xff] }
 0x373   : > { %4730 = vmatpush3.msra.mxu1 %v7359_v10  ;;  %5305 = vmatprep.subr.mxu0 %v7584_v30  ;;  %v7603_v10 = vld [vmem:[%s6045_s5 + $0x28] sm:$0xff] }
 0x374   : > { %5331 = vmatprep.subr.mxu1 %v7374_v46  ;;  %5306 = vmatpush3.msra.mxu0 %v7584_v30 }
 0x375   : > { %2878 = vmatmul.mubr.f32.vlgmr.msra.gmra.mxu1 %v7594_v48  ;;  %4779 = vmatprep.subr.mxu0 %v7132_v18 }
 0x376   : > { %2882 = vmatprep.mubr.f32.mxu1 %v9660_v50  ;;  %5332 = vmatpush3.msra.mxu1 %v7374_v46  ;;  %v7612_v46 = vld [vmem:[%s6045_s5 + $0x48] sm:$0xff] }
 0x377   : > { %5333 = vmatprep.subr.mxu1 %v7388_v25 }
 0x378   : > { %5334 = vmatpush3.msra.mxu1 %v7388_v25  ;;  %v9662_v25 = vld [vmem:[#allocation106_spill] sm:$0xff] }
 0x379   : > { %2883 = vmatmul.mubr.f32.gmra.mxu1 %v7603_v10  ;;  %5335 = vmatprep.subr.mxu1 %v7402_v55 }
 0x37a   : > { %2887 = vmatprep.mubr.f32.mxu1 %v9661_v24  ;;  %5336 = vmatpush3.msra.mxu1 %v7402_v55  ;;  %v7621_v55 = vld [vmem:[%s6045_s5 + $0x68] sm:$0xff] }
 0x37b   : > { %5337 = vmatprep.subr.mxu1 %v7416_v43 }
 0x37c   : > { %5338 = vmatpush3.msra.mxu1 %v7416_v43  ;;  %v9663_v43 = vld [vmem:[#allocation110_spill] sm:$0xff] }
 0x37d   : > { %2888 = vmatmul.mubr.f32.gmra.mxu1 %v7612_v46  ;;  %5339 = vmatprep.subr.mxu1 %v7430_v35 }
 0x37e   : > { %2892 = vmatprep.mubr.f32.mxu1 %v9662_v25  ;;  %5340 = vmatpush3.msra.mxu1 %v7430_v35  ;;  %v7630_v35 = vld [vmem:[%s6045_s5 + $0x88] sm:$0xff] }
 0x37f   : > { %5341 = vmatprep.subr.mxu1 %v7444_v13 }
 0x380   : > { %5342 = vmatpush3.msra.mxu1 %v7444_v13  ;;  %v9664_v13 = vld [vmem:[#allocation114_spill] sm:$0xff] }
 0x381   : > { %2893 = vmatmul.mubr.f32.gmra.mxu1 %v7621_v55  ;;  %5343 = vmatprep.subr.mxu1 %v7458_v21 }
 0x382   : > { %2897 = vmatprep.mubr.f32.mxu1 %v9663_v43  ;;  %5344 = vmatpush3.msra.mxu1 %v7458_v21  ;;  %v7639_v21 = vld [vmem:[%s6045_s5 + $0xa8] sm:$0xff] }
 0x383   : > { %5345 = vmatprep.subr.mxu1 %v7472_v39 }
 0x384   : > { %5346 = vmatpush3.msra.mxu1 %v7472_v39  ;;  %v9665_v39 = vld [vmem:[#allocation118_spill] sm:$0xff] }
 0x385   : > { %2898 = vmatmul.mubr.f32.gmra.mxu1 %v7630_v35  ;;  %5347 = vmatprep.subr.mxu1 %v7486_v49 }
 0x386   : > { %2902 = vmatprep.mubr.f32.mxu1 %v9664_v13  ;;  %5348 = vmatpush3.msra.mxu1 %v7486_v49  ;;  %v7648_v49 = vld [vmem:[%s6045_s5 + $0xc8] sm:$0xff] }
 0x387   : > { %5349 = vmatprep.subr.mxu1 %v7500_v37 }
 0x388   : > { %5350 = vmatpush3.msra.mxu1 %v7500_v37  ;;  %v9666_v37 = vld [vmem:[#allocation122_spill] sm:$0xff] }
 0x389   : > { %2903 = vmatmul.mubr.f32.gmra.mxu1 %v7639_v21  ;;  %5351 = vmatprep.subr.mxu1 %v7514_v29 }
 0x38a   : > { %2907 = vmatprep.mubr.f32.mxu1 %v9665_v39  ;;  %5352 = vmatpush3.msra.mxu1 %v7514_v29  ;;  %v9668_v29 = vld [vmem:[#allocation130_spill] sm:$0xff] }
 0x38b   : > { %5353 = vmatprep.subr.mxu1 %v7528_v19 }
 0x38c   : > { %5354 = vmatpush3.msra.mxu1 %v7528_v19  ;;  %v9670_v19 = vld [vmem:[#allocation138_spill] sm:$0xff] }
 0x38d   : > { %2908 = vmatmul.mubr.f32.gmra.mxu1 %v7648_v49  ;;  %5355 = vmatprep.subr.mxu1 %v7542_v2 }
 0x38e   : > { %2912 = vmatprep.mubr.f32.mxu1 %v9666_v37  ;;  %5356 = vmatpush3.msra.mxu1 %v7542_v2  ;;  %v7692_v2 = vld [vmem:[%s6045_s5 + $0x1a8] sm:$0xff] }
 0x38f   : > { %5357 = vmatprep.subr.mxu1 %v7556_v63 }
 0x390   : > { %5358 = vmatpush3.msra.mxu1 %v7556_v63  ;;  %v7702_v63 = vld [vmem:[%s6045_s5 + $0x1e8] sm:$0xff] }
 0x391   : > { %2913 = vmatmul.mubr.f32.gmra.mxu1 %v7657_v33  ;;  %5359 = vmatprep.subr.mxu1 %v7570_v17 }
 0x392   : > { %2917 = vmatprep.mubr.f32.mxu1 %v9667_v58  ;;  %5360 = vmatpush3.msra.mxu1 %v7570_v17 }
 0x393   : > { %5361 = vmatprep.subr.mxu1 %v7584_v30 }
 0x394   : > { %5362 = vmatpush3.msra.mxu1 %v7584_v30 }
 0x395   : > { %2918 = vmatmul.mubr.f32.gmra.mxu1 %v7666_v12  ;;  %4971 = vmatprep.subr.mxu1 %v7132_v18  ;;  %v9671_v18 = vld [vmem:[#allocation142_spill] sm:$0xff] }
 0x396   : > { %2922 = vmatprep.mubr.f32.mxu1 %v9668_v29 }
 0x399   : > { %2923 = vmatmul.mubr.f32.gmra.mxu1 %v7672_v40 }
 0x39a   : > { %2927 = vmatprep.mubr.f32.mxu1 %v9669_v44 }
 0x39d   : > { %2928 = vmatmul.mubr.f32.gmra.mxu1 %v7677_v14 }
 0x39e   : > { %2932 = vmatprep.mubr.f32.mxu1 %v9670_v19 }
 0x3a1   : > { %2933 = vmatmul.mubr.f32.gmra.mxu1 %v7682_v45 }
 0x3a2   : > { %2937 = vmatprep.mubr.f32.mxu1 %v9671_v18 }
 0x3a5   : > { %2938 = vmatmul.mubr.f32.gmra.mxu1 %v7687_v16 }
 0x3a6   : > { %2942 = vmatprep.mubr.f32.mxu1 %v9672_v59 }
 0x3a9   : > { %2943 = vmatmul.mubr.f32.gmra.mxu1 %v7692_v2 }
 0x3aa   : > { %2947 = vmatprep.mubr.f32.mxu1 %v9673_v23 }
 0x3ad   : > { %2948 = vmatmul.mubr.f32.gmra.mxu1 %v7697_v56 }
 0x3ae   : > { %2952 = vmatprep.mubr.f32.mxu1 %v9674_v34  ;;  %v9677_v34 = vld [vmem:[#allocation14_spill] sm:$0xff] }
 0x3b1   : > { %2953 = vmatmul.mubr.f32.gmra.mxu1 %v7702_v63 }
 0x3b5   : > { %v1731_v61 = vpop.f32.mrf.mxu0  ;;  %v7705_v22 = vpop.f32.mrf.mxu1 }
 0x3b6   : > { %v1987_v27 = vsub.f32 %v1731_v61, %v7366_v53 }
 0x3b7   : > { %v1733_v17 = vpop.f32.mrf.mxu0  ;;  %v7708_v42 = vpop.f32.mrf.mxu1 }
 0x3b8   : > { %v1988_v47 = vsub.f32 %v1733_v17, %v7594_v48  ;;  %5307 = vmatprep.mubr.f32.mxu0 %v1987_v27 }
 0x3b9   : > { %v1737_v9 = vpop.f32.mrf.mxu0  ;;  %v7711_v30 = vpop.f32.mrf.mxu1 }
 0x3ba   : > { %v1991_v7 = vsub.f32 %v1737_v9, %v7380_v52  ;;  %5363 = vmatprep.mubr.f32.mxu1 %v1988_v47 }
 0x3bb   : > { %v1739_v50 = vpop.f32.mrf.mxu0  ;;  %v7714_v24 = vpop.f32.mrf.mxu1 }
 0x3bc   : > { %v1992_v25 = vsub.f32 %v1739_v50, %v7603_v10  ;;  %5308 = vmatmul.mubr.f32.vlgmr.msra.gmra.mxu0 %v1991_v7 }
 0x3bd   : > { %v1743_v43 = vpop.f32.mrf.mxu0  ;;  %v7717_v53 = vpop.f32.mrf.mxu1  ;;  %4780 = vmatpush3.msra.mxu0 %v7137_v51 }
 0x3be   : > { %v1995_v13 = vsub.f32 %v1743_v43, %v7394_v54  ;;  %4781 = vmatprep.subr.mxu0 %v7147_v62  ;;  %5364 = vmatmul.mubr.f32.vlgmr.msra.gmra.mxu1 %v1992_v25  ;;  %v9680_v25 = vld [vmem:[#allocation78_spill] sm:$0xff]  ;;  %v9681_v43 = vld [vmem:[#allocation17_spill] sm:$0xff] }
 0x3bf   : > { %v1745_v39 = vpop.f32.mrf.mxu0  ;;  %v7722_v37 = vpop.f32.mrf.mxu1  ;;  %4782 = vmatpush3.msra.mxu0 %v7152_v28  ;;  %4972 = vmatpush3.msra.mxu1 %v7137_v51 }
 0x3c0   : > { %v1996_v52 = vsub.f32 %v1745_v39, %v7612_v46  ;;  %5310 = vmatprep.mubr.f32.mxu0 %v1995_v13  ;;  %4783 = vmatprep.subr.mxu0 %v7162_v57 }
 0x3c1   : > { %v1749_v58 = vpop.f32.mrf.mxu0  ;;  %v7728_v29 = vpop.f32.mrf.mxu1  ;;  %4973 = vmatprep.subr.mxu1 %v7147_v62  ;;  %4784 = vmatpush3.msra.mxu0 %v7167_v32 }
 0x3c2   : > { %v1999_v54 = vsub.f32 %v1749_v58, %v7408_v38  ;;  %5366 = vmatprep.mubr.f32.mxu1 %v1996_v52  ;;  %4974 = vmatpush3.msra.mxu1 %v7152_v28  ;;  %v9675_v38 = vld [vmem:[#allocation77_spill] sm:$0xff]  ;;  %v9682_v52 = vld [vmem:[#allocation18_spill] sm:$0xff] }
 0x3c3   : > { %v1751_v44 = vpop.f32.mrf.mxu0  ;;  %v7734_v19 = vpop.f32.mrf.mxu1  ;;  %4785 = vmatprep.subr.mxu0 %v7177_v31  ;;  %4975 = vmatprep.subr.mxu1 %v7162_v57  ;;  %v9676_v57 = vld [vmem:[#allocation13_spill] sm:$0xff] }
 0x3c4   : > { %v2000_v51 = vsub.f32 %v1751_v44, %v7621_v55  ;;  %5311 = vmatmul.mubr.f32.gmra.mxu0 %v1999_v54  ;;  %4976 = vmatpush3.msra.mxu1 %v7167_v32  ;;  %v9683_v54 = vld [vmem:[#allocation204_spill] sm:$0xff] }
 0x3c5   : > { %v1755_v62 = vpop.f32.mrf.mxu0  ;;  %v7740_v18 = vpop.f32.mrf.mxu1  ;;  %4786 = vmatpush3.msra.mxu0 %v7182_v15  ;;  %4977 = vmatprep.subr.mxu1 %v7177_v31  ;;  %v9678_v31 = vld [vmem:[#allocation15_spill] sm:$0xff] }
 0x3c6   : > { %v2003_v28 = vsub.f32 %v1755_v62, %v7422_v6  ;;  %5367 = vmatmul.mubr.f32.gmra.mxu1 %v2000_v51  ;;  %4787 = vmatprep.subr.mxu0 %v9675_v38 }
 0x3c7   : > { %v1757_v59 = vpop.f32.mrf.mxu0  ;;  %v7746_v23 = vpop.f32.mrf.mxu1  ;;  %4788 = vmatpush3.msra.mxu0 %v9676_v57  ;;  %4978 = vmatpush3.msra.mxu1 %v7182_v15  ;;  %v9679_v15 = vld [vmem:[#allocation16_spill] sm:$0xff] }
 0x3c8   : > { %v2004_v32 = vsub.f32 %v1757_v59, %v7630_v35  ;;  %5313 = vmatprep.mubr.f32.mxu0 %v2003_v28  ;;  %4789 = vmatprep.subr.mxu0 %v9677_v34  ;;  %v9686_v59 = vld [vmem:[#allocation205_spill] sm:$0xff] }
 0x3c9   : > { %v1761_v61 = vpop.f32.mrf.mxu0  ;;  %v7752_v27 = vpop.f32.mrf.mxu1  ;;  %4979 = vmatprep.subr.mxu1 %v9675_v38  ;;  %4790 = vmatpush3.msra.mxu0 %v9678_v31 }
 0x3ca   : > { %v2007_v6 = vsub.f32 %v1761_v61, %v7436_v3  ;;  %5369 = vmatprep.mubr.f32.mxu1 %v2004_v32  ;;  %4980 = vmatpush3.msra.mxu1 %v9676_v57  ;;  %v9687_v61 = vld [vmem:[#allocation20_spill] sm:$0xff] }
 0x3cb   : > { %v1763_v17 = vpop.f32.mrf.mxu0  ;;  %v7758_v47 = vpop.f32.mrf.mxu1  ;;  %4791 = vmatprep.subr.mxu0 %v9679_v15  ;;  %4981 = vmatprep.subr.mxu1 %v9677_v34 }
 0x3cc   : > { %v2008_v9 = vsub.f32 %v1763_v17, %v7639_v21  ;;  %5314 = vmatmul.mubr.f32.gmra.mxu0 %v2007_v6  ;;  %4982 = vmatpush3.msra.mxu1 %v9678_v31  ;;  %v9688_v31 = vld [vmem:[#allocation206_spill] sm:$0xff] }
 0x3cd   : > { %v1767_v7 = vpop.f32.mrf.mxu0  ;;  %v7764_v50 = vpop.f32.mrf.mxu1  ;;  %4792 = vmatpush3.msra.mxu0 %v9680_v25  ;;  %4983 = vmatprep.subr.mxu1 %v9679_v15  ;;  %v9690_v15 = vld [vmem:[#allocation79_spill] sm:$0xff] }
 0x3ce   : > { %v2011_v3 = vsub.f32 %v1767_v7, %v7450_v36  ;;  %5370 = vmatmul.mubr.f32.gmra.mxu1 %v2008_v9  ;;  %4793 = vmatprep.subr.mxu0 %v9681_v43  ;;  %v9684_v36 = vld [vmem:[#allocation19_spill] sm:$0xff] }
 0x3cf   : > { %v1769_v13 = vpop.f32.mrf.mxu0  ;;  %v7770_v39 = vpop.f32.mrf.mxu1  ;;  %4794 = vmatpush3.msra.mxu0 %v9682_v52  ;;  %4984 = vmatpush3.msra.mxu1 %v9680_v25  ;;  %v9691_v7 = vld [vmem:[#allocation207_spill] sm:$0xff] }
 0x3d0   : > { %v2012_v58 = vsub.f32 %v1769_v13, %v7648_v49  ;;  %5316 = vmatprep.mubr.f32.mxu0 %v2011_v3  ;;  %4795 = vmatprep.subr.mxu0 %v9683_v54 }
 0x3d1   : > { %v1773_v44 = vpop.f32.mrf.mxu0  ;;  %v7776_v51 = vpop.f32.mrf.mxu1  ;;  %4985 = vmatprep.subr.mxu1 %v9681_v43  ;;  %4796 = vmatpush3.msra.mxu0 %v9684_v36 }
 0x3d2   : > { %v2015_v62 = vsub.f32 %v1773_v44, %v7464_v41  ;;  %5372 = vmatprep.mubr.f32.mxu1 %v2012_v58  ;;  %4986 = vmatpush3.msra.mxu1 %v9682_v52  ;;  %v9695_v58 = vld [vmem:[#allocation208_spill] sm:$0xff] }
 0x3d3   : > { %v1775_v28 = vpop.f32.mrf.mxu0  ;;  %v7782_v38 = vpop.f32.mrf.mxu1  ;;  %4797 = vmatprep.subr.mxu0 %v9686_v59  ;;  %4987 = vmatprep.subr.mxu1 %v9683_v54 }
 0x3d4   : > { %9685 = vst [vmem:[#allocation92_spill] sm:$0xff] %v7782_v38  ;;  %v2016_v57 = vsub.f32 %v1775_v28, %v7657_v33  ;;  %5317 = vmatmul.mubr.f32.gmra.mxu0 %v2015_v62  ;;  %4988 = vmatpush3.msra.mxu1 %v9684_v36  ;;  %v9697_v62 = vld [vmem:[#allocation22_spill] sm:$0xff]  ;;  %v9698_v28 = vld [vmem:[#allocation209_spill] sm:$0xff] }
 0x3d5   : > { %v1779_v32 = vpop.f32.mrf.mxu0  ;;  %v7788_v34 = vpop.f32.mrf.mxu1  ;;  %4798 = vmatpush3.msra.mxu0 %v9687_v61  ;;  %4989 = vmatprep.subr.mxu1 %v9686_v59  ;;  %v9800_v38 = vld [vmem:[#allocation198_spill] sm:$0xff] }
 0x3d6   : > { %v2019_v41 = vsub.f32 %v1779_v32, %v7478_v0  ;;  %5373 = vmatmul.mubr.f32.gmra.mxu1 %v2016_v57  ;;  %4799 = vmatprep.subr.mxu0 %v9688_v31  ;;  %v9693_v0 = vld [vmem:[#allocation21_spill] sm:$0xff]  ;;  %v9700_v32 = vld [vmem:[#allocation23_spill] sm:$0xff] }
 0x3d7   : > { %v1781_v6 = vpop.f32.mrf.mxu0  ;;  %v7794_v17 = vpop.f32.mrf.mxu1  ;;  %4800 = vmatpush3.msra.mxu0 %v9690_v15  ;;  %4990 = vmatpush3.msra.mxu1 %v9687_v61 }
 0x3d8   : > { %9689 = vst [vmem:[#allocation80_spill] sm:$0xff] %v7794_v17  ;;  %v2020_v9 = vsub.f32 %v1781_v6, %v7666_v12  ;;  %5319 = vmatprep.mubr.f32.mxu0 %v2019_v41  ;;  %4801 = vmatprep.subr.mxu0 %v9691_v7  ;;  %v9701_v41 = vld [vmem:[#allocation210_spill] sm:$0xff]  ;;  %v9793_v17 = vld [vmem:[#allocation195_spill] sm:$0xff] }
 0x3d9   : > { %v1785_v25 = vpop.f32.mrf.mxu0  ;;  %v7800_v3 = vpop.f32.mrf.mxu1  ;;  %4991 = vmatprep.subr.mxu1 %v9688_v31  ;;  %4802 = vmatpush3.msra.mxu0 %v9693_v0 }
 0x3da   : > { %9692 = vst [vmem:[#allocation96_spill] sm:$0xff] %v7800_v3  ;;  %v2023_v43 = vsub.f32 %v1785_v25, %v7492_v4  ;;  %5375 = vmatprep.mubr.f32.mxu1 %v2020_v9  ;;  %4992 = vmatpush3.msra.mxu1 %v9690_v15  ;;  %v9772_v3 = vld [vmem:[#allocation186_spill] sm:$0xff] }
 0x3db   : > { %v1787_v13 = vpop.f32.mrf.mxu0  ;;  %v7806_v52 = vpop.f32.mrf.mxu1  ;;  %4803 = vmatprep.subr.mxu0 %v9695_v58  ;;  %4993 = vmatprep.subr.mxu1 %v9691_v7 }
 0x3dc   : > { %9694 = vst [vmem:[#allocation28_spill] sm:$0xff] %v7806_v52  ;;  %v2024_v54 = vsub.f32 %v1787_v13, %v7672_v40  ;;  %5320 = vmatmul.mubr.f32.gmra.mxu0 %v2023_v43  ;;  %4994 = vmatpush3.msra.mxu1 %v9693_v0  ;;  %v9706_v13 = vld [vmem:[#allocation211_spill] sm:$0xff]  ;;  %v9759_v52 = vld [vmem:[#allocation180_spill] sm:$0xff] }
 0x3dd   : > { %v1791_v44 = vpop.f32.mrf.mxu0  ;;  %v7812_v36 = vpop.f32.mrf.mxu1  ;;  %4804 = vmatpush3.msra.mxu0 %v9697_v62  ;;  %4995 = vmatprep.subr.mxu1 %v9695_v58  ;;  %v5606_v58 = vld [vmem:[#allocation8 + $0xf8] sm:$0xff] }
 0x3de   : > { %9696 = vst [vmem:[#allocation100_spill] sm:$0xff] %v7812_v36  ;;  %v2027_v4 = vsub.f32 %v1791_v44, %v7506_v8  ;;  %5376 = vmatmul.mubr.f32.gmra.mxu1 %v2024_v54  ;;  %4805 = vmatprep.subr.mxu0 %v9698_v28  ;;  %v9703_v8 = vld [vmem:[#allocation24_spill] sm:$0xff]  ;;  %v9765_v36 = vld [vmem:[#allocation183_spill] sm:$0xff] }
 0x3df   : > { %v1793_v59 = vpop.f32.mrf.mxu0  ;;  %v7818_v57 = vpop.f32.mrf.mxu1  ;;  %4806 = vmatpush3.msra.mxu0 %v9700_v32  ;;  %4996 = vmatpush3.msra.mxu1 %v9697_v62 }
 0x3e0   : > { %9699 = vst [vmem:[#allocation31_spill] sm:$0xff] %v7818_v57  ;;  %v2028_v61 = vsub.f32 %v1793_v59, %v7677_v14  ;;  %5322 = vmatprep.mubr.f32.mxu0 %v2027_v4  ;;  %4807 = vmatprep.subr.mxu0 %v9701_v41  ;;  %v9753_v57 = vld [vmem:[#allocation177_spill] sm:$0xff] }
 0x3e1   : > { %v1797_v31 = vpop.f32.mrf.mxu0  ;;  %v7824_v6 = vpop.f32.mrf.mxu1  ;;  %4997 = vmatprep.subr.mxu1 %v9698_v28  ;;  %4808 = vmatpush3.msra.mxu0 %v9703_v8 }
 0x3e2   : > { %9702 = vst [vmem:[#allocation104_spill] sm:$0xff] %v7824_v6  ;;  %v2031_v15 = vsub.f32 %v1797_v31, %v7520_v20  ;;  %5378 = vmatprep.mubr.f32.mxu1 %v2028_v61  ;;  %4998 = vmatpush3.msra.mxu1 %v9700_v32 }
 0x3e3   : > { %v1799_v9 = vpop.f32.mrf.mxu0  ;;  %v7830_v7 = vpop.f32.mrf.mxu1  ;;  %4809 = vmatprep.subr.mxu0 %v7357_v11  ;;  %4999 = vmatprep.subr.mxu1 %v9701_v41 }
 0x3e4   : > { %9704 = vst [vmem:[#allocation34_spill] sm:$0xff] %v7830_v7  ;;  %v2032_v25 = vsub.f32 %v1799_v9, %v7682_v45  ;;  %5323 = vmatmul.mubr.f32.gmra.mxu0 %v2031_v15  ;;  %5000 = vmatpush3.msra.mxu1 %v9703_v8  ;;  %v9735_v7 = vld [vmem:[#allocation168_spill] sm:$0xff] }
 0x3e5   : > { %v1803_v0 = vpop.f32.mrf.mxu0  ;;  %v7836_v43 = vpop.f32.mrf.mxu1  ;;  %4810 = vmatpush3.msra.mxu0 %v9706_v13  ;;  %5001 = vmatprep.subr.mxu1 %v7357_v11 }
 0x3e6   : > { %9705 = vst [vmem:[#allocation108_spill] sm:$0xff] %v7836_v43  ;;  %v2035_v20 = vsub.f32 %v1803_v0, %v7534_v26  ;;  %5379 = vmatmul.mubr.f32.gmra.mxu1 %v2032_v25  ;;  %4891 = vmatprep.subr.mxu0 %v5606_v58  ;;  %v9741_v43 = vld [vmem:[#allocation171_spill] sm:$0xff] }
 0x3e7   : > { %v1805_v54 = vpop.f32.mrf.mxu0  ;;  %v7841_v44 = vpop.f32.mrf.mxu1  ;;  %5002 = vmatpush3.msra.mxu1 %v9706_v13 }
 0x3e8   : > { %9707 = vst [vmem:[#allocation37_spill] sm:$0xff] %v7841_v44  ;;  %v2036_v62 = vsub.f32 %v1805_v54, %v7687_v16  ;;  %5325 = vmatprep.mubr.f32.mxu0 %v2035_v20  ;;  %5083 = vmatprep.subr.mxu1 %v5606_v58  ;;  %v9714_v54 = vld [vmem:[#allocation157_spill] sm:$0xff] }
 0x3e9   : > { %v1809_v4 = vpop.f32.mrf.mxu0  ;;  %v7845_v28 = vpop.f32.mrf.mxu1 }
 0x3ea   : > { %9708 = vst [vmem:[#allocation112_spill] sm:$0xff] %v7845_v28  ;;  %v2039_v59 = vsub.f32 %v1809_v4, %v7548_v60  ;;  %5381 = vmatprep.mubr.f32.mxu1 %v2036_v62  ;;  %v9715_v62 = vld [vmem:[#allocation26_spill] sm:$0xff] }
 0x3eb   : > { %v1811_v11 = vpop.f32.mrf.mxu0  ;;  %v7848_v26 = vpop.f32.mrf.mxu1  ;;  %v1119_v4 = vsub.f32 %v9715_v62, %v7594_v48  ;;  %v9719_v48 = vld [vmem:[#allocation29_spill] sm:$0xff]  ;;  %v7885_v62 = vld [vmem:[%s6045_s5 + $0x30] sm:$0xff] }
 0x3ec   : > { %9709 = vst [vmem:[#allocation84_spill] sm:$0xff] %v7848_v26  ;;  %v2040_v32 = vsub.f32 %v1811_v11, %v7692_v2  ;;  %5326 = vmatmul.mubr.f32.gmra.mxu0 %v2039_v59  ;;  %v9716_v11 = vld [vmem:[#allocation156_spill] sm:$0xff] }
 0x3ed   : > { %v1815_v61 = vpop.f32.mrf.mxu0  ;;  %v7851_v41 = vpop.f32.mrf.mxu1 }
 0x3ee   : > { %9710 = vst [vmem:[#allocation116_spill] sm:$0xff] %v7851_v41  ;;  %v2043_v31 = vsub.f32 %v1815_v61, %v7562_v1  ;;  %5382 = vmatmul.mubr.f32.gmra.mxu1 %v2040_v32  ;;  %v9717_v32 = vld [vmem:[#allocation25_spill] sm:$0xff] }
 0x3ef   : > { %v1817_v8 = vpop.f32.mrf.mxu0  ;;  %v7854_v15 = vpop.f32.mrf.mxu1  ;;  %v9729_v41 = vld [vmem:[#allocation165_spill] sm:$0xff] }
 0x3f0   : > { %9711 = vst [vmem:[#allocation44_spill] sm:$0xff] %v7854_v15  ;;  %v2044_v9 = vsub.f32 %v1817_v8, %v7697_v56  ;;  %5328 = vmatprep.mubr.f32.mxu0 %v2043_v31  ;;  %v9718_v8 = vld [vmem:[#allocation160_spill] sm:$0xff] }
 0x3f1   : > { %v1821_v60 = vpop.f32.mrf.mxu0  ;;  %v7857_v25 = vpop.f32.mrf.mxu1 }
 0x3f2   : > { %9712 = vst [vmem:[#allocation120_spill] sm:$0xff] %v7857_v25  ;;  %v2047_v0 = vsub.f32 %v1821_v60, %v7576_v5  ;;  %5384 = vmatprep.mubr.f32.mxu1 %v2044_v9  ;;  %v7872_v5 = vld [vmem:[%s6045_s5 + $0x10] sm:$0xff]  ;;  %v5608_v9 = vld [vmem:[#allocation8 + $0x78] sm:$0xff]  ;;  %v1123_v60 = vsub.f32 %v9719_v48, %v7603_v10  ;;  %v9725_v25 = vld [vmem:[#allocation162_spill] sm:$0xff] }
 0x3f3   : > { %v1823_v13 = vpop.f32.mrf.mxu0  ;;  %v7860_v20 = vpop.f32.mrf.mxu1  ;;  %v1120_v61 = vsub.f32 %v9717_v32, %v7872_v5  ;;  %v9722_v10 = vld [vmem:[#allocation163_spill] sm:$0xff] }
 0x3f4   : > { %9713 = vst [vmem:[#allocation47_spill] sm:$0xff] %v7860_v20  ;;  %v2048_v58 = vsub.f32 %v1823_v13, %v7702_v63  ;;  %5329 = vmatmul.mubr.f32.gmra.mxu0 %v2047_v0  ;;  %v5609_v0 = vld [vmem:[#allocation8 + $0xf0] sm:$0xff] }
 0x3f5   : > { %v7863_v1 = vpop.f32.mrf.mxu1  ;;  %3022 = vmatprep.mubr.f32.mxu0 %v9714_v54  ;;  %v5610_v54 = vld [vmem:[#allocation8 + $0x70] sm:$0xff] }
 0x3f6   : > { %5385 = vmatmul.mubr.f32.gmra.mxu1 %v2048_v58  ;;  %v9720_v58 = vld [vmem:[#allocation159_spill] sm:$0xff] }
 0x3f7   : > { %v7868_v59 = vpop.f32.mrf.mxu1  ;;  %3554 = vmatprep.mubr.f32.mxu1 %v9716_v11 }
 0x3f8   : > { %3023 = vmatmul.mubr.f32.vlgmr.msra.gmra.mxu0 %v1119_v4  ;;  %v9721_v4 = vld [vmem:[#allocation81_spill] sm:$0xff] }
 0x3f9   : > { %v7876_v31 = vpop.f32.mrf.mxu1  ;;  %3027 = vmatprep.mubr.f32.mxu0 %v9718_v8  ;;  %4892 = vmatpush3.msra.mxu0 %v5608_v9  ;;  %v1124_v11 = vsub.f32 %v9721_v4, %v7885_v62  ;;  %v9723_v8 = vld [vmem:[#allocation82_spill] sm:$0xff] }
 0x3fa   : > { %3555 = vmatmul.mubr.f32.vlgmr.msra.gmra.mxu1 %v1120_v61  ;;  %4893 = vmatprep.subr.mxu0 %v5609_v0  ;;  %v5612_v61 = vld [vmem:[#allocation8 + $0xe8] sm:$0xff]  ;;  %v1127_v48 = vsub.f32 %v9723_v8, %v7612_v46 }
 0x3fb   : > { %v7881_v13 = vpop.f32.mrf.mxu1  ;;  %3559 = vmatprep.mubr.f32.mxu1 %v9720_v58  ;;  %4894 = vmatpush3.msra.mxu0 %v5610_v54  ;;  %v7894_v58 = vpop.f32.mrf.mxu0  ;;  %v5613_v4 = vld [vmem:[#allocation8 + $0x68] sm:$0xff] }
 0x3fc   : > { %3028 = vmatmul.mubr.f32.gmra.mxu0 %v1123_v60  ;;  %5084 = vmatpush3.msra.mxu1 %v5608_v9  ;;  %v7900_v9 = vld [vmem:[%s6045_s5 + $0x50] sm:$0xff]  ;;  %v9726_v60 = vld [vmem:[#allocation32_spill] sm:$0xff]  ;;  %v9727_v46 = vld [vmem:[#allocation166_spill] sm:$0xff] }
 0x3fd   : > { %v7889_v32 = vpop.f32.mrf.mxu1  ;;  %3032 = vmatprep.mubr.f32.mxu0 %v9722_v10  ;;  %4895 = vmatprep.subr.mxu0 %v5612_v61  ;;  %v1128_v10 = vsub.f32 %v9726_v60, %v7900_v9  ;;  %v5616_v60 = vld [vmem:[#allocation8 + $0x60] sm:$0xff] }
 0x3fe   : > { %3560 = vmatmul.mubr.f32.gmra.mxu1 %v1124_v11  ;;  %5085 = vmatprep.subr.mxu1 %v5609_v0  ;;  %v5615_v11 = vld [vmem:[#allocation8 + $0xe0] sm:$0xff]  ;;  %v9728_v0 = vld [vmem:[#allocation36_spill] sm:$0xff] }
 0x3ff   : > { %v7896_v20 = vpop.f32.mrf.mxu1  ;;  %3564 = vmatprep.mubr.f32.mxu1 %v9725_v25  ;;  %4896 = vmatpush3.msra.mxu0 %v5613_v4  ;;  %v1131_v8 = vsub.f32 %v9728_v0, %v7621_v55  ;;  %v7909_v25 = vpop.f32.mrf.mxu0  ;;  %v9732_v55 = vld [vmem:[#allocation169_spill] sm:$0xff] }
 0x400   : > { %9724 = vst [vmem:[#allocation124_spill] sm:$0xff] %v7896_v20  ;;  %3033 = vmatmul.mubr.f32.gmra.mxu0 %v1127_v48  ;;  %5086 = vmatpush3.msra.mxu1 %v5610_v54  ;;  %v7915_v54 = vld [vmem:[%s6045_s5 + $0x70] sm:$0xff]  ;;  %v8218_v20 = vld [vmem:[%s6045_s5 + $0x118] sm:$0xff] }
 0x401   : > { %v7904_v15 = vpop.f32.mrf.mxu1  ;;  %3037 = vmatprep.mubr.f32.mxu0 %v9727_v46  ;;  %4897 = vmatprep.subr.mxu0 %v5615_v11  ;;  %v9730_v48 = vld [vmem:[#allocation35_spill] sm:$0xff] }
 0x402   : > { %3565 = vmatmul.mubr.f32.gmra.mxu1 %v1128_v10  ;;  %5087 = vmatprep.subr.mxu1 %v5612_v61  ;;  %v1132_v46 = vsub.f32 %v9730_v48, %v7915_v54  ;;  %v5618_v10 = vld [vmem:[#allocation8 + $0xd8] sm:$0xff]  ;;  %v9733_v61 = vld [vmem:[#allocation39_spill] sm:$0xff] }
 0x403   : > { %v7911_v26 = vpop.f32.mrf.mxu1  ;;  %3569 = vmatprep.mubr.f32.mxu1 %v9729_v41  ;;  %4898 = vmatpush3.msra.mxu0 %v5616_v60  ;;  %v1135_v0 = vsub.f32 %v9733_v61, %v7630_v35  ;;  %v7924_v41 = vpop.f32.mrf.mxu0  ;;  %v5619_v48 = vld [vmem:[#allocation8 + $0x58] sm:$0xff] }
 0x404   : > { %3038 = vmatmul.mubr.f32.gmra.mxu0 %v1131_v8  ;;  %5088 = vmatpush3.msra.mxu1 %v5613_v4  ;;  %v7930_v4 = vld [vmem:[%s6045_s5 + $0x90] sm:$0xff]  ;;  %v9736_v8 = vld [vmem:[#allocation38_spill] sm:$0xff]  ;;  %v9738_v35 = vld [vmem:[#allocation172_spill] sm:$0xff] }
 0x405   : > { %v7919_v28 = vpop.f32.mrf.mxu1  ;;  %3042 = vmatprep.mubr.f32.mxu0 %v9732_v55  ;;  %4899 = vmatprep.subr.mxu0 %v5618_v10  ;;  %v1136_v55 = vsub.f32 %v9736_v8, %v7930_v4  ;;  %v5622_v8 = vld [vmem:[#allocation8 + $0x50] sm:$0xff] }
 0x406   : > { %9731 = vst [vmem:[#allocation50_spill] sm:$0xff] %v7919_v28  ;;  %3570 = vmatmul.mubr.f32.gmra.mxu1 %v1132_v46  ;;  %5089 = vmatprep.subr.mxu1 %v5615_v11  ;;  %v5621_v46 = vld [vmem:[#allocation8 + $0xd0] sm:$0xff]  ;;  %v9739_v11 = vld [vmem:[#allocation42_spill] sm:$0xff] }
 0x407   : > { %v7926_v44 = vpop.f32.mrf.mxu1  ;;  %3574 = vmatprep.mubr.f32.mxu1 %v9735_v7  ;;  %4900 = vmatpush3.msra.mxu0 %v5619_v48  ;;  %v1139_v61 = vsub.f32 %v9739_v11, %v7639_v21  ;;  %v7939_v7 = vpop.f32.mrf.mxu0  ;;  %v9744_v21 = vld [vmem:[#allocation175_spill] sm:$0xff] }
 0x408   : > { %9734 = vst [vmem:[#allocation128_spill] sm:$0xff] %v7926_v44  ;;  %3043 = vmatmul.mubr.f32.gmra.mxu0 %v1135_v0  ;;  %5090 = vmatpush3.msra.mxu1 %v5616_v60  ;;  %v7945_v60 = vld [vmem:[%s6045_s5 + $0xb0] sm:$0xff]  ;;  %v9742_v0 = vld [vmem:[#allocation41_spill] sm:$0xff] }
 0x409   : > { %v7934_v28 = vpop.f32.mrf.mxu1  ;;  %3047 = vmatprep.mubr.f32.mxu0 %v9738_v35  ;;  %4901 = vmatprep.subr.mxu0 %v5621_v46  ;;  %v1140_v35 = vsub.f32 %v9742_v0, %v7945_v60  ;;  %v5625_v0 = vld [vmem:[#allocation8 + $0x48] sm:$0xff] }
 0x40a   : > { %9737 = vst [vmem:[#allocation53_spill] sm:$0xff] %v7934_v28  ;;  %3575 = vmatmul.mubr.f32.gmra.mxu1 %v1136_v55  ;;  %5091 = vmatprep.subr.mxu1 %v5618_v10  ;;  %v5624_v55 = vld [vmem:[#allocation8 + $0xc8] sm:$0xff]  ;;  %v9745_v10 = vld [vmem:[#allocation45_spill] sm:$0xff] }
 0x40b   : > { %v7941_v44 = vpop.f32.mrf.mxu1  ;;  %3579 = vmatprep.mubr.f32.mxu1 %v9741_v43  ;;  %4902 = vmatpush3.msra.mxu0 %v5622_v8  ;;  %v1143_v11 = vsub.f32 %v9745_v10, %v7648_v49  ;;  %v7954_v43 = vpop.f32.mrf.mxu0  ;;  %v9747_v28 = vld [vmem:[#allocation174_spill] sm:$0xff] }
 0x40c   : > { %9740 = vst [vmem:[#allocation132_spill] sm:$0xff] %v7941_v44  ;;  %3048 = vmatmul.mubr.f32.gmra.mxu0 %v1139_v61  ;;  %5092 = vmatpush3.msra.mxu1 %v5619_v48  ;;  %v7960_v48 = vld [vmem:[%s6045_s5 + $0xd0] sm:$0xff]  ;;  %v9748_v61 = vld [vmem:[#allocation85_spill] sm:$0xff]  ;;  %v9750_v49 = vld [vmem:[#allocation178_spill] sm:$0xff] }
 0x40d   : > { %v7949_v6 = vpop.f32.mrf.mxu1  ;;  %3052 = vmatprep.mubr.f32.mxu0 %v9744_v21  ;;  %4903 = vmatprep.subr.mxu0 %v5624_v55  ;;  %v1144_v21 = vsub.f32 %v9748_v61, %v7960_v48  ;;  %v5628_v61 = vld [vmem:[#allocation8 + $0x40] sm:$0xff] }
 0x40e   : > { %9743 = vst [vmem:[#allocation88_spill] sm:$0xff] %v7949_v6  ;;  %3580 = vmatmul.mubr.f32.gmra.mxu1 %v1140_v35  ;;  %5093 = vmatprep.subr.mxu1 %v5621_v46  ;;  %v5627_v35 = vld [vmem:[#allocation8 + $0xc0] sm:$0xff]  ;;  %v9751_v46 = vld [vmem:[#allocation86_spill] sm:$0xff] }
 0x40f   : > { %v7956_v44 = vpop.f32.mrf.mxu1  ;;  %3584 = vmatprep.mubr.f32.mxu1 %v9747_v28  ;;  %4904 = vmatpush3.msra.mxu0 %v5625_v0  ;;  %v1147_v10 = vsub.f32 %v9751_v46, %v7657_v33  ;;  %v7969_v28 = vpop.f32.mrf.mxu0  ;;  %v9756_v33 = vld [vmem:[#allocation181_spill] sm:$0xff] }
 0x410   : > { %9746 = vst [vmem:[#allocation136_spill] sm:$0xff] %v7956_v44  ;;  %3053 = vmatmul.mubr.f32.gmra.mxu0 %v1143_v11  ;;  %5094 = vmatpush3.msra.mxu1 %v5622_v8  ;;  %v7975_v8 = vld [vmem:[%s6045_s5 + $0xf0] sm:$0xff]  ;;  %v9754_v11 = vld [vmem:[#allocation48_spill] sm:$0xff] }
 0x411   : > { %v7964_v6 = vpop.f32.mrf.mxu1  ;;  %3057 = vmatprep.mubr.f32.mxu0 %v9750_v49  ;;  %4905 = vmatprep.subr.mxu0 %v5627_v35  ;;  %v1148_v49 = vsub.f32 %v9754_v11, %v7975_v8  ;;  %v5631_v11 = vld [vmem:[#allocation8 + $0x38] sm:$0xff] }
 0x412   : > { %9749 = vst [vmem:[#allocation60_spill] sm:$0xff] %v7964_v6  ;;  %3585 = vmatmul.mubr.f32.gmra.mxu1 %v1144_v21  ;;  %5095 = vmatprep.subr.mxu1 %v5624_v55  ;;  %v5630_v21 = vld [vmem:[#allocation8 + $0xb8] sm:$0xff] }
 0x413   : > { %v7971_v44 = vpop.f32.mrf.mxu1  ;;  %3589 = vmatprep.mubr.f32.mxu1 %v9753_v57  ;;  %4906 = vmatpush3.msra.mxu0 %v5628_v61  ;;  %v9757_v55 = vld [vmem:[#allocation52_spill] sm:$0xff]  ;;  %v7984_v57 = vpop.f32.mrf.mxu0 }
 0x414   : > { %9752 = vst [vmem:[#allocation140_spill] sm:$0xff] %v7971_v44  ;;  %3058 = vmatmul.mubr.f32.gmra.mxu0 %v1147_v10  ;;  %5096 = vmatpush3.msra.mxu1 %v5625_v0  ;;  %v1151_v46 = vsub.f32 %v9757_v55, %v7666_v12  ;;  %v7990_v0 = vld [vmem:[%s6045_s5 + $0x110] sm:$0xff]  ;;  %v9762_v12 = vld [vmem:[#allocation184_spill] sm:$0xff] }
 0x415   : > { %v7979_v6 = vpop.f32.mrf.mxu1  ;;  %3062 = vmatprep.mubr.f32.mxu0 %v9756_v33  ;;  %4907 = vmatprep.subr.mxu0 %v5630_v21  ;;  %v9760_v10 = vld [vmem:[#allocation51_spill] sm:$0xff] }
 0x416   : > { %9755 = vst [vmem:[#allocation63_spill] sm:$0xff] %v7979_v6  ;;  %3590 = vmatmul.mubr.f32.gmra.mxu1 %v1148_v49  ;;  %5097 = vmatprep.subr.mxu1 %v5627_v35  ;;  %v1152_v33 = vsub.f32 %v9760_v10, %v7990_v0  ;;  %v5633_v49 = vld [vmem:[#allocation8 + $0xb0] sm:$0xff] }
 0x417   : > { %v7986_v44 = vpop.f32.mrf.mxu1  ;;  %3594 = vmatprep.mubr.f32.mxu1 %v9759_v52  ;;  %4908 = vmatpush3.msra.mxu0 %v5631_v11  ;;  %v9763_v35 = vld [vmem:[#allocation55_spill] sm:$0xff]  ;;  %v7999_v52 = vpop.f32.mrf.mxu0 }
 0x418   : > { %9758 = vst [vmem:[#allocation144_spill] sm:$0xff] %v7986_v44  ;;  %3063 = vmatmul.mubr.f32.gmra.mxu0 %v1151_v46  ;;  %5098 = vmatpush3.msra.mxu1 %v5628_v61  ;;  %v1155_v55 = vsub.f32 %v9763_v35, %v7672_v40  ;;  %v5634_v10 = vld [vmem:[#allocation8 + $0x30] sm:$0xff]  ;;  %v9766_v46 = vld [vmem:[#allocation54_spill] sm:$0xff] }
 0x419   : > { %v7994_v6 = vpop.f32.mrf.mxu1  ;;  %3067 = vmatprep.mubr.f32.mxu0 %v9762_v12  ;;  %4909 = vmatprep.subr.mxu0 %v5633_v49  ;;  %v8005_v61 = vld [vmem:[%s6045_s5 + $0x130] sm:$0xff] }
 0x41a   : > { %9761 = vst [vmem:[#allocation66_spill] sm:$0xff] %v7994_v6  ;;  %3595 = vmatmul.mubr.f32.gmra.mxu1 %v1152_v33  ;;  %5099 = vmatprep.subr.mxu1 %v5630_v21  ;;  %v1156_v12 = vsub.f32 %v9766_v46, %v8005_v61  ;;  %v9768_v40 = vld [vmem:[#allocation187_spill] sm:$0xff]  ;;  %v5636_v33 = vld [vmem:[#allocation8 + $0xa8] sm:$0xff] }
 0x41b   : > { %v8001_v44 = vpop.f32.mrf.mxu1  ;;  %3599 = vmatprep.mubr.f32.mxu1 %v9765_v36  ;;  %4910 = vmatpush3.msra.mxu0 %v5634_v10  ;;  %v9769_v21 = vld [vmem:[#allocation58_spill] sm:$0xff]  ;;  %v8014_v36 = vpop.f32.mrf.mxu0 }
 0x41c   : > { %9764 = vst [vmem:[#allocation148_spill] sm:$0xff] %v8001_v44  ;;  %3068 = vmatmul.mubr.f32.gmra.mxu0 %v1155_v55  ;;  %5100 = vmatpush3.msra.mxu1 %v5631_v11  ;;  %v1159_v35 = vsub.f32 %v9769_v21, %v7677_v14  ;;  %9770 = vst [vmem:[#allocation152_spill] sm:$0xff] %v8014_v36  ;;  %v5637_v46 = vld [vmem:[#allocation8 + $0x28] sm:$0xff]  ;;  %v8020_v11 = vld [vmem:[%s6045_s5 + $0x150] sm:$0xff] }
 0x41d   : > { %v8009_v6 = vpop.f32.mrf.mxu1  ;;  %3072 = vmatprep.mubr.f32.mxu0 %v9768_v40  ;;  %4911 = vmatprep.subr.mxu0 %v5636_v33  ;;  %v9773_v55 = vld [vmem:[#allocation57_spill] sm:$0xff]  ;;  %v9775_v14 = vld [vmem:[#allocation190_spill] sm:$0xff] }
 0x41e   : > { %9767 = vst [vmem:[#allocation69_spill] sm:$0xff] %v8009_v6  ;;  %3600 = vmatmul.mubr.f32.gmra.mxu1 %v1156_v12  ;;  %5101 = vmatprep.subr.mxu1 %v5633_v49  ;;  %v1160_v40 = vsub.f32 %v9773_v55, %v8020_v11  ;;  %v5639_v12 = vld [vmem:[#allocation8 + $0xa0] sm:$0xff] }
 0x41f   : > { %v8016_v44 = vpop.f32.mrf.mxu1  ;;  %3604 = vmatprep.mubr.f32.mxu1 %v9772_v3  ;;  %4912 = vmatpush3.msra.mxu0 %v5637_v46  ;;  %v9776_v49 = vld [vmem:[#allocation61_spill] sm:$0xff]  ;;  %v8029_v3 = vpop.f32.mrf.mxu0 }
 0x420   : > { %9771 = vst [vmem:[#allocation73_spill] sm:$0xff] %v8016_v44  ;;  %3073 = vmatmul.mubr.f32.gmra.mxu0 %v1159_v35  ;;  %5102 = vmatpush3.msra.mxu1 %v5634_v10  ;;  %v1163_v21 = vsub.f32 %v9776_v49, %v7682_v45  ;;  %9777 = vst [vmem:[#allocation98_spill] sm:$0xff] %v8029_v3  ;;  %v9779_v36 = vld [vmem:[#allocation189_spill] sm:$0xff]  ;;  %v8035_v10 = vld [vmem:[%s6045_s5 + $0x170] sm:$0xff] }
 0x421   : > { %v8024_v6 = vpop.f32.mrf.mxu1  ;;  %3077 = vmatprep.mubr.f32.mxu0 %v9775_v14  ;;  %4913 = vmatprep.subr.mxu0 %v5639_v12  ;;  %v5640_v55 = vld [vmem:[#allocation8 + $0x20] sm:$0xff]  ;;  %v9786_v3 = vld [vmem:[#allocation192_spill] sm:$0xff] }
 0x422   : > { %9774 = vst [vmem:[#allocation94_spill] sm:$0xff] %v8024_v6  ;;  %3605 = vmatmul.mubr.f32.gmra.mxu1 %v1160_v40  ;;  %5103 = vmatprep.subr.mxu1 %v5636_v33  ;;  %v9780_v35 = vld [vmem:[#allocation89_spill] sm:$0xff]  ;;  %v5642_v40 = vld [vmem:[#allocation8 + $0x98] sm:$0xff]  ;;  %v9783_v33 = vld [vmem:[#allocation90_spill] sm:$0xff] }
 0x423   : > { %v8031_v44 = vpop.f32.mrf.mxu1  ;;  %3609 = vmatprep.mubr.f32.mxu1 %v9779_v36  ;;  %4914 = vmatpush3.msra.mxu0 %v5640_v55  ;;  %v1164_v14 = vsub.f32 %v9780_v35, %v8035_v10  ;;  %v9782_v45 = vld [vmem:[#allocation193_spill] sm:$0xff]  ;;  %v1167_v49 = vsub.f32 %v9783_v33, %v7687_v16  ;;  %v8044_v36 = vpop.f32.mrf.mxu0  ;;  %v5643_v35 = vld [vmem:[#allocation8 + $0x18] sm:$0xff] }
 0x424   : > { %9778 = vst [vmem:[#allocation102_spill] sm:$0xff] %v8031_v44  ;;  %3078 = vmatmul.mubr.f32.gmra.mxu0 %v1163_v21  ;;  %5104 = vmatpush3.msra.mxu1 %v5637_v46  ;;  %9784 = vst [vmem:[#allocation110_spill] sm:$0xff] %v8044_v36  ;;  %v8050_v46 = vld [vmem:[%s6045_s5 + $0x190] sm:$0xff]  ;;  %v9787_v21 = vld [vmem:[#allocation64_spill] sm:$0xff] }
 0x425   : > { %v8039_v6 = vpop.f32.mrf.mxu1  ;;  %3082 = vmatprep.mubr.f32.mxu0 %v9782_v45  ;;  %4915 = vmatprep.subr.mxu0 %v5642_v40  ;;  %v1168_v45 = vsub.f32 %v9787_v21, %v8050_v46  ;;  %v9789_v16 = vld [vmem:[#allocation196_spill] sm:$0xff]  ;;  %v5646_v21 = vld [vmem:[#allocation8 + $0x10] sm:$0xff] }
 0x426   : > { %9781 = vst [vmem:[#allocation106_spill] sm:$0xff] %v8039_v6  ;;  %3610 = vmatmul.mubr.f32.gmra.mxu1 %v1164_v14  ;;  %5105 = vmatprep.subr.mxu1 %v5639_v12  ;;  %v5645_v14 = vld [vmem:[#allocation8 + $0x90] sm:$0xff]  ;;  %v9790_v12 = vld [vmem:[#allocation68_spill] sm:$0xff] }
 0x427   : > { %v8046_v44 = vpop.f32.mrf.mxu1  ;;  %3614 = vmatprep.mubr.f32.mxu1 %v9786_v3  ;;  %4916 = vmatpush3.msra.mxu0 %v5643_v35  ;;  %v1171_v33 = vsub.f32 %v9790_v12, %v7692_v2  ;;  %v8059_v3 = vpop.f32.mrf.mxu0  ;;  %v9796_v2 = vld [vmem:[#allocation199_spill] sm:$0xff]  ;;  %v8205_v36 = vld [vmem:[%s6045_s5 + $0xf8] sm:$0xff] }
 0x428   : > { %9785 = vst [vmem:[#allocation114_spill] sm:$0xff] %v8046_v44  ;;  %3083 = vmatmul.mubr.f32.gmra.mxu0 %v1167_v49  ;;  %5106 = vmatpush3.msra.mxu1 %v5640_v55  ;;  %9791 = vst [vmem:[#allocation122_spill] sm:$0xff] %v8059_v3  ;;  %v8065_v55 = vld [vmem:[%s6045_s5 + $0x1b0] sm:$0xff]  ;;  %v8192_v3 = vld [vmem:[%s6045_s5 + $0xd8] sm:$0xff] }
 0x429   : > { %v8054_v6 = vpop.f32.mrf.mxu1  ;;  %3087 = vmatprep.mubr.f32.mxu0 %v9789_v16  ;;  %4917 = vmatprep.subr.mxu0 %v5645_v14  ;;  %v9794_v49 = vld [vmem:[#allocation67_spill] sm:$0xff]  ;;  %9852 = vst [vmem:[#allocation156_spill] sm:$0xff] %v8205_v36 }
 0x42a   : > { %9788 = vst [vmem:[#allocation118_spill] sm:$0xff] %v8054_v6  ;;  %3615 = vmatmul.mubr.f32.gmra.mxu1 %v1168_v45  ;;  %5107 = vmatprep.subr.mxu1 %v5642_v40  ;;  %v1172_v16 = vsub.f32 %v9794_v49, %v8065_v55  ;;  %v5648_v45 = vld [vmem:[#allocation8 + $0x88] sm:$0xff]  ;;  %v9797_v40 = vld [vmem:[#allocation71_spill] sm:$0xff] }
 0x42b   : > { %v8061_v44 = vpop.f32.mrf.mxu1  ;;  %3619 = vmatprep.mubr.f32.mxu1 %v9793_v17  ;;  %4918 = vmatpush3.msra.mxu0 %v5646_v21  ;;  %v1175_v12 = vsub.f32 %v9797_v40, %v7697_v56  ;;  %v8074_v17 = vpop.f32.mrf.mxu0  ;;  %v5649_v49 = vld [vmem:[#allocation8 + $0x8] sm:$0xff] }
 0x42c   : > { %9792 = vst [vmem:[#allocation126_spill] sm:$0xff] %v8061_v44  ;;  %3088 = vmatmul.mubr.f32.gmra.mxu0 %v1171_v33  ;;  %5108 = vmatpush3.msra.mxu1 %v5643_v35  ;;  %9798 = vst [vmem:[#allocation134_spill] sm:$0xff] %v8074_v17  ;;  %v8080_v35 = vld [vmem:[%s6045_s5 + $0x1d0] sm:$0xff]  ;;  %v9801_v33 = vld [vmem:[#allocation70_spill] sm:$0xff] }
 0x42d   : > { %v8069_v6 = vpop.f32.mrf.mxu1  ;;  %3092 = vmatprep.mubr.f32.mxu0 %v9796_v2  ;;  %4919 = vmatprep.subr.mxu0 %v5648_v45  ;;  %v1176_v2 = vsub.f32 %v9801_v33, %v8080_v35  ;;  %v9803_v56 = vld [vmem:[#allocation202_spill] sm:$0xff]  ;;  %v9807_v17 = vld [vmem:[#allocation201_spill] sm:$0xff] }
 0x42e   : > { %9795 = vst [vmem:[#allocation130_spill] sm:$0xff] %v8069_v6  ;;  %3620 = vmatmul.mubr.f32.gmra.mxu1 %v1172_v16  ;;  %5109 = vmatprep.subr.mxu1 %v5645_v14  ;;  %v5651_v16 = vld [vmem:[#allocation8 + $0x80] sm:$0xff]  ;;  %v9804_v14 = vld [vmem:[#allocation75_spill] sm:$0xff] }
 0x42f   : > { %v8076_v44 = vpop.f32.mrf.mxu1  ;;  %3624 = vmatprep.mubr.f32.mxu1 %v9800_v38  ;;  %4920 = vmatpush3.msra.mxu0 %v5649_v49  ;;  %v1179_v40 = vsub.f32 %v9804_v14, %v7702_v63  ;;  %v8089_v38 = vpop.f32.mrf.mxu0  ;;  %v5652_v33 = vld [vmem:[#allocation8] sm:$0xff] }
 0x430   : > { %9799 = vst [vmem:[#allocation138_spill] sm:$0xff] %v8076_v44  ;;  %3093 = vmatmul.mubr.f32.gmra.mxu0 %v1175_v12  ;;  %5110 = vmatpush3.msra.mxu1 %v5646_v21  ;;  %9805 = vst [vmem:[#allocation146_spill] sm:$0xff] %v8089_v38  ;;  %v8095_v21 = vld [vmem:[%s6045_s5 + $0x1f0] sm:$0xff]  ;;  %v9808_v12 = vld [vmem:[#allocation74_spill] sm:$0xff] }
 0x431   : > { %v8084_v6 = vpop.f32.mrf.mxu1  ;;  %3097 = vmatprep.mubr.f32.mxu0 %v9803_v56  ;;  %4921 = vmatprep.subr.mxu0 %v5651_v16  ;;  %v1180_v56 = vsub.f32 %v9808_v12, %v8095_v21  ;;  %v5656_v12 = vld [vmem:[#allocation8 + $0x270] sm:$0xff]  ;;  %v8153_v38 = vld [vmem:[%s6045_s5 + $0x78] sm:$0xff] }
 0x432   : > { %9802 = vst [vmem:[#allocation142_spill] sm:$0xff] %v8084_v6  ;;  %3625 = vmatmul.mubr.f32.gmra.mxu1 %v1176_v2  ;;  %5111 = vmatprep.subr.mxu1 %v5648_v45  ;;  %v9809_v6 = vld [vmem:[#allocation93_spill] sm:$0xff]  ;;  %v8102_v45 = vpop.f32.mrf.mxu0  ;;  %v5654_v2 = vld [vmem:[#allocation8 + $0x278] sm:$0xff] }
 0x433   : > { %v8091_v44 = vpop.f32.mrf.mxu1  ;;  %3629 = vmatprep.mubr.f32.mxu1 %v9807_v17  ;;  %4922 = vmatpush3.msra.mxu0 %v5652_v33  ;;  %9811 = vst [vmem:[#allocation77_spill] sm:$0xff] %v8102_v45  ;;  %v9812_v17 = vld [vmem:[#allocation95_spill] sm:$0xff]  ;;  %v8179_v45 = vld [vmem:[%s6045_s5 + $0xb8] sm:$0xff] }
 0x434   : > { %9806 = vst [vmem:[#allocation150_spill] sm:$0xff] %v8091_v44  ;;  %3098 = vmatmul.mubr.f32.gmra.mxu0 %v1179_v40  ;;  %5112 = vmatpush3.msra.mxu1 %v5649_v49  ;;  %v9814_v49 = vld [vmem:[#allocation97_spill] sm:$0xff]  ;;  %v8114_v40 = vld [vmem:[%s6045_s5 + $0x18] sm:$0xff] }
 0x435   : > { %3409 = vmatprep.mubr.f32.mxu0 %v9809_v6  ;;  %5113 = vmatprep.subr.mxu1 %v5651_v16  ;;  %v8100_v63 = vpop.f32.mrf.mxu1  ;;  %v8111_v16 = vpop.f32.mrf.mxu0 }
 0x436   : > { %9810 = vst [vmem:[#allocation154_spill] sm:$0xff] %v8100_v63  ;;  %3630 = vmatmul.mubr.f32.gmra.mxu1 %v1180_v56  ;;  %5387 = vmatprep.subr.mxu0 %v5654_v2  ;;  %9816 = vst [vmem:[#allocation15_spill] sm:$0xff] %v8111_v16  ;;  %v8127_v63 = vld [vmem:[%s6045_s5 + $0x38] sm:$0xff] }
 0x437   : > { %3941 = vmatprep.mubr.f32.mxu1 %v9812_v17  ;;  %5114 = vmatpush3.msra.mxu1 %v5652_v33  ;;  %v8105_v14 = vpop.f32.mrf.mxu1  ;;  %v9817_v33 = vld [vmem:[#allocation99_spill] sm:$0xff]  ;;  %v9819_v17 = vld [vmem:[#allocation101_spill] sm:$0xff]  ;;  %v8166_v16 = vld [vmem:[%s6045_s5 + $0x98] sm:$0xff] }
 0x438   : > { %9813 = vst [vmem:[#allocation13_spill] sm:$0xff] %v8105_v14  ;;  %3410 = vmatmul.mubr.f32.vlgmr.msra.gmra.mxu0 %v7872_v5  ;;  %5443 = vmatprep.subr.mxu1 %v5654_v2  ;;  %v8124_v14 = vpop.f32.mrf.mxu0 }
 0x439   : > { %3414 = vmatprep.mubr.f32.mxu0 %v9814_v49  ;;  %5388 = vmatpush3.msra.mxu0 %v5654_v2  ;;  %v8109_v6 = vpop.f32.mrf.mxu1  ;;  %v5657_v49 = vld [vmem:[#allocation8 + $0x268] sm:$0xff]  ;;  %9821 = vst [vmem:[#allocation17_spill] sm:$0xff] %v8124_v14  ;;  %v8140_v14 = vld [vmem:[%s6045_s5 + $0x58] sm:$0xff] }
 0x43a   : > { %9815 = vst [vmem:[#allocation14_spill] sm:$0xff] %v8109_v6  ;;  %3942 = vmatmul.mubr.f32.vlgmr.msra.gmra.mxu1 %v8114_v40  ;;  %5389 = vmatprep.subr.mxu0 %v5656_v12  ;;  %v8137_v44 = vpop.f32.mrf.mxu0 }
 0x43b   : > { %3946 = vmatprep.mubr.f32.mxu1 %v9817_v33  ;;  %5390 = vmatpush3.msra.mxu0 %v5656_v12  ;;  %v8118_v56 = vpop.f32.mrf.mxu1  ;;  %v9822_v33 = vld [vmem:[#allocation103_spill] sm:$0xff]  ;;  %9826 = vst [vmem:[#allocation19_spill] sm:$0xff] %v8137_v44 }
 0x43c   : > { %9818 = vst [vmem:[#allocation16_spill] sm:$0xff] %v8118_v56  ;;  %3415 = vmatmul.mubr.f32.gmra.mxu0 %v7885_v62  ;;  %5444 = vmatpush3.msra.mxu1 %v5654_v2  ;;  %v9824_v2 = vld [vmem:[#allocation105_spill] sm:$0xff]  ;;  %v8150_v44 = vpop.f32.mrf.mxu0 }
 0x43d   : > { %3419 = vmatprep.mubr.f32.mxu0 %v9819_v17  ;;  %5391 = vmatprep.subr.mxu0 %v5657_v49  ;;  %v8122_v6 = vpop.f32.mrf.mxu1  ;;  %v5659_v17 = vld [vmem:[#allocation8 + $0x260] sm:$0xff]  ;;  %9831 = vst [vmem:[#allocation206_spill] sm:$0xff] %v8150_v44 }
 0x43e   : > { %9820 = vst [vmem:[#allocation78_spill] sm:$0xff] %v8122_v6  ;;  %3947 = vmatmul.mubr.f32.gmra.mxu1 %v8127_v63  ;;  %5445 = vmatprep.subr.mxu1 %v5656_v12  ;;  %v8163_v44 = vpop.f32.mrf.mxu0 }
 0x43f   : > { %3951 = vmatprep.mubr.f32.mxu1 %v9822_v33  ;;  %5392 = vmatpush3.msra.mxu0 %v5657_v49  ;;  %v8131_v56 = vpop.f32.mrf.mxu1  ;;  %v9827_v33 = vld [vmem:[#allocation107_spill] sm:$0xff]  ;;  %9836 = vst [vmem:[#allocation21_spill] sm:$0xff] %v8163_v44 }
 0x440   : > { %9823 = vst [vmem:[#allocation18_spill] sm:$0xff] %v8131_v56  ;;  %3420 = vmatmul.mubr.f32.gmra.mxu0 %v7900_v9  ;;  %5446 = vmatpush3.msra.mxu1 %v5656_v12  ;;  %v9829_v12 = vld [vmem:[#allocation109_spill] sm:$0xff]  ;;  %v8176_v44 = vpop.f32.mrf.mxu0 }
 0x441   : > { %3424 = vmatprep.mubr.f32.mxu0 %v9824_v2  ;;  %5393 = vmatprep.subr.mxu0 %v5659_v17  ;;  %v8135_v6 = vpop.f32.mrf.mxu1  ;;  %v5661_v2 = vld [vmem:[#allocation8 + $0x258] sm:$0xff]  ;;  %9841 = vst [vmem:[#allocation209_spill] sm:$0xff] %v8176_v44 }
 0x442   : > { %9825 = vst [vmem:[#allocation204_spill] sm:$0xff] %v8135_v6  ;;  %3952 = vmatmul.mubr.f32.gmra.mxu1 %v8140_v14  ;;  %5447 = vmatprep.subr.mxu1 %v5657_v49  ;;  %v8189_v44 = vpop.f32.mrf.mxu0 }
 0x443   : > { %3956 = vmatprep.mubr.f32.mxu1 %v9827_v33  ;;  %5394 = vmatpush3.msra.mxu0 %v5659_v17  ;;  %v8144_v56 = vpop.f32.mrf.mxu1  ;;  %v9832_v33 = vld [vmem:[#allocation111_spill] sm:$0xff]  ;;  %9846 = vst [vmem:[#allocation24_spill] sm:$0xff] %v8189_v44 }
 0x444   : > { %9828 = vst [vmem:[#allocation205_spill] sm:$0xff] %v8144_v56  ;;  %3425 = vmatmul.mubr.f32.gmra.mxu0 %v7915_v54  ;;  %5448 = vmatpush3.msra.mxu1 %v5657_v49  ;;  %v9834_v49 = vld [vmem:[#allocation113_spill] sm:$0xff]  ;;  %v8202_v44 = vpop.f32.mrf.mxu0 }
 0x445   : > { %3429 = vmatprep.mubr.f32.mxu0 %v9829_v12  ;;  %5395 = vmatprep.subr.mxu0 %v5661_v2  ;;  %v8148_v6 = vpop.f32.mrf.mxu1  ;;  %v5663_v12 = vld [vmem:[#allocation8 + $0x250] sm:$0xff]  ;;  %9851 = vst [vmem:[#allocation26_spill] sm:$0xff] %v8202_v44 }
 0x446   : > { %9830 = vst [vmem:[#allocation20_spill] sm:$0xff] %v8148_v6  ;;  %3957 = vmatmul.mubr.f32.gmra.mxu1 %v8153_v38  ;;  %5449 = vmatprep.subr.mxu1 %v5659_v17  ;;  %v8215_v44 = vpop.f32.mrf.mxu0 }
 0x447   : > { %3961 = vmatprep.mubr.f32.mxu1 %v9832_v33  ;;  %5396 = vmatpush3.msra.mxu0 %v5661_v2  ;;  %v8157_v56 = vpop.f32.mrf.mxu1  ;;  %v9837_v33 = vld [vmem:[#allocation115_spill] sm:$0xff]  ;;  %9857 = vst [vmem:[#allocation29_spill] sm:$0xff] %v8215_v44 }
 0x448   : > { %9833 = vst [vmem:[#allocation79_spill] sm:$0xff] %v8157_v56  ;;  %3430 = vmatmul.mubr.f32.gmra.mxu0 %v7930_v4  ;;  %5450 = vmatpush3.msra.mxu1 %v5659_v17  ;;  %v9839_v17 = vld [vmem:[#allocation117_spill] sm:$0xff]  ;;  %v8228_v44 = vpop.f32.mrf.mxu0 }
 0x449   : > { %3434 = vmatprep.mubr.f32.mxu0 %v9834_v49  ;;  %5397 = vmatprep.subr.mxu0 %v5663_v12  ;;  %v8161_v6 = vpop.f32.mrf.mxu1  ;;  %v5665_v49 = vld [vmem:[#allocation8 + $0x248] sm:$0xff]  ;;  %9862 = vst [vmem:[#allocation163_spill] sm:$0xff] %v8228_v44  ;;  %v8242_v44 = vld [vmem:[%s6045_s5 + $0x158] sm:$0xff] }
 0x44a   : > { %9835 = vst [vmem:[#allocation207_spill] sm:$0xff] %v8161_v6  ;;  %3962 = vmatmul.mubr.f32.gmra.mxu1 %v8166_v16  ;;  %5451 = vmatprep.subr.mxu1 %v5661_v2  ;;  %9868 = vst [vmem:[#allocation166_spill] sm:$0xff] %v8242_v44 }
 0x44b   : > { %3966 = vmatprep.mubr.f32.mxu1 %v9837_v33  ;;  %5398 = vmatpush3.msra.mxu0 %v5663_v12  ;;  %v8170_v56 = vpop.f32.mrf.mxu1  ;;  %v9842_v33 = vld [vmem:[#allocation119_spill] sm:$0xff] }
 0x44c   : > { %9838 = vst [vmem:[#allocation208_spill] sm:$0xff] %v8170_v56  ;;  %3435 = vmatmul.mubr.f32.gmra.mxu0 %v7945_v60  ;;  %5452 = vmatpush3.msra.mxu1 %v5661_v2  ;;  %v9844_v2 = vld [vmem:[#allocation121_spill] sm:$0xff] }
 0x44d   : > { %3439 = vmatprep.mubr.f32.mxu0 %v9839_v17  ;;  %5399 = vmatprep.subr.mxu0 %v5665_v49  ;;  %v8174_v6 = vpop.f32.mrf.mxu1  ;;  %v5667_v17 = vld [vmem:[#allocation8 + $0x240] sm:$0xff] }
 0x44e   : > { %9840 = vst [vmem:[#allocation22_spill] sm:$0xff] %v8174_v6  ;;  %3967 = vmatmul.mubr.f32.gmra.mxu1 %v8179_v45  ;;  %5453 = vmatprep.subr.mxu1 %v5663_v12 }
 0x44f   : > { %3971 = vmatprep.mubr.f32.mxu1 %v9842_v33  ;;  %5400 = vmatpush3.msra.mxu0 %v5665_v49  ;;  %v8183_v56 = vpop.f32.mrf.mxu1  ;;  %v9847_v33 = vld [vmem:[#allocation123_spill] sm:$0xff] }
 0x450   : > { %9843 = vst [vmem:[#allocation23_spill] sm:$0xff] %v8183_v56  ;;  %3440 = vmatmul.mubr.f32.gmra.mxu0 %v7960_v48  ;;  %5454 = vmatpush3.msra.mxu1 %v5663_v12  ;;  %v9849_v12 = vld [vmem:[#allocation125_spill] sm:$0xff] }
 0x451   : > { %3444 = vmatprep.mubr.f32.mxu0 %v9844_v2  ;;  %5401 = vmatprep.subr.mxu0 %v5667_v17  ;;  %v8187_v6 = vpop.f32.mrf.mxu1  ;;  %v5669_v2 = vld [vmem:[#allocation8 + $0x238] sm:$0xff] }
 0x452   : > { %9845 = vst [vmem:[#allocation210_spill] sm:$0xff] %v8187_v6  ;;  %3972 = vmatmul.mubr.f32.gmra.mxu1 %v8192_v3  ;;  %5455 = vmatprep.subr.mxu1 %v5665_v49 }
 0x453   : > { %3976 = vmatprep.mubr.f32.mxu1 %v9847_v33  ;;  %5402 = vmatpush3.msra.mxu0 %v5667_v17  ;;  %v8196_v56 = vpop.f32.mrf.mxu1  ;;  %v9853_v33 = vld [vmem:[#allocation127_spill] sm:$0xff] }
 0x454   : > { %9848 = vst [vmem:[#allocation211_spill] sm:$0xff] %v8196_v56  ;;  %3445 = vmatmul.mubr.f32.gmra.mxu0 %v7975_v8  ;;  %5456 = vmatpush3.msra.mxu1 %v5665_v49  ;;  %v9855_v49 = vld [vmem:[#allocation129_spill] sm:$0xff] }
 0x455   : > { %3449 = vmatprep.mubr.f32.mxu0 %v9849_v12  ;;  %5403 = vmatprep.subr.mxu0 %v5669_v2  ;;  %v8200_v6 = vpop.f32.mrf.mxu1  ;;  %v5671_v12 = vld [vmem:[#allocation8 + $0x230] sm:$0xff] }
 0x456   : > { %9850 = vst [vmem:[#allocation157_spill] sm:$0xff] %v8200_v6  ;;  %3977 = vmatmul.mubr.f32.gmra.mxu1 %v8205_v36  ;;  %5457 = vmatprep.subr.mxu1 %v5667_v17  ;;  %v8231_v36 = vld [vmem:[%s6045_s5 + $0x138] sm:$0xff] }
 0x457   : > { %3981 = vmatprep.mubr.f32.mxu1 %v9853_v33  ;;  %5404 = vmatpush3.msra.mxu0 %v5669_v2  ;;  %v8209_v56 = vpop.f32.mrf.mxu1  ;;  %v9858_v33 = vld [vmem:[#allocation131_spill] sm:$0xff]  ;;  %9863 = vst [vmem:[#allocation82_spill] sm:$0xff] %v8231_v36 }
 0x458   : > { %9854 = vst [vmem:[#allocation25_spill] sm:$0xff] %v8209_v56  ;;  %3450 = vmatmul.mubr.f32.gmra.mxu0 %v7990_v0  ;;  %5458 = vmatpush3.msra.mxu1 %v5667_v17  ;;  %v9860_v17 = vld [vmem:[#allocation133_spill] sm:$0xff] }
 0x459   : > { %3454 = vmatprep.mubr.f32.mxu0 %v9855_v49  ;;  %5405 = vmatprep.subr.mxu0 %v5671_v12  ;;  %v8213_v6 = vpop.f32.mrf.mxu1  ;;  %v5673_v49 = vld [vmem:[#allocation8 + $0x228] sm:$0xff] }
 0x45a   : > { %9856 = vst [vmem:[#allocation160_spill] sm:$0xff] %v8213_v6  ;;  %3982 = vmatmul.mubr.f32.gmra.mxu1 %v8218_v20  ;;  %5459 = vmatprep.subr.mxu1 %v5669_v2 }
 0x45b   : > { %3986 = vmatprep.mubr.f32.mxu1 %v9858_v33  ;;  %5406 = vmatpush3.msra.mxu0 %v5671_v12  ;;  %v8222_v56 = vpop.f32.mrf.mxu1  ;;  %v9864_v33 = vld [vmem:[#allocation135_spill] sm:$0xff] }
 0x45c   : > { %9859 = vst [vmem:[#allocation159_spill] sm:$0xff] %v8222_v56  ;;  %3455 = vmatmul.mubr.f32.gmra.mxu0 %v8005_v61  ;;  %5460 = vmatpush3.msra.mxu1 %v5669_v2  ;;  %v5675_v56 = vld [vmem:[#allocation8 + $0x220] sm:$0xff] }
 0x45d   : > { %3459 = vmatprep.mubr.f32.mxu0 %v9860_v17  ;;  %5407 = vmatprep.subr.mxu0 %v5673_v49  ;;  %v8226_v6 = vpop.f32.mrf.mxu1  ;;  %v9866_v17 = vld [vmem:[#allocation137_spill] sm:$0xff] }
 0x45e   : > { %9861 = vst [vmem:[#allocation81_spill] sm:$0xff] %v8226_v6  ;;  %3987 = vmatmul.mubr.f32.gmra.mxu1 %v8231_v36  ;;  %5461 = vmatprep.subr.mxu1 %v5671_v12  ;;  %v8239_v6 = vpop.f32.mrf.mxu0  ;;  %v9869_v36 = vld [vmem:[#allocation139_spill] sm:$0xff] }
 0x45f   : > { %3991 = vmatprep.mubr.f32.mxu1 %v9864_v33  ;;  %5408 = vmatpush3.msra.mxu0 %v5673_v49  ;;  %v8236_v2 = vpop.f32.mrf.mxu1  ;;  %9867 = vst [vmem:[#allocation32_spill] sm:$0xff] %v8239_v6  ;;  %v9871_v33 = vld [vmem:[#allocation141_spill] sm:$0xff]  ;;  %v8253_v6 = vld [vmem:[%s6045_s5 + $0x178] sm:$0xff] }
 0x460   : > { %3460 = vmatmul.mubr.f32.gmra.mxu0 %v8020_v11  ;;  %5462 = vmatpush3.msra.mxu1 %v5671_v12  ;;  %9865 = vst [vmem:[#allocation162_spill] sm:$0xff] %v8236_v2  ;;  %v8250_v2 = vpop.f32.mrf.mxu0  ;;  %9873 = vst [vmem:[#allocation35_spill] sm:$0xff] %v8253_v6 }
 0x461   : > { %3464 = vmatprep.mubr.f32.mxu0 %v9866_v17  ;;  %5409 = vmatprep.subr.mxu0 %v5675_v56  ;;  %v8247_v12 = vpop.f32.mrf.mxu1  ;;  %v5677_v17 = vld [vmem:[#allocation8 + $0x218] sm:$0xff]  ;;  %9872 = vst [vmem:[#allocation165_spill] sm:$0xff] %v8250_v2 }
 0x462   : > { %3992 = vmatmul.mubr.f32.gmra.mxu1 %v8242_v44  ;;  %5463 = vmatprep.subr.mxu1 %v5673_v49  ;;  %9870 = vst [vmem:[#allocation36_spill] sm:$0xff] %v8247_v12  ;;  %v9874_v44 = vld [vmem:[#allocation143_spill] sm:$0xff]  ;;  %v8261_v12 = vpop.f32.mrf.mxu0  ;;  %v8264_v2 = vld [vmem:[%s6045_s5 + $0x198] sm:$0xff] }
 0x463   : > { %3996 = vmatprep.mubr.f32.mxu1 %v9869_v36  ;;  %5410 = vmatpush3.msra.mxu0 %v5675_v56  ;;  %v8258_v36 = vpop.f32.mrf.mxu1  ;;  %9877 = vst [vmem:[#allocation39_spill] sm:$0xff] %v8261_v12  ;;  %9878 = vst [vmem:[#allocation168_spill] sm:$0xff] %v8264_v2  ;;  %v8275_v12 = vld [vmem:[%s6045_s5 + $0x1b8] sm:$0xff] }
 0x464   : > { %3465 = vmatmul.mubr.f32.gmra.mxu0 %v8035_v10  ;;  %5464 = vmatpush3.msra.mxu1 %v5673_v49  ;;  %9875 = vst [vmem:[#allocation169_spill] sm:$0xff] %v8258_v36  ;;  %v9876_v49 = vld [vmem:[#allocation145_spill] sm:$0xff]  ;;  %v8272_v36 = vpop.f32.mrf.mxu0  ;;  %9883 = vst [vmem:[#allocation42_spill] sm:$0xff] %v8275_v12 }
 0x465   : > { %3469 = vmatprep.mubr.f32.mxu0 %v9871_v33  ;;  %5411 = vmatprep.subr.mxu0 %v5677_v17  ;;  %v5679_v33 = vld [vmem:[#allocation8 + $0x210] sm:$0xff]  ;;  %9882 = vst [vmem:[#allocation172_spill] sm:$0xff] %v8272_v36  ;;  %v8286_v36 = vld [vmem:[%s6045_s5 + $0x1d8] sm:$0xff] }
 0x466   : > { %3997 = vmatmul.mubr.f32.gmra.mxu1 %v8253_v6  ;;  %5465 = vmatprep.subr.mxu1 %v5675_v56  ;;  %v9879_v6 = vld [vmem:[#allocation147_spill] sm:$0xff]  ;;  %9888 = vst [vmem:[#allocation175_spill] sm:$0xff] %v8286_v36 }
 0x467   : > { %4001 = vmatprep.mubr.f32.mxu1 %v9874_v44  ;;  %5412 = vmatpush3.msra.mxu0 %v5677_v17  ;;  %v8269_v44 = vpop.f32.mrf.mxu1 }
 0x468   : > { %3470 = vmatmul.mubr.f32.gmra.mxu0 %v8050_v46  ;;  %5466 = vmatpush3.msra.mxu1 %v5675_v56  ;;  %9880 = vst [vmem:[#allocation38_spill] sm:$0xff] %v8269_v44  ;;  %v9881_v56 = vld [vmem:[#allocation149_spill] sm:$0xff]  ;;  %v8283_v44 = vpop.f32.mrf.mxu0 }
 0x469   : > { %3474 = vmatprep.mubr.f32.mxu0 %v9876_v49  ;;  %5413 = vmatprep.subr.mxu0 %v5679_v33  ;;  %v5681_v49 = vld [vmem:[#allocation8 + $0x208] sm:$0xff]  ;;  %9887 = vst [vmem:[#allocation41_spill] sm:$0xff] %v8283_v44  ;;  %v4541_v44 = vadd.f32 %v7909_v25, %v7894_v58  ;;  %v1998_v25 = vsub.f32 %v7722_v37, %v8140_v14 }
 0x46a   : > { %4002 = vmatmul.mubr.f32.gmra.mxu1 %v8264_v2  ;;  %5467 = vmatprep.subr.mxu1 %v5677_v17  ;;  %v9884_v2 = vld [vmem:[#allocation151_spill] sm:$0xff]  ;;  %v4621_v37 = vadd.f32 %v7868_v59, %v7863_v1  ;;  %v4547_v1 = vadd.f32 %v7969_v28, %v7954_v43  ;;  %v5693_v28 = vld [vmem:[#allocation8 + $0x160] sm:$0xff] }
 0x46b   : > { %4006 = vmatprep.mubr.f32.mxu1 %v9879_v6  ;;  %5414 = vmatpush3.msra.mxu0 %v5679_v33  ;;  %v8280_v6 = vpop.f32.mrf.mxu1 }
 0x46c   : > { %3475 = vmatmul.mubr.f32.gmra.mxu0 %v8065_v55  ;;  %5468 = vmatpush3.msra.mxu1 %v5677_v17  ;;  %9885 = vst [vmem:[#allocation171_spill] sm:$0xff] %v8280_v6  ;;  %v9886_v17 = vld [vmem:[#allocation153_spill] sm:$0xff]  ;;  %v1990_v6 = vsub.f32 %v7708_v42, %v8114_v40  ;;  %v1997_v42 = vsub.f32 %v7717_v53, %v7900_v9  ;;  %v5687_v53 = vld [vmem:[#allocation8 + $0x178] sm:$0xff] }
 0x46d   : > { %3479 = vmatprep.mubr.f32.mxu0 %v9881_v56  ;;  %5415 = vmatprep.subr.mxu0 %v5681_v49  ;;  %v5683_v56 = vld [vmem:[#allocation8 + $0x200] sm:$0xff]  ;;  %v2001_v9 = vsub.f32 %v7728_v29, %v7915_v54  ;;  %v2002_v29 = vsub.f32 %v7734_v19, %v8153_v38  ;;  %v2009_v19 = vsub.f32 %v7752_v27, %v7945_v60  ;;  %v5694_v60 = vld [vmem:[#allocation8 + $0x1d8] sm:$0xff] }
 0x46e   : > { %4007 = vmatmul.mubr.f32.gmra.mxu1 %v8275_v12  ;;  %5469 = vmatprep.subr.mxu1 %v5679_v33  ;;  %v9889_v12 = vld [vmem:[#allocation155_spill] sm:$0xff]  ;;  %v2010_v27 = vsub.f32 %v7758_v47, %v8179_v45  ;;  %v2017_v47 = vsub.f32 %v7776_v51, %v7975_v8  ;;  %v9895_v51 = vld [vmem:[#allocation80_spill] sm:$0xff] }
 0x46f   : > { %4011 = vmatprep.mubr.f32.mxu1 %v9884_v2  ;;  %5416 = vmatpush3.msra.mxu0 %v5681_v49  ;;  %v1989_v2 = vsub.f32 %v7705_v22, %v7872_v5  ;;  %v1993_v22 = vsub.f32 %v7711_v30, %v7885_v62  ;;  %v8306_v5 = vld [vmem:[%s8948_s3] ss:$0 sm:$0xff]  ;;  %v1994_v30 = vsub.f32 %v7714_v24, %v8127_v63 }
 0x470   : > { %3480 = vmatmul.mubr.f32.gmra.mxu0 %v8080_v35  ;;  %5470 = vmatpush3.msra.mxu1 %v5679_v33  ;;  %v4544_v33 = vadd.f32 %v7939_v7, %v7924_v41  ;;  %v8308_v41 = vpop.f32.mrf.mxu0  ;;  %v8311_v7 = vld [vmem:[%s6045_s5 + $0x1f8] sm:$0xff]  ;;  %v2005_v24 = vsub.f32 %v7740_v18, %v7930_v4  ;;  %v2006_v18 = vsub.f32 %v7746_v23, %v8166_v16  ;;  %v5690_v4 = vld [vmem:[#allocation8 + $0x1e8] sm:$0xff]  ;;  %v5692_v23 = vld [vmem:[#allocation8 + $0x1e0] sm:$0xff] }
 0x471   : > { %3484 = vmatprep.mubr.f32.mxu0 %v9886_v17  ;;  %5417 = vmatprep.subr.mxu0 %v5683_v56  ;;  %v8295_v17 = vpop.f32.mrf.mxu1  ;;  %v2022_v8 = vsub.f32 %v9895_v51, %v8218_v20  ;;  %v9911_v51 = vld [vmem:[#allocation15_spill] sm:$0xff] }
 0x472   : > { %4012 = vmatmul.mubr.f32.gmra.mxu1 %v8286_v36  ;;  %5471 = vmatprep.subr.mxu1 %v5681_v49  ;;  %v5685_v36 = vld [vmem:[#allocation8 + $0x1f8] sm:$0xff]  ;;  %v2354_v58 = vadd.f32 %v4544_v33, %v8306_v5  ;;  %v2013_v33 = vsub.f32 %v7764_v50, %v7960_v48  ;;  %v2014_v50 = vsub.f32 %v7770_v39, %v8192_v3 }
 0x473   : > { %4016 = vmatprep.mubr.f32.mxu1 %v9889_v12  ;;  %5418 = vmatpush3.msra.mxu0 %v5683_v56  ;;  %v8319_v62 = vpop.f32.mrf.mxu1  ;;  %v2349_v12 = vadd.f32 %v4541_v44, %v8306_v5  ;;  %v2359_v48 = vadd.f32 %v4547_v1, %v8306_v5  ;;  %v9890_v39 = vld [vmem:[#allocation124_spill] sm:$0xff] }
 0x474   : > { %3485 = vmatmul.mubr.f32.gmra.mxu0 %v8095_v21  ;;  %5472 = vmatpush3.msra.mxu1 %v5681_v49  ;;  %v8330_v49 = vpop.f32.mrf.mxu0  ;;  %v9898_v1 = vld [vmem:[#allocation96_spill] sm:$0xff] }
 0x475   : > { %5419 = vmatprep.mubr.f32.mxu0 %v1989_v2  ;;  %5163 = vmatprep.subr.mxu0 %v5685_v36  ;;  %v4624_v36 = vadd.f32 %v7881_v13, %v7876_v31  ;;  %v4550_v31 = vadd.f32 %v7999_v52, %v7984_v57  ;;  %v5689_v13 = vld [vmem:[#allocation8 + $0x170] sm:$0xff]  ;;  %v5691_v57 = vld [vmem:[#allocation8 + $0x168] sm:$0xff]  ;;  %v2494_v52 = vadd.f32 %v4621_v37, %v2349_v12  ;;  %v9894_v37 = vld [vmem:[#allocation92_spill] sm:$0xff] }
 0x476   : > { %4017 = vmatmul.mubr.f32.gmra.mxu1 %v8311_v7  ;;  %5473 = vmatprep.subr.mxu1 %v5683_v56  ;;  %v5696_v12 = vld [vmem:[#allocation8 + $0x1d0] sm:$0xff] }
 0x477   : > { %5475 = vmatprep.mubr.f32.mxu1 %v1990_v6  ;;  %5474 = vmatpush3.msra.mxu1 %v5683_v56  ;;  %v5688_v6 = vld [vmem:[#allocation8 + $0x1f0] sm:$0xff]  ;;  %v2499_v44 = vadd.f32 %v4624_v36, %v2354_v58  ;;  %v8340_v56 = vpop.f32.mrf.mxu1  ;;  %v4630_v58 = vadd.f32 %v7911_v26, %v7904_v15  ;;  %v4627_v36 = vadd.f32 %v9890_v39, %v7889_v32  ;;  %v9896_v32 = vld [vmem:[#allocation152_spill] sm:$0xff] }
 0x478   : > { %5420 = vmatmul.mubr.f32.vlgmr.msra.gmra.mxu0 %v1993_v22  ;;  %v2364_v22 = vadd.f32 %v4550_v31, %v8306_v5  ;;  %v5697_v26 = vld [vmem:[#allocation8 + $0x150] sm:$0xff]  ;;  %v9906_v39 = vld [vmem:[#allocation104_spill] sm:$0xff] }
 0x479   : > { %5422 = vmatprep.mubr.f32.mxu0 %v1997_v42  ;;  %5164 = vmatpush3.msra.mxu0 %v5687_v53  ;;  %v8356_v42 = vpop.f32.mrf.mxu1  ;;  %v9891_v53 = vld [vmem:[#allocation110_spill] sm:$0xff] }
 0x47a   : > { %5165 = vmatprep.subr.mxu0 %v5688_v6  ;;  %5476 = vmatmul.mubr.f32.vlgmr.msra.gmra.mxu1 %v1994_v30  ;;  %v5695_v30 = vld [vmem:[#allocation8 + $0x158] sm:$0xff]  ;;  %v2509_v15 = vadd.f32 %v4630_v58, %v2364_v22  ;;  %v5701_v22 = vld [vmem:[#allocation8 + $0x140] sm:$0xff] }
 0x47b   : > { %5166 = vmatpush3.msra.mxu0 %v5689_v13  ;;  %5478 = vmatprep.mubr.f32.mxu1 %v1998_v25  ;;  %v2021_v25 = vsub.f32 %v7788_v34, %v7990_v0  ;;  %v9893_v6 = vld [vmem:[#allocation156_spill] sm:$0xff]  ;;  %v5698_v0 = vld [vmem:[#allocation8 + $0x1c8] sm:$0xff]  ;;  %v8376_v13 = vpop.f32.mrf.mxu1 }
 0x47c   : > { %v5309_v54 = vpop.f32.mrf.mxu0  ;;  %5423 = vmatmul.mubr.f32.gmra.mxu0 %v2001_v9  ;;  %5167 = vmatprep.subr.mxu0 %v5690_v4  ;;  %v9892_v9 = vld [vmem:[#allocation122_spill] sm:$0xff]  ;;  %v2018_v31 = vsub.f32 %v9894_v37, %v9893_v6  ;;  %v2504_v4 = vadd.f32 %v4627_v36, %v2359_v48  ;;  %v9903_v48 = vld [vmem:[#allocation31_spill] sm:$0xff]  ;;  %v2033_v36 = vsub.f32 %v9906_v39, %v8035_v10  ;;  %v9914_v10 = vld [vmem:[#allocation168_spill] sm:$0xff] }
 0x47d   : > { %v2644_v59 = vadd.f32 %v5309_v54, %v2499_v44  ;;  %5425 = vmatprep.mubr.f32.mxu0 %v2005_v24  ;;  %5168 = vmatpush3.msra.mxu0 %v5691_v57  ;;  %v4556_v24 = vadd.f32 %v9892_v9, %v9891_v53  ;;  %v9897_v44 = vld [vmem:[#allocation98_spill] sm:$0xff]  ;;  %v9907_v53 = vld [vmem:[#allocation108_spill] sm:$0xff] }
 0x47e   : > { %v2638_v2 = vpop.f32.mrf.mxu0  ;;  %5169 = vmatprep.subr.mxu0 %v5692_v23  ;;  %5479 = vmatmul.mubr.f32.gmra.mxu1 %v2002_v29  ;;  %v4553_v29 = vadd.f32 %v9897_v44, %v9896_v32  ;;  %v5699_v54 = vld [vmem:[#allocation8 + $0x148] sm:$0xff]  ;;  %v2037_v9 = vsub.f32 %v9907_v53, %v8050_v46  ;;  %v9912_v32 = vld [vmem:[#allocation35_spill] sm:$0xff]  ;;  %v9923_v53 = vld [vmem:[#allocation44_spill] sm:$0xff] }
 0x47f   : > { %2718 = vst [vmem:[%s8351_s14 + $0x8] sm:$0xff] %v2644_v59  ;;  %v2639_v43 = vadd.f32 %v2638_v2, %v2494_v52  ;;  %5170 = vmatpush3.msra.mxu0 %v5693_v28  ;;  %5481 = vmatprep.mubr.f32.mxu1 %v2006_v18  ;;  %v2025_v59 = vsub.f32 %v9898_v1, %v8005_v61  ;;  %v5700_v52 = vld [vmem:[#allocation8 + $0x1c0] sm:$0xff]  ;;  %v9901_v28 = vld [vmem:[#allocation28_spill] sm:$0xff]  ;;  %v9913_v44 = vld [vmem:[#allocation34_spill] sm:$0xff] }
 0x480   : > { %5426 = vmatmul.mubr.f32.gmra.mxu0 %v2009_v19  ;;  %5171 = vmatprep.subr.mxu0 %v5694_v60  ;;  %v9899_v19 = vld [vmem:[#allocation100_spill] sm:$0xff]  ;;  %v2374_v23 = vadd.f32 %v4556_v24, %v8306_v5  ;;  %v8388_v60 = vpop.f32.mrf.mxu1  ;;  %v5704_v24 = vld [vmem:[#allocation8 + $0x1b0] sm:$0xff] }
 0x481   : > { %2717 = vst [vmem:[%s8351_s14] sm:$0xff] %v2639_v43  ;;  %5428 = vmatprep.mubr.f32.mxu0 %v2013_v33  ;;  %5172 = vmatpush3.msra.mxu0 %v5695_v30  ;;  %v2029_v2 = vsub.f32 %v9899_v19, %v8020_v11  ;;  %v9900_v43 = vld [vmem:[#allocation82_spill] sm:$0xff]  ;;  %v5702_v61 = vld [vmem:[#allocation8 + $0x1b8] sm:$0xff]  ;;  %v2369_v11 = vadd.f32 %v4553_v29, %v8306_v5  ;;  %v9904_v30 = vld [vmem:[#allocation53_spill] sm:$0xff] }
 0x482   : > { %5173 = vmatprep.subr.mxu0 %v5696_v12  ;;  %5482 = vmatmul.mubr.f32.gmra.mxu1 %v2010_v27  ;;  %v2026_v27 = vsub.f32 %v9901_v28, %v9900_v43  ;;  %v5703_v12 = vld [vmem:[#allocation8 + $0x138] sm:$0xff]  ;;  %v2034_v29 = vsub.f32 %v9913_v44, %v9912_v32  ;;  %v8408_v1 = vpop.f32.mrf.mxu1 }
 0x483   : > { %5174 = vmatpush3.msra.mxu0 %v5697_v26  ;;  %5484 = vmatprep.mubr.f32.mxu1 %v2014_v50  ;;  %v9902_v50 = vld [vmem:[#allocation166_spill] sm:$0xff]  ;;  %v9928_v44 = vld [vmem:[#allocation136_spill] sm:$0xff] }
 0x484   : > { %v5312_v34 = vpop.f32.mrf.mxu0  ;;  %5429 = vmatmul.mubr.f32.gmra.mxu0 %v2017_v47  ;;  %5175 = vmatprep.subr.mxu0 %v5698_v0  ;;  %v2030_v58 = vsub.f32 %v9903_v48, %v9902_v50  ;;  %v9905_v47 = vld [vmem:[#allocation132_spill] sm:$0xff]  ;;  %v9908_v26 = vld [vmem:[#allocation50_spill] sm:$0xff]  ;;  %v8420_v39 = vpop.f32.mrf.mxu1 }
 0x485   : > { %v2654_v18 = vadd.f32 %v5312_v34, %v2509_v15  ;;  %5431 = vmatprep.mubr.f32.mxu0 %v2021_v25  ;;  %5176 = vmatpush3.msra.mxu0 %v5699_v54  ;;  %v4636_v25 = vadd.f32 %v9905_v47, %v9904_v30  ;;  %v9909_v15 = vld [vmem:[#allocation128_spill] sm:$0xff]  ;;  %v5705_v34 = vld [vmem:[#allocation8 + $0x130] sm:$0xff]  ;;  %v5709_v47 = vld [vmem:[#allocation8 + $0x120] sm:$0xff] }
 0x486   : > { %v2648_v57 = vpop.f32.mrf.mxu0  ;;  %5177 = vmatprep.subr.mxu0 %v5700_v52  ;;  %5485 = vmatmul.mubr.f32.gmra.mxu1 %v2018_v31  ;;  %v4633_v37 = vadd.f32 %v9909_v15, %v9908_v26  ;;  %v9910_v31 = vld [vmem:[#allocation77_spill] sm:$0xff]  ;;  %v9925_v26 = vld [vmem:[#allocation140_spill] sm:$0xff] }
 0x487   : > { %2720 = vst [vmem:[%s8351_s14 + $0x18] sm:$0xff] %v2654_v18  ;;  %v2649_v33 = vadd.f32 %v2648_v57, %v2504_v4  ;;  %5178 = vmatpush3.msra.mxu0 %v5701_v22  ;;  %5487 = vmatprep.mubr.f32.mxu1 %v2022_v8  ;;  %v4562_v8 = vadd.f32 %v9911_v51, %v9910_v31  ;;  %v9915_v18 = vld [vmem:[#allocation37_spill] sm:$0xff]  ;;  %v5706_v4 = vld [vmem:[#allocation8 + $0x1a8] sm:$0xff]  ;;  %v9926_v31 = vld [vmem:[#allocation120_spill] sm:$0xff] }
 0x488   : > { %5432 = vmatmul.mubr.f32.gmra.mxu0 %v2025_v59  ;;  %5179 = vmatprep.subr.mxu0 %v5702_v61  ;;  %v2519_v0 = vadd.f32 %v4636_v25, %v2374_v23  ;;  %v2038_v54 = vsub.f32 %v9915_v18, %v9914_v10  ;;  %v9916_v59 = vld [vmem:[#allocation134_spill] sm:$0xff]  ;;  %v2514_v23 = vadd.f32 %v4633_v37, %v2369_v11  ;;  %v9919_v61 = vld [vmem:[#allocation116_spill] sm:$0xff] }
 0x489   : > { %2719 = vst [vmem:[%s8351_s14 + $0x10] sm:$0xff] %v2649_v33  ;;  %5434 = vmatprep.mubr.f32.mxu0 %v2029_v2  ;;  %5180 = vmatpush3.msra.mxu0 %v5703_v12  ;;  %v9917_v57 = vld [vmem:[#allocation146_spill] sm:$0xff]  ;;  %v9918_v33 = vld [vmem:[#allocation112_spill] sm:$0xff]  ;;  %v2045_v48 = vsub.f32 %v9919_v61, %v8080_v35  ;;  %v2049_v51 = vsub.f32 %v9926_v31, %v8095_v21 }
 0x48a   : > { %5181 = vmatprep.subr.mxu0 %v5704_v24  ;;  %5488 = vmatmul.mubr.f32.gmra.mxu1 %v2026_v27  ;;  %v4559_v52 = vadd.f32 %v9917_v57, %v9916_v59  ;;  %v5707_v2 = vld [vmem:[#allocation8 + $0x128] sm:$0xff]  ;;  %v2041_v22 = vsub.f32 %v9918_v33, %v8065_v55  ;;  %v5708_v27 = vld [vmem:[#allocation8 + $0x1a0] sm:$0xff]  ;;  %v9921_v11 = vld [vmem:[#allocation84_spill] sm:$0xff] }
 0x48b   : > { %5182 = vmatpush3.msra.mxu0 %v5705_v34  ;;  %5490 = vmatprep.mubr.f32.mxu1 %v2030_v58  ;;  %v2384_v58 = vadd.f32 %v4562_v8, %v8306_v5  ;;  %v9920_v25 = vld [vmem:[#allocation42_spill] sm:$0xff]  ;;  %v5710_v55 = vld [vmem:[#allocation8 + $0x198] sm:$0xff]  ;;  %v5712_v8 = vld [vmem:[#allocation8 + $0x190] sm:$0xff]  ;;  %v8430_v34 = vpop.f32.mrf.mxu1 }
 0x48c   : > { %v5315_v46 = vpop.f32.mrf.mxu0  ;;  %5435 = vmatmul.mubr.f32.gmra.mxu0 %v2033_v36  ;;  %5183 = vmatprep.subr.mxu0 %v5706_v4  ;;  %v2042_v12 = vsub.f32 %v9921_v11, %v9920_v25  ;;  %v9922_v36 = vld [vmem:[#allocation175_spill] sm:$0xff]  ;;  %v2379_v35 = vadd.f32 %v4559_v52, %v8306_v5  ;;  %v9924_v24 = vld [vmem:[#allocation60_spill] sm:$0xff]  ;;  %v9929_v18 = vld [vmem:[#allocation206_spill] sm:$0xff] }
 0x48d   : > { %v2664_v19 = vadd.f32 %v5315_v46, %v2519_v0  ;;  %5437 = vmatprep.mubr.f32.mxu0 %v2037_v9  ;;  %5184 = vmatpush3.msra.mxu0 %v5707_v2  ;;  %v2046_v9 = vsub.f32 %v9923_v53, %v9922_v36  ;;  %v4642_v15 = vadd.f32 %v9925_v26, %v9924_v24  ;;  %v5711_v37 = vld [vmem:[#allocation8 + $0x118] sm:$0xff]  ;;  %v5713_v4 = vld [vmem:[#allocation8 + $0x110] sm:$0xff]  ;;  %v5714_v21 = vld [vmem:[#allocation8 + $0x188] sm:$0xff]  ;;  %v8443_v11 = vpop.f32.mrf.mxu1 }
 0x48e   : > { %v2658_v28 = vpop.f32.mrf.mxu0  ;;  %5185 = vmatprep.subr.mxu0 %v5708_v27  ;;  %5491 = vmatmul.mubr.f32.gmra.mxu1 %v2034_v29  ;;  %v9927_v0 = vld [vmem:[#allocation88_spill] sm:$0xff]  ;;  %v9931_v57 = vld [vmem:[#allocation47_spill] sm:$0xff]  ;;  %v9932_v2 = vld [vmem:[#allocation17_spill] sm:$0xff] }
 0x48f   : > { %2722 = vst [vmem:[%s8351_s14 + $0x28] sm:$0xff] %v2664_v19  ;;  %v2659_v30 = vadd.f32 %v2658_v28, %v2514_v23  ;;  %5186 = vmatpush3.msra.mxu0 %v5709_v47  ;;  %5493 = vmatprep.mubr.f32.mxu1 %v2038_v54  ;;  %v4639_v29 = vadd.f32 %v9928_v44, %v9927_v0  ;;  %v9930_v54 = vld [vmem:[#allocation21_spill] sm:$0xff]  ;;  %v9933_v23 = vld [vmem:[#allocation19_spill] sm:$0xff]  ;;  %v5715_v28 = vld [vmem:[#allocation8 + $0x108] sm:$0xff] }
 0x490   : > { %5438 = vmatmul.mubr.f32.gmra.mxu0 %v2041_v22  ;;  %5187 = vmatprep.subr.mxu0 %v5710_v55  ;;  %v4568_v46 = vadd.f32 %v9930_v54, %v9929_v18  ;;  %v2529_v59 = vadd.f32 %v4642_v15, %v2384_v58  ;;  %v2050_v52 = vsub.f32 %v9931_v57, %v8311_v7  ;;  %v9934_v27 = vld [vmem:[#allocation158_spill] sm:$0xff]  ;;  %v5716_v47 = vld [vmem:[#allocation8 + $0x180] sm:$0xff]  ;;  %v9937_v26 = vld [vmem:[#allocation148_spill] sm:$0xff] }
 0x491   : > { %2721 = vst [vmem:[%s8351_s14 + $0x20] sm:$0xff] %v2659_v30  ;;  %5440 = vmatprep.mubr.f32.mxu0 %v2045_v48  ;;  %5188 = vmatpush3.msra.mxu0 %v5711_v37  ;;  %v4565_v33 = vadd.f32 %v9933_v23, %v9932_v2  ;;  %v2524_v61 = vadd.f32 %v4639_v29, %v2379_v35  ;;  %v9935_v48 = vld [vmem:[#allocation27_spill] sm:$0xff]  ;;  %v5717_v53 = vld [vmem:[#allocation8 + $0x100] sm:$0xff]  ;;  %v9936_v24 = vld [vmem:[#allocation66_spill] sm:$0xff] }
 0x492   : > { %5189 = vmatprep.subr.mxu0 %v5712_v8  ;;  %5494 = vmatmul.mubr.f32.gmra.mxu1 %v2042_v12  ;;  %v1121_v58 = vsub.f32 %v9935_v48, %v8114_v40  ;;  %v2394_v12 = vadd.f32 %v4568_v46, %v8306_v5  ;;  %v4648_v40 = vadd.f32 %v9937_v26, %v9936_v24  ;;  %v9938_v15 = vld [vmem:[#allocation161_spill] sm:$0xff]  ;;  %v9939_v37 = vld [vmem:[#allocation30_spill] sm:$0xff]  ;;  %v9941_v8 = vld [vmem:[#allocation144_spill] sm:$0xff] }
 0x493   : > { %5190 = vmatpush3.msra.mxu0 %v5713_v4  ;;  %5496 = vmatprep.mubr.f32.mxu1 %v2046_v9  ;;  %v8447_v9 = vpop.f32.mrf.mxu1  ;;  %v2389_v35 = vadd.f32 %v4565_v33, %v8306_v5  ;;  %v1125_v31 = vsub.f32 %v9939_v37, %v8127_v63  ;;  %v9942_v44 = vld [vmem:[#allocation26_spill] sm:$0xff]  ;;  %v9943_v29 = vld [vmem:[#allocation29_spill] sm:$0xff]  ;;  %v9945_v57 = vld [vmem:[#allocation24_spill] sm:$0xff] }
 0x494   : > { %v5318_v19 = vpop.f32.mrf.mxu0  ;;  %5441 = vmatmul.mubr.f32.gmra.mxu0 %v2049_v51  ;;  %5191 = vmatprep.subr.mxu0 %v5714_v21  ;;  %v9940_v51 = vld [vmem:[#allocation63_spill] sm:$0xff]  ;;  %v4574_v18 = vadd.f32 %v9943_v29, %v9942_v44  ;;  %v2539_v54 = vadd.f32 %v4648_v40, %v2394_v12  ;;  %v9946_v21 = vld [vmem:[#allocation164_spill] sm:$0xff]  ;;  %v9947_v63 = vld [vmem:[#allocation33_spill] sm:$0xff] }
 0x495   : > { %v2674_v22 = vadd.f32 %v5318_v19, %v2529_v59  ;;  %5192 = vmatpush3.msra.mxu0 %v5715_v28  ;;  %4086 = vmatprep.mubr.f32.mxu0 %v9934_v27  ;;  %v4645_v0 = vadd.f32 %v9941_v8, %v9940_v51  ;;  %v8460_v4 = vpop.f32.mrf.mxu1  ;;  %v9944_v59 = vld [vmem:[#allocation209_spill] sm:$0xff]  ;;  %v1129_v23 = vsub.f32 %v9947_v63, %v8140_v14  ;;  %v9948_v48 = vld [vmem:[#allocation94_spill] sm:$0xff]  ;;  %v9951_v12 = vld [vmem:[#allocation83_spill] sm:$0xff] }
 0x496   : > { %v2668_v30 = vpop.f32.mrf.mxu0  ;;  %5193 = vmatprep.subr.mxu0 %v5716_v47  ;;  %5497 = vmatmul.mubr.f32.gmra.mxu1 %v2050_v52  ;;  %v4571_v52 = vadd.f32 %v9945_v57, %v9944_v59  ;;  %v2404_v28 = vadd.f32 %v4574_v18, %v8306_v5  ;;  %v9950_v47 = vld [vmem:[#allocation167_spill] sm:$0xff]  ;;  %v1133_v14 = vsub.f32 %v9951_v12, %v8153_v38  ;;  %v9954_v26 = vld [vmem:[#allocation165_spill] sm:$0xff]  ;;  %v9958_v18 = vld [vmem:[#allocation170_spill] sm:$0xff] }
 0x497   : > { %2724 = vst [vmem:[%s8351_s14 + $0x38] sm:$0xff] %v2674_v22  ;;  %v2669_v55 = vadd.f32 %v2668_v30, %v2524_v61  ;;  %5194 = vmatpush3.msra.mxu0 %v5717_v53  ;;  %v2534_v2 = vadd.f32 %v4645_v0, %v2389_v35  ;;  %v8467_v22 = vpop.f32.mrf.mxu1  ;;  %v9952_v53 = vld [vmem:[#allocation69_spill] sm:$0xff]  ;;  %v9955_v40 = vld [vmem:[#allocation39_spill] sm:$0xff]  ;;  %v9957_v0 = vld [vmem:[#allocation32_spill] sm:$0xff] }
 0x498   : > { %4087 = vmatmul.mubr.f32.vlgmr.msra.gmra.mxu0 %v1121_v58  ;;  %v2399_v61 = vadd.f32 %v4571_v52, %v8306_v5  ;;  %v9949_v58 = vld [vmem:[#allocation102_spill] sm:$0xff]  ;;  %v9953_v35 = vld [vmem:[#allocation73_spill] sm:$0xff]  ;;  %v9956_v8 = vld [vmem:[#allocation163_spill] sm:$0xff] }
 0x499   : > { %2723 = vst [vmem:[%s8351_s14 + $0x30] sm:$0xff] %v2669_v55  ;;  %4091 = vmatprep.mubr.f32.mxu0 %v9938_v15  ;;  %v4654_v30 = vadd.f32 %v9949_v58, %v9948_v48  ;;  %v8478_v55 = vpop.f32.mrf.mxu1  ;;  %v4651_v24 = vadd.f32 %v9953_v35, %v9952_v53  ;;  %v4580_v15 = vadd.f32 %v9955_v40, %v9954_v26  ;;  %v9961_v63 = vld [vmem:[#allocation126_spill] sm:$0xff]  ;;  %v9967_v53 = vld [vmem:[#allocation41_spill] sm:$0xff]  ;;  %v9968_v26 = vld [vmem:[#allocation176_spill] sm:$0xff] }
 0x49a   : > { %v4577_v44 = vadd.f32 %v9957_v0, %v9956_v8  ;;  %v9965_v48 = vld [vmem:[#allocation114_spill] sm:$0xff] }
 0x49b   : > { %v2549_v37 = vadd.f32 %v4654_v30, %v2404_v28  ;;  %v2544_v38 = vadd.f32 %v4651_v24, %v2399_v61  ;;  %v2414_v57 = vadd.f32 %v4580_v15, %v8306_v5  ;;  %v9963_v28 = vld [vmem:[#allocation43_spill] sm:$0xff]  ;;  %v9964_v61 = vld [vmem:[#allocation106_spill] sm:$0xff]  ;;  %v4586_v30 = vadd.f32 %v8330_v49, %v8308_v41 }
 0x49c   : > { %v5321_v46 = vpop.f32.mrf.mxu0  ;;  %4092 = vmatmul.mubr.f32.gmra.mxu0 %v1125_v31  ;;  %v4657_v58 = vadd.f32 %v9965_v48, %v9964_v61 }
 0x49d   : > { %v2684_v19 = vadd.f32 %v5321_v46, %v2539_v54  ;;  %4096 = vmatprep.mubr.f32.mxu0 %v9946_v21  ;;  %v9959_v54 = vld [vmem:[#allocation40_spill] sm:$0xff]  ;;  %v2409_v21 = vadd.f32 %v4577_v44, %v8306_v5  ;;  %v2424_v8 = vadd.f32 %v4586_v30, %v8306_v5  ;;  %v9970_v44 = vld [vmem:[#allocation142_spill] sm:$0xff] }
 0x49e   : > { %v2678_v33 = vpop.f32.mrf.mxu0  ;;  %v8484_v51 = vpop.f32.mrf.mxu1  ;;  %v1137_v46 = vsub.f32 %v9959_v54, %v8166_v16  ;;  %v1141_v16 = vsub.f32 %v9963_v28, %v8179_v45  ;;  %v9969_v45 = vld [vmem:[#allocation46_spill] sm:$0xff]  ;;  %v9977_v28 = vld [vmem:[#allocation87_spill] sm:$0xff] }
 0x49f   : > { %2726 = vst [vmem:[%s8351_s14 + $0x48] sm:$0xff] %v2684_v19  ;;  %v2679_v27 = vadd.f32 %v2678_v33, %v2534_v2  ;;  %v9960_v2 = vld [vmem:[#allocation118_spill] sm:$0xff]  ;;  %v9962_v33 = vld [vmem:[#allocation173_spill] sm:$0xff]  ;;  %v2554_v40 = vadd.f32 %v4657_v58, %v2409_v21  ;;  %v1145_v15 = vsub.f32 %v9969_v45, %v8192_v3 }
 0x4a0   : > { %4097 = vmatmul.mubr.f32.gmra.mxu0 %v1129_v23  ;;  %v8493_v19 = vpop.f32.mrf.mxu1  ;;  %v4660_v23 = vadd.f32 %v9961_v63, %v9960_v2  ;;  %v9973_v3 = vld [vmem:[#allocation49_spill] sm:$0xff]  ;;  %v9982_v45 = vld [vmem:[#allocation14_spill] sm:$0xff] }
 0x4a1   : > { %2725 = vst [vmem:[%s8351_s14 + $0x40] sm:$0xff] %v2679_v27  ;;  %4101 = vmatprep.mubr.f32.mxu0 %v9950_v47  ;;  %v1149_v54 = vsub.f32 %v9973_v3, %v9893_v6  ;;  %v9978_v6 = vld [vmem:[#allocation154_spill] sm:$0xff]  ;;  %v9979_v58 = vld [vmem:[#allocation13_spill] sm:$0xff] }
 0x4a2   : > { %v2559_v47 = vadd.f32 %v4660_v23, %v2414_v57  ;;  %v9976_v23 = vld [vmem:[#allocation182_spill] sm:$0xff]  ;;  %v4733_v30 = vadd.f32 %v9979_v58, %v9978_v6 }
 0x4a4   : > { %v5324_v31 = vpop.f32.mrf.mxu0  ;;  %4102 = vmatmul.mubr.f32.gmra.mxu0 %v1133_v14  ;;  %v9966_v14 = vld [vmem:[#allocation172_spill] sm:$0xff] }
 0x4a5   : > { %v2694_v29 = vadd.f32 %v5324_v31, %v2549_v37  ;;  %4106 = vmatprep.mubr.f32.mxu0 %v9958_v18  ;;  %v4583_v35 = vadd.f32 %v9967_v53, %v9966_v14  ;;  %v9980_v53 = vld [vmem:[#allocation185_spill] sm:$0xff] }
 0x4a6   : > { %v2688_v59 = vpop.f32.mrf.mxu0  ;;  %v8502_v27 = vpop.f32.mrf.mxu1 }
 0x4a7   : > { %2728 = vst [vmem:[%s8351_s14 + $0x58] sm:$0xff] %v2694_v29  ;;  %v2689_v52 = vadd.f32 %v2688_v59, %v2544_v38  ;;  %v2419_v0 = vadd.f32 %v4583_v35, %v8306_v5  ;;  %v9971_v29 = vld [vmem:[#allocation150_spill] sm:$0xff]  ;;  %v9972_v38 = vld [vmem:[#allocation179_spill] sm:$0xff]  ;;  %v9981_v35 = vld [vmem:[#allocation56_spill] sm:$0xff] }
 0x4a8   : > { %4107 = vmatmul.mubr.f32.gmra.mxu0 %v1137_v46  ;;  %v8513_v31 = vpop.f32.mrf.mxu1  ;;  %v4666_v18 = vadd.f32 %v9971_v29, %v9970_v44  ;;  %v9974_v46 = vld [vmem:[#allocation130_spill] sm:$0xff] }
 0x4a9   : > { %2727 = vst [vmem:[%s8351_s14 + $0x50] sm:$0xff] %v2689_v52  ;;  %4111 = vmatprep.mubr.f32.mxu0 %v9962_v33  ;;  %v9975_v59 = vld [vmem:[#allocation138_spill] sm:$0xff] }
 0x4aa   : > { %v4663_v57 = vadd.f32 %v9975_v59, %v9974_v46  ;;  %v2569_v52 = vadd.f32 %v4666_v18, %v2424_v8  ;;  %v9984_v18 = vld [vmem:[#allocation188_spill] sm:$0xff]  ;;  %v9986_v59 = vld [vmem:[#allocation78_spill] sm:$0xff] }
 0x4ac   : > { %v5327_v12 = vpop.f32.mrf.mxu0  ;;  %4112 = vmatmul.mubr.f32.gmra.mxu0 %v1141_v16  ;;  %v2564_v33 = vadd.f32 %v4663_v57, %v2419_v0  ;;  %v1153_v16 = vsub.f32 %v9977_v28, %v8218_v20  ;;  %v9987_v57 = vld [vmem:[#allocation18_spill] sm:$0xff] }
 0x4ad   : > { %v2704_v24 = vadd.f32 %v5327_v12, %v2559_v47  ;;  %4116 = vmatprep.mubr.f32.mxu0 %v9968_v26 }
 0x4ae   : > { %v2698_v37 = vpop.f32.mrf.mxu0  ;;  %v8517_v49 = vpop.f32.mrf.mxu1 }
 0x4af   : > { %2730 = vst [vmem:[%s8351_s14 + $0x68] sm:$0xff] %v2704_v24  ;;  %v2699_v41 = vadd.f32 %v2698_v37, %v2554_v40  ;;  %v1157_v24 = vsub.f32 %v9981_v35, %v9900_v43  ;;  %v2880_v40 = vadd.f32 %v4733_v30, %v8306_v5 }
 0x4b0   : > { %4117 = vmatmul.mubr.f32.gmra.mxu0 %v1145_v15  ;;  %v8528_v2 = vpop.f32.mrf.mxu1  ;;  %v9983_v15 = vld [vmem:[#allocation16_spill] sm:$0xff] }
 0x4b1   : > { %2729 = vst [vmem:[%s8351_s14 + $0x60] sm:$0xff] %v2699_v41  ;;  %4121 = vmatprep.mubr.f32.mxu0 %v9972_v38  ;;  %v4736_v37 = vadd.f32 %v9983_v15, %v9982_v45  ;;  %v9985_v38 = vld [vmem:[#allocation59_spill] sm:$0xff]  ;;  %v9992_v15 = vld [vmem:[#allocation194_spill] sm:$0xff] }
 0x4b2   : > { %v1161_v43 = vsub.f32 %v9985_v38, %v9902_v50  ;;  %v9989_v50 = vld [vmem:[#allocation62_spill] sm:$0xff] }
 0x4b3   : > { %v2885_v46 = vadd.f32 %v4736_v37, %v8306_v5  ;;  %v1165_v6 = vsub.f32 %v9989_v50, %v9912_v32  ;;  %v9993_v32 = vld [vmem:[#allocation65_spill] sm:$0xff] }
 0x4b4   : > { %v5330_v21 = vpop.f32.mrf.mxu0  ;;  %4122 = vmatmul.mubr.f32.gmra.mxu0 %v1149_v54  ;;  %v1169_v37 = vsub.f32 %v9993_v32, %v9914_v10  ;;  %v9997_v10 = vld [vmem:[#allocation91_spill] sm:$0xff] }
 0x4b5   : > { %v2714_v63 = vadd.f32 %v5330_v21, %v2569_v52  ;;  %4126 = vmatprep.mubr.f32.mxu0 %v9976_v23  ;;  %v4739_v52 = vadd.f32 %v9987_v57, %v9986_v59  ;;  %v9996_v57 = vld [vmem:[#allocation197_spill] sm:$0xff] }
 0x4b6   : > { %v2708_v61 = vpop.f32.mrf.mxu0  ;;  %v8533_v48 = vpop.f32.mrf.mxu1 }
 0x4b7   : > { %2732 = vst [vmem:[%s8351_s14 + $0x78] sm:$0xff] %v2714_v63  ;;  %v2709_v47 = vadd.f32 %v2708_v61, %v2564_v33  ;;  %v9988_v61 = vld [vmem:[#allocation191_spill] sm:$0xff] }
 0x4b8   : > { %v4811_v12 = vpop.f32.mrf.mxu0  ;;  %v8538_v14 = vpop.f32.mrf.mxu1  ;;  %4127 = vmatmul.mubr.f32.gmra.mxu0 %v1153_v16 }
 0x4b9   : > { %2731 = vst [vmem:[%s8351_s14 + $0x70] sm:$0xff] %v2709_v47  ;;  %4131 = vmatprep.mubr.f32.mxu0 %v9980_v53  ;;  %v2890_v47 = vadd.f32 %v4739_v52, %v8306_v5  ;;  %v1173_v52 = vsub.f32 %v9997_v10, %v9920_v25  ;;  %v10001_v25 = vld [vmem:[#allocation72_spill] sm:$0xff] }
 0x4ba   : > { %v4812_v26 = vpop.f32.mrf.mxu0  ;;  %v5003_v20 = vpop.f32.mrf.mxu1 }
 0x4bb   : > { %v4813_v8 = vadd.f32 %v4812_v26, %v4811_v12  ;;  %v9990_v12 = vld [vmem:[#allocation204_spill] sm:$0xff] }
 0x4bc   : > { %v4814_v41 = vpop.f32.mrf.mxu0  ;;  %v5004_v0 = vpop.f32.mrf.mxu1  ;;  %4132 = vmatmul.mubr.f32.gmra.mxu0 %v1157_v24 }
 0x4bd   : > { %v3025_v44 = vadd.f32 %v4813_v8, %v2880_v40  ;;  %v8547_v29 = vadd.f32 %v5004_v0, %v5003_v20  ;;  %4136 = vmatprep.mubr.f32.mxu0 %v9984_v18 }
 0x4be   : > { %v4815_v3 = vpop.f32.mrf.mxu0  ;;  %v5006_v54 = vpop.f32.mrf.mxu1 }
 0x4bf   : > { %v3170_v21 = vadd.f32 %v8420_v39, %v3025_v44  ;;  %v4816_v63 = vadd.f32 %v4815_v3, %v4814_v41  ;;  %v9991_v39 = vld [vmem:[#allocation205_spill] sm:$0xff]  ;;  %v9994_v44 = vld [vmem:[#allocation20_spill] sm:$0xff] }
 0x4c0   : > { %v4817_v23 = vpop.f32.mrf.mxu0  ;;  %v5007_v33 = vpop.f32.mrf.mxu1  ;;  %4137 = vmatmul.mubr.f32.gmra.mxu0 %v1161_v43  ;;  %v4742_v53 = vadd.f32 %v9991_v39, %v9990_v12  ;;  %v10000_v12 = vld [vmem:[#allocation200_spill] sm:$0xff]  ;;  %v1177_v39 = vsub.f32 %v10001_v25, %v9922_v36 }
 0x4c1   : > { %4450 = vst [vmem:[%s8351_s14 + $0x80] sm:$0xff] %v3170_v21  ;;  %v3030_v28 = vadd.f32 %v4816_v63, %v2885_v46  ;;  %v8557_v16 = vadd.f32 %v5007_v33, %v5006_v54  ;;  %4141 = vmatprep.mubr.f32.mxu0 %v9988_v61  ;;  %v9998_v33 = vld [vmem:[#allocation207_spill] sm:$0xff]  ;;  %v10005_v36 = vld [vmem:[#allocation76_spill] sm:$0xff] }
 0x4c2   : > { %v4818_v58 = vpop.f32.mrf.mxu0  ;;  %v5009_v30 = vpop.f32.mrf.mxu1  ;;  %v2895_v0 = vadd.f32 %v4742_v53, %v8306_v5 }
 0x4c3   : > { %v3175_v35 = vadd.f32 %v8408_v1, %v3030_v28  ;;  %v4819_v24 = vadd.f32 %v4818_v58, %v4817_v23  ;;  %v9995_v1 = vld [vmem:[#allocation79_spill] sm:$0xff] }
 0x4c4   : > { %v4820_v26 = vpop.f32.mrf.mxu0  ;;  %v5010_v20 = vpop.f32.mrf.mxu1  ;;  %4142 = vmatmul.mubr.f32.gmra.mxu0 %v1165_v6  ;;  %v4745_v18 = vadd.f32 %v9995_v1, %v9994_v44  ;;  %v1181_v44 = vsub.f32 %v10005_v36, %v8311_v7  ;;  %v10013_v36 = vld [vmem:[#allocation162_spill] sm:$0xff] }
 0x4c5   : > { %4451 = vst [vmem:[%s8351_s14 + $0x88] sm:$0xff] %v3175_v35  ;;  %v3035_v40 = vadd.f32 %v4819_v24, %v2890_v47  ;;  %v8567_v45 = vadd.f32 %v5010_v20, %v5009_v30  ;;  %4146 = vmatprep.mubr.f32.mxu0 %v9992_v15 }
 0x4c6   : > { %v4821_v8 = vpop.f32.mrf.mxu0  ;;  %v5012_v41 = vpop.f32.mrf.mxu1  ;;  %v2900_v23 = vadd.f32 %v4745_v18, %v8306_v5 }
 0x4c7   : > { %v3180_v38 = vadd.f32 %v8443_v11, %v3035_v40  ;;  %v4822_v43 = vadd.f32 %v4821_v8, %v4820_v26  ;;  %v9999_v11 = vld [vmem:[#allocation208_spill] sm:$0xff]  ;;  %v10002_v26 = vld [vmem:[#allocation22_spill] sm:$0xff] }
 0x4c8   : > { %v4823_v3 = vpop.f32.mrf.mxu0  ;;  %v5013_v54 = vpop.f32.mrf.mxu1  ;;  %4147 = vmatmul.mubr.f32.gmra.mxu0 %v1169_v37  ;;  %v4748_v28 = vadd.f32 %v9999_v11, %v9998_v33  ;;  %v10008_v33 = vld [vmem:[#allocation157_spill] sm:$0xff] }
 0x4c9   : > { %4452 = vst [vmem:[%s8351_s14 + $0x90] sm:$0xff] %v3180_v38  ;;  %v3040_v46 = vadd.f32 %v4822_v43, %v2895_v0  ;;  %v8577_v59 = vadd.f32 %v5013_v54, %v5012_v41  ;;  %4151 = vmatprep.mubr.f32.mxu0 %v9996_v57  ;;  %v10004_v0 = vld [vmem:[#allocation203_spill] sm:$0xff]  ;;  %v10006_v43 = vld [vmem:[#allocation210_spill] sm:$0xff]  ;;  %v10009_v11 = vld [vmem:[#allocation25_spill] sm:$0xff] }
 0x4ca   : > { %v4824_v21 = vpop.f32.mrf.mxu0  ;;  %v5015_v63 = vpop.f32.mrf.mxu1  ;;  %v2905_v24 = vadd.f32 %v4748_v28, %v8306_v5  ;;  %v4757_v28 = vadd.f32 %v10009_v11, %v10008_v33 }
 0x4cb   : > { %v3185_v61 = vadd.f32 %v8430_v34, %v3040_v46  ;;  %v4825_v50 = vadd.f32 %v4824_v21, %v4823_v3  ;;  %v10003_v34 = vld [vmem:[#allocation23_spill] sm:$0xff] }
 0x4cc   : > { %v4826_v6 = vpop.f32.mrf.mxu0  ;;  %v5016_v58 = vpop.f32.mrf.mxu1  ;;  %4152 = vmatmul.mubr.f32.gmra.mxu0 %v1173_v52  ;;  %v4751_v20 = vadd.f32 %v10003_v34, %v10002_v26 }
 0x4cd   : > { %4453 = vst [vmem:[%s8351_s14 + $0x98] sm:$0xff] %v3185_v61  ;;  %v3045_v30 = vadd.f32 %v4825_v50, %v2900_v23  ;;  %v8587_v47 = vadd.f32 %v5016_v58, %v5015_v63  ;;  %4156 = vmatprep.mubr.f32.mxu0 %v10000_v12 }
 0x4ce   : > { %v4827_v53 = vpop.f32.mrf.mxu0  ;;  %v5018_v35 = vpop.f32.mrf.mxu1  ;;  %v2910_v38 = vadd.f32 %v4751_v20, %v8306_v5 }
 0x4cf   : > { %v3190_v40 = vadd.f32 %v8460_v4, %v3045_v30  ;;  %v4828_v15 = vadd.f32 %v4827_v53, %v4826_v6  ;;  %v10007_v4 = vld [vmem:[#allocation211_spill] sm:$0xff]  ;;  %v10010_v53 = vld [vmem:[#allocation160_spill] sm:$0xff] }
 0x4d0   : > { %v4829_v32 = vpop.f32.mrf.mxu0  ;;  %v5019_v37 = vpop.f32.mrf.mxu1  ;;  %4157 = vmatmul.mubr.f32.gmra.mxu0 %v1177_v39  ;;  %v4754_v3 = vadd.f32 %v10007_v4, %v10006_v43  ;;  %v2920_v39 = vadd.f32 %v4757_v28, %v8306_v5 }
 0x4d1   : > { %4454 = vst [vmem:[%s8351_s14 + $0xa0] sm:$0xff] %v3190_v40  ;;  %v3050_v8 = vadd.f32 %v4828_v15, %v2905_v24  ;;  %v8597_v41 = vadd.f32 %v5019_v37, %v5018_v35  ;;  %4161 = vmatprep.mubr.f32.mxu0 %v10004_v0  ;;  %v10011_v35 = vld [vmem:[#allocation159_spill] sm:$0xff]  ;;  %v10012_v0 = vld [vmem:[#allocation81_spill] sm:$0xff] }
 0x4d2   : > { %v4830_v1 = vpop.f32.mrf.mxu0  ;;  %v5021_v18 = vpop.f32.mrf.mxu1  ;;  %v2915_v23 = vadd.f32 %v4754_v3, %v8306_v5  ;;  %v4760_v24 = vadd.f32 %v10011_v35, %v10010_v53 }
 0x4d3   : > { %v3195_v54 = vadd.f32 %v8447_v9, %v3050_v8  ;;  %v4831_v46 = vadd.f32 %v4830_v1, %v4829_v32 }
 0x4d4   : > { %v4832_v57 = vpop.f32.mrf.mxu0  ;;  %v5022_v10 = vpop.f32.mrf.mxu1  ;;  %4162 = vmatmul.mubr.f32.gmra.mxu0 %v1181_v44  ;;  %v2925_v8 = vadd.f32 %v4760_v24, %v8306_v5  ;;  %v4763_v44 = vadd.f32 %v10013_v36, %v10012_v0 }
 0x4d5   : > { %4455 = vst [vmem:[%s8351_s14 + $0xa8] sm:$0xff] %v3195_v54  ;;  %v3055_v52 = vadd.f32 %v4831_v46, %v2910_v38  ;;  %v8607_v21 = vadd.f32 %v5022_v10, %v5021_v18  ;;  %v10015_v10 = vld [vmem:[#allocation169_spill] sm:$0xff] }
 0x4d6   : > { %v4833_v63 = vpop.f32.mrf.mxu0  ;;  %v5024_v7 = vpop.f32.mrf.mxu1  ;;  %v2930_v46 = vadd.f32 %v4763_v44, %v8306_v5  ;;  %v4775_v44 = vadd.f32 %v8356_v42, %v8340_v56 }
 0x4d7   : > { %v3200_v61 = vadd.f32 %v8478_v55, %v3055_v52  ;;  %v4834_v9 = vadd.f32 %v4833_v63, %v4832_v57  ;;  %v10014_v57 = vld [vmem:[#allocation36_spill] sm:$0xff] }
 0x4d8   : > { %v4835_v50 = vpop.f32.mrf.mxu0  ;;  %v5025_v6 = vpop.f32.mrf.mxu1  ;;  %v4766_v52 = vadd.f32 %v10015_v10, %v10014_v57 }
 0x4d9   : > { %4456 = vst [vmem:[%s8351_s14 + $0xb0] sm:$0xff] %v3200_v61  ;;  %v3060_v58 = vadd.f32 %v4834_v9, %v2915_v23  ;;  %v8614_v30 = vadd.f32 %v5025_v6, %v5024_v7  ;;  %v10017_v6 = vld [vmem:[#allocation171_spill] sm:$0xff] }
 0x4da   : > { %v4836_v12 = vpop.f32.mrf.mxu0  ;;  %v5027_v25 = vpop.f32.mrf.mxu1  ;;  %v2935_v9 = vadd.f32 %v4766_v52, %v8306_v5 }
 0x4db   : > { %v3205_v26 = vadd.f32 %v8467_v22, %v3060_v58  ;;  %v4837_v34 = vadd.f32 %v4836_v12, %v4835_v50  ;;  %v10016_v50 = vld [vmem:[#allocation38_spill] sm:$0xff] }
 0x4dc   : > { %v4838_v20 = vpop.f32.mrf.mxu0  ;;  %v5028_v55 = vpop.f32.mrf.mxu1  ;;  %v4769_v58 = vadd.f32 %v10017_v6, %v10016_v50 }
 0x4dd   : > { %4457 = vst [vmem:[%s8351_s14 + $0xb8] sm:$0xff] %v3205_v26  ;;  %v3065_v40 = vadd.f32 %v4837_v34, %v2920_v39  ;;  %v8621_v15 = vadd.f32 %v5028_v55, %v5027_v25  ;;  %v4772_v34 = vadd.f32 %v8319_v62, %v8295_v17 }
 0x4de   : > { %v4839_v32 = vpop.f32.mrf.mxu0  ;;  %v5030_v37 = vpop.f32.mrf.mxu1  ;;  %v2940_v26 = vadd.f32 %v4769_v58, %v8306_v5 }
 0x4df   : > { %v3210_v1 = vadd.f32 %v8493_v19, %v3065_v40  ;;  %v4840_v18 = vadd.f32 %v4839_v32, %v4838_v20  ;;  %v2945_v36 = vadd.f32 %v4772_v34, %v8306_v5 }
 0x4e0   : > { %v4841_v38 = vpop.f32.mrf.mxu0  ;;  %v5031_v22 = vpop.f32.mrf.mxu1 }
 0x4e1   : > { %4458 = vst [vmem:[%s8351_s14 + $0xc0] sm:$0xff] %v3210_v1  ;;  %v3070_v43 = vadd.f32 %v4840_v18, %v2925_v8  ;;  %v8628_v4 = vadd.f32 %v5031_v22, %v5030_v37 }
 0x4e2   : > { %v4842_v3 = vpop.f32.mrf.mxu0  ;;  %v5033_v54 = vpop.f32.mrf.mxu1 }
 0x4e3   : > { %v3215_v63 = vadd.f32 %v8484_v51, %v3070_v43  ;;  %v4843_v7 = vadd.f32 %v4842_v3, %v4841_v38  ;;  %v2950_v43 = vadd.f32 %v4775_v44, %v8306_v5  ;;  %v4778_v3 = vadd.f32 %v8388_v60, %v8376_v13 }
 0x4e4   : > { %v4844_v23 = vpop.f32.mrf.mxu0  ;;  %v5034_v19 = vpop.f32.mrf.mxu1 }
 0x4e5   : > { %4459 = vst [vmem:[%s8351_s14 + $0xc8] sm:$0xff] %v3215_v63  ;;  %v3075_v33 = vadd.f32 %v4843_v7, %v2930_v46  ;;  %v8635_v11 = vadd.f32 %v5034_v19, %v5033_v54  ;;  %v2955_v52 = vadd.f32 %v4778_v3, %v8306_v5 }
 0x4e6   : > { %v4845_v28 = vpop.f32.mrf.mxu0  ;;  %v8637_v61 = vpop.f32.mrf.mxu1 }
 0x4e7   : > { %v3220_v12 = vadd.f32 %v8513_v31, %v3075_v33  ;;  %v4846_v25 = vadd.f32 %v4845_v28, %v4844_v23 }
 0x4e8   : > { %v4847_v51 = vpop.f32.mrf.mxu0  ;;  %v8643_v39 = vpop.f32.mrf.mxu1 }
 0x4e9   : > { %4460 = vst [vmem:[%s8351_s14 + $0xd0] sm:$0xff] %v3220_v12  ;;  %v3080_v53 = vadd.f32 %v4846_v25, %v2935_v9 }
 0x4ea   : > { %v4848_v35 = vpop.f32.mrf.mxu0  ;;  %v5039_v24 = vpop.f32.mrf.mxu1 }
 0x4eb   : > { %v3225_v20 = vadd.f32 %v8502_v27, %v3080_v53  ;;  %v4849_v55 = vadd.f32 %v4848_v35, %v4847_v51 }
 0x4ec   : > { %v4850_v40 = vpop.f32.mrf.mxu0  ;;  %v5040_v32 = vpop.f32.mrf.mxu1 }
 0x4ed   : > { %4461 = vst [vmem:[%s8351_s14 + $0xd8] sm:$0xff] %v3225_v20  ;;  %v3085_v31 = vadd.f32 %v4849_v55, %v2940_v26  ;;  %v8651_v37 = vadd.f32 %v5040_v32, %v5039_v24 }
 0x4ee   : > { %v4851_v8 = vpop.f32.mrf.mxu0  ;;  %v8653_v0 = vpop.f32.mrf.mxu1 }
 0x4ef   : > { %v3230_v17 = vadd.f32 %v8528_v2, %v3085_v31  ;;  %v4852_v62 = vadd.f32 %v4851_v8, %v4850_v40 }
 0x4f0   : > { %v4853_v27 = vpop.f32.mrf.mxu0  ;;  %v8659_v1 = vpop.f32.mrf.mxu1 }
 0x4f1   : > { %4462 = vst [vmem:[%s8351_s14 + $0xe0] sm:$0xff] %v3230_v17  ;;  %v3090_v18 = vadd.f32 %v4852_v62, %v2945_v36 }
 0x4f2   : > { %v4854_v38 = vpop.f32.mrf.mxu0  ;;  %v8662_v22 = vpop.f32.mrf.mxu1 }
 0x4f3   : > { %v3235_v54 = vadd.f32 %v8517_v49, %v3090_v18  ;;  %v4855_v56 = vadd.f32 %v4854_v38, %v4853_v27 }
 0x4f4   : > { %v4856_v42 = vpop.f32.mrf.mxu0  ;;  %v8668_v2 = vpop.f32.mrf.mxu1 }
 0x4f5   : > { %4463 = vst [vmem:[%s8351_s14 + $0xe8] sm:$0xff] %v3235_v54  ;;  %v3095_v46 = vadd.f32 %v4855_v56, %v2950_v43 }
 0x4f6   : > { %v4857_v57 = vpop.f32.mrf.mxu0  ;;  %v8671_v10 = vpop.f32.mrf.mxu1 }
 0x4f7   : > { %v3240_v63 = vadd.f32 %v8538_v14, %v3095_v46  ;;  %v4858_v7 = vadd.f32 %v4857_v57, %v4856_v42 }
 0x4f8   : > { %v4923_v23 = vpop.f32.mrf.mxu0  ;;  %v8675_v19 = vpop.f32.mrf.mxu1 }
 0x4f9   : > { %4464 = vst [vmem:[%s8351_s14 + $0xf0] sm:$0xff] %v3240_v63  ;;  %v3100_v13 = vadd.f32 %v4858_v7, %v2955_v52 }
 0x4fa   : > { %v4924_v60 = vpop.f32.mrf.mxu0  ;;  %v8678_v49 = vpop.f32.mrf.mxu1 }
 0x4fb   : > { %v3245_v33 = vadd.f32 %v8533_v48, %v3100_v13 }
 0x4fc   : > { %v4926_v28 = vpop.f32.mrf.mxu0  ;;  %v8681_v9 = vpop.f32.mrf.mxu1 }
 0x4fd   : > { %4465 = vst [vmem:[%s8351_s14 + $0xf8] sm:$0xff] %v3245_v33 }
 0x4fe   : > { %v4927_v50 = vpop.f32.mrf.mxu0  ;;  %v8684_v6 = vpop.f32.mrf.mxu1 }
 0x500   : > { %v4929_v58 = vpop.f32.mrf.mxu0  ;;  %v8686_v14 = vpop.f32.mrf.mxu1 }
 0x501   : > { %10018 = vst [vmem:[#allocation45_spill] sm:$0xff] %v8686_v14 }
 0x502   : > { %v4930_v12 = vpop.f32.mrf.mxu0  ;;  %v8688_v25 = vpop.f32.mrf.mxu1 }
 0x503   : > { %10019 = vst [vmem:[#allocation174_spill] sm:$0xff] %v8688_v25  ;;  %v4931_v25 = vadd.f32 %v4930_v12, %v4929_v58 }
 0x504   : > { %v4932_v51 = vpop.f32.mrf.mxu0  ;;  %v8690_v53 = vpop.f32.mrf.mxu1 }
 0x505   : > { %10020 = vst [vmem:[#allocation85_spill] sm:$0xff] %v8690_v53 }
 0x506   : > { %v4933_v35 = vpop.f32.mrf.mxu0  ;;  %v8692_v24 = vpop.f32.mrf.mxu1 }
 0x507   : > { %10021 = vst [vmem:[#allocation178_spill] sm:$0xff] %v8692_v24  ;;  %v4934_v24 = vadd.f32 %v4933_v35, %v4932_v51  ;;  %v8755_v51 = vld [vmem:[%s8948_s3] ss:$0 sm:$0xff] }
 0x508   : > { %v4935_v48 = vpop.f32.mrf.mxu0  ;;  %v8694_v26 = vpop.f32.mrf.mxu1  ;;  %v3422_v35 = vadd.f32 %v8755_v51, %v4931_v25 }
 0x509   : > { %10022 = vst [vmem:[#allocation86_spill] sm:$0xff] %v8694_v26 }
 0x50a   : > { %v4936_v34 = vpop.f32.mrf.mxu0  ;;  %v8696_v20 = vpop.f32.mrf.mxu1 }
 0x50b   : > { %10023 = vst [vmem:[#allocation177_spill] sm:$0xff] %v8696_v20  ;;  %v4937_v58 = vadd.f32 %v4936_v34, %v4935_v48 }
 0x50c   : > { %v4938_v55 = vpop.f32.mrf.mxu0  ;;  %v8698_v40 = vpop.f32.mrf.mxu1 }
 0x50d   : > { %10024 = vst [vmem:[#allocation48_spill] sm:$0xff] %v8698_v40  ;;  %v4925_v40 = vadd.f32 %v4924_v60, %v4923_v23 }
 0x50e   : > { %v4939_v32 = vpop.f32.mrf.mxu0  ;;  %v8700_v31 = vpop.f32.mrf.mxu1 }
 0x50f   : > { %10025 = vst [vmem:[#allocation181_spill] sm:$0xff] %v8700_v31  ;;  %v4928_v31 = vadd.f32 %v4927_v50, %v4926_v28  ;;  %v3412_v53 = vadd.f32 %v4925_v40, %v8306_v5  ;;  %v3427_v28 = vadd.f32 %v4934_v24, %v8306_v5  ;;  %v4940_v23 = vadd.f32 %v4939_v32, %v4938_v55 }
 0x510   : > { %v4941_v8 = vpop.f32.mrf.mxu0  ;;  %v8702_v36 = vpop.f32.mrf.mxu1  ;;  %v3432_v32 = vadd.f32 %v8755_v51, %v4937_v58 }
 0x511   : > { %10026 = vst [vmem:[#allocation52_spill] sm:$0xff] %v8702_v36  ;;  %v3417_v26 = vadd.f32 %v4928_v31, %v8306_v5  ;;  %v3557_v40 = vadd.f32 %v8547_v29, %v3412_v53  ;;  %v3437_v5 = vadd.f32 %v8755_v51, %v4940_v23  ;;  %v3567_v29 = vadd.f32 %v8567_v45, %v3422_v35 }
 0x512   : > { %v4942_v44 = vpop.f32.mrf.mxu0  ;;  %v8704_v17 = vpop.f32.mrf.mxu1  ;;  %v3577_v45 = vadd.f32 %v8587_v47, %v3432_v32 }
 0x513   : > { %10027 = vst [vmem:[#allocation180_spill] sm:$0xff] %v8704_v17  ;;  %v3562_v60 = vadd.f32 %v8557_v16, %v3417_v26  ;;  %v3572_v26 = vadd.f32 %v8577_v59, %v3427_v28  ;;  %v4943_v25 = vadd.f32 %v4942_v44, %v4941_v8  ;;  %v3582_v59 = vadd.f32 %v8597_v41, %v3437_v5 }
 0x514   : > { %v4944_v62 = vpop.f32.mrf.mxu0  ;;  %v8706_v27 = vpop.f32.mrf.mxu1 }
 0x515   : > { %10028 = vst [vmem:[#allocation51_spill] sm:$0xff] %v8706_v27  ;;  %v3442_v28 = vadd.f32 %v8755_v51, %v4943_v25  ;;  %v5044_v25 = vadd.f32 %v8659_v1, %v8653_v0 }
 0x516   : > { %v4945_v18 = vpop.f32.mrf.mxu0  ;;  %v8708_v38 = vpop.f32.mrf.mxu1 }
 0x517   : > { %10029 = vst [vmem:[#allocation184_spill] sm:$0xff] %v8708_v38  ;;  %v4946_v16 = vadd.f32 %v4945_v18, %v4944_v62 }
 0x518   : > { %v4947_v43 = vpop.f32.mrf.mxu0  ;;  %v8710_v3 = vpop.f32.mrf.mxu1 }
 0x519   : > { %10030 = vst [vmem:[#allocation55_spill] sm:$0xff] %v8710_v3  ;;  %v3447_v23 = vadd.f32 %v8755_v51, %v4946_v16 }
 0x51a   : > { %v4948_v54 = vpop.f32.mrf.mxu0  ;;  %v8712_v56 = vpop.f32.mrf.mxu1 }
 0x51b   : > { %10031 = vst [vmem:[#allocation183_spill] sm:$0xff] %v8712_v56  ;;  %v4949_v8 = vadd.f32 %v4948_v54, %v4947_v43  ;;  %v3592_v41 = vadd.f32 %v8614_v30, %v3447_v23  ;;  %v3587_v54 = vadd.f32 %v8607_v21, %v3442_v28 }
 0x51c   : > { %v4950_v42 = vpop.f32.mrf.mxu0  ;;  %v8714_v46 = vpop.f32.mrf.mxu1 }
 0x51d   : > { %10032 = vst [vmem:[#allocation54_spill] sm:$0xff] %v8714_v46 }
 0x51e   : > { %v4951_v57 = vpop.f32.mrf.mxu0  ;;  %v8718_v63 = vpop.f32.mrf.mxu1 }
 0x51f   : > { %10033 = vst [vmem:[#allocation187_spill] sm:$0xff] %v8718_v63  ;;  %v4952_v62 = vadd.f32 %v4951_v57, %v4950_v42 }
 0x520   : > { %v8716_v52 = vpop.f32.mrf.mxu0  ;;  %v8722_v33 = vpop.f32.mrf.mxu1 }
 0x521   : > { %10034 = vst [vmem:[#allocation58_spill] sm:$0xff] %v8722_v33  ;;  %v3457_v35 = vadd.f32 %v8755_v51, %v4952_v62  ;;  %v5050_v62 = vadd.f32 %v8675_v19, %v8671_v10 }
 0x522   : > { %v8720_v7 = vpop.f32.mrf.mxu0  ;;  %v8726_v3 = vpop.f32.mrf.mxu1 }
 0x523   : > { %10035 = vst [vmem:[#allocation186_spill] sm:$0xff] %v8726_v3  ;;  %v4955_v43 = vadd.f32 %v8720_v7, %v8716_v52  ;;  %v3602_v16 = vadd.f32 %v8628_v4, %v3457_v35  ;;  %v5038_v52 = vadd.f32 %v8643_v39, %v8637_v61 }
 0x524   : > { %v4956_v13 = vpop.f32.mrf.mxu0  ;;  %v8732_v46 = vpop.f32.mrf.mxu1 }
 0x525   : > { %10036 = vst [vmem:[#allocation57_spill] sm:$0xff] %v8732_v46 }
 0x526   : > { %v4957_v38 = vpop.f32.mrf.mxu0  ;;  %v8738_v20 = vpop.f32.mrf.mxu1 }
 0x527   : > { %v4958_v42 = vadd.f32 %v4957_v38, %v4956_v13 }
 0x528   : > { %v8724_v27 = vpop.f32.mrf.mxu0  ;;  %v8746_v46 = vpop.f32.mrf.mxu1 }
 0x529   : > { %10037 = vst [vmem:[#allocation190_spill] sm:$0xff] %v8746_v46  ;;  %v3467_v38 = vadd.f32 %v8755_v51, %v4958_v42 }
 0x52a   : > { %v8728_v17 = vpop.f32.mrf.mxu0  ;;  %v8759_v31 = vpop.f32.mrf.mxu1 }
 0x52b   : > { %v4961_v21 = vadd.f32 %v8728_v17, %v8724_v27 }
 0x52c   : > { %v8730_v56 = vpop.f32.mrf.mxu0  ;;  %v8767_v53 = vpop.f32.mrf.mxu1 }
 0x52d   : > { %v3472_v27 = vadd.f32 %v8755_v51, %v4961_v21 }
 0x52e   : > { %v8734_v36 = vpop.f32.mrf.mxu0 }
 0x52f   : > { %v4964_v30 = vadd.f32 %v8734_v36, %v8730_v56  ;;  %v3612_v56 = vadd.f32 %v5038_v52, %v3467_v38  ;;  %v10040_v38 = vld [vmem:[#allocation85_spill] sm:$0xff] }
 0x530   : > { %v8736_v63 = vpop.f32.mrf.mxu0 }
 0x531   : > { %v3477_v4 = vadd.f32 %v8755_v51, %v4964_v30 }
 0x532   : > { %v8740_v33 = vpop.f32.mrf.mxu0 }
 0x533   : > { %v3622_v1 = vadd.f32 %v5044_v25, %v3477_v4 }
 0x534   : > { %v8743_v3 = vpop.f32.mrf.mxu0 }
 0x536   : > { %v8748_v14 = vpop.f32.mrf.mxu0 }
 0x537   : > { %v4970_v61 = vadd.f32 %v8748_v14, %v8743_v3 }
 0x538   : > { %v5421_v50 = vpop.f32.mrf.mxu0 }
 0x539   : > { %v3707_v12 = vadd.f32 %v5421_v50, %v3562_v60  ;;  %v8775_v60 = vpop.f32.mrf.mxu1  ;;  %v3487_v3 = vadd.f32 %v8755_v51, %v4970_v61 }
 0x53a   : > { %v3701_v46 = vpop.f32.mrf.mxu0 }
 0x53b   : > { %4467 = vst [vmem:[%s8351_s14 + $0x108] sm:$0xff] %v3707_v12  ;;  %v3702_v24 = vadd.f32 %v3701_v46, %v3557_v40  ;;  %v3452_v12 = vadd.f32 %v8755_v51, %v4949_v8  ;;  %v8785_v40 = vpop.f32.mrf.mxu1  ;;  %v3632_v8 = vadd.f32 %v5050_v62, %v3487_v3 }
 0x53c   : > { %v5424_v55 = vpop.f32.mrf.mxu0 }
 0x53d   : > { %4466 = vst [vmem:[%s8351_s14 + $0x100] sm:$0xff] %v3702_v24  ;;  %v3717_v48 = vadd.f32 %v5424_v55, %v3572_v26  ;;  %v3462_v24 = vadd.f32 %v8755_v51, %v4955_v43  ;;  %v3597_v55 = vadd.f32 %v8621_v15, %v3452_v12  ;;  %v8799_v32 = vpop.f32.mrf.mxu1  ;;  %v4967_v15 = vadd.f32 %v8740_v33, %v8736_v63 }
 0x53e   : > { %v3711_v34 = vpop.f32.mrf.mxu0 }
 0x53f   : > { %4469 = vst [vmem:[%s8351_s14 + $0x118] sm:$0xff] %v3717_v48  ;;  %v3712_v18 = vadd.f32 %v3711_v34, %v3567_v29  ;;  %v3607_v29 = vadd.f32 %v8635_v11, %v3462_v24  ;;  %v8812_v34 = vpop.f32.mrf.mxu1  ;;  %v3482_v63 = vadd.f32 %v8755_v51, %v4967_v15  ;;  %v3617_v11 = vadd.f32 %v8651_v37, %v3472_v27  ;;  %v10043_v15 = vld [vmem:[#allocation177_spill] sm:$0xff] }
 0x540   : > { %v5427_v46 = vpop.f32.mrf.mxu0  ;;  %v5117_v37 = vadd.f32 %v8681_v9, %v8678_v49  ;;  %v10039_v9 = vld [vmem:[#allocation174_spill] sm:$0xff] }
 0x541   : > { %4468 = vst [vmem:[%s8351_s14 + $0x110] sm:$0xff] %v3712_v18  ;;  %v3727_v44 = vadd.f32 %v5427_v46, %v3582_v59  ;;  %v8821_v18 = vpop.f32.mrf.mxu1  ;;  %v5047_v46 = vadd.f32 %v8668_v2, %v8662_v22  ;;  %v5123_v30 = vadd.f32 %v10040_v38, %v10039_v9 }
 0x542   : > { %v3721_v50 = vpop.f32.mrf.mxu0  ;;  %v3944_v2 = vadd.f32 %v8755_v51, %v5117_v37  ;;  %v10047_v37 = vld [vmem:[#allocation180_spill] sm:$0xff] }
 0x543   : > { %4471 = vst [vmem:[%s8351_s14 + $0x128] sm:$0xff] %v3727_v44  ;;  %v3722_v57 = vadd.f32 %v3721_v50, %v3577_v45  ;;  %v3627_v19 = vadd.f32 %v5047_v46, %v3482_v63  ;;  %v8827_v45 = vpop.f32.mrf.mxu1 }
 0x544   : > { %v5430_v58 = vpop.f32.mrf.mxu0 }
 0x545   : > { %4470 = vst [vmem:[%s8351_s14 + $0x120] sm:$0xff] %v3722_v57  ;;  %v3737_v47 = vadd.f32 %v5430_v58, %v3592_v41  ;;  %v5477_v57 = vpop.f32.mrf.mxu1  ;;  %v10038_v41 = vld [vmem:[#allocation45_spill] sm:$0xff] }
 0x546   : > { %v3731_v5 = vpop.f32.mrf.mxu0  ;;  %v5120_v58 = vadd.f32 %v10038_v41, %v8684_v6  ;;  %v3954_v6 = vadd.f32 %v8755_v51, %v5123_v30 }
 0x547   : > { %4473 = vst [vmem:[%s8351_s14 + $0x138] sm:$0xff] %v3737_v47  ;;  %v3732_v13 = vadd.f32 %v3731_v5, %v3587_v54  ;;  %v4233_v54 = vpop.f32.mrf.mxu1 }
 0x548   : > { %v5433_v7 = vpop.f32.mrf.mxu0  ;;  %v3949_v49 = vadd.f32 %v8755_v51, %v5120_v58 }
 0x549   : > { %4472 = vst [vmem:[%s8351_s14 + $0x130] sm:$0xff] %v3732_v13  ;;  %v3747_v26 = vadd.f32 %v5433_v7, %v3602_v16  ;;  %v5480_v24 = vpop.f32.mrf.mxu1 }
 0x54a   : > { %v3741_v36 = vpop.f32.mrf.mxu0 }
 0x54b   : > { %4475 = vst [vmem:[%s8351_s14 + $0x148] sm:$0xff] %v3747_v26  ;;  %v3742_v39 = vadd.f32 %v3741_v36, %v3597_v55  ;;  %v10041_v26 = vld [vmem:[#allocation178_spill] sm:$0xff]  ;;  %v4243_v25 = vpop.f32.mrf.mxu1 }
 0x54c   : > { %v5436_v17 = vpop.f32.mrf.mxu0  ;;  %v10042_v55 = vld [vmem:[#allocation86_spill] sm:$0xff] }
 0x54d   : > { %4474 = vst [vmem:[%s8351_s14 + $0x140] sm:$0xff] %v3742_v39  ;;  %v3757_v48 = vadd.f32 %v5436_v17, %v3612_v56  ;;  %v5126_v36 = vadd.f32 %v10042_v55, %v10041_v26 }
 0x54e   : > { %v3751_v14 = vpop.f32.mrf.mxu0 }
 0x54f   : > { %4477 = vst [vmem:[%s8351_s14 + $0x158] sm:$0xff] %v3757_v48  ;;  %v3752_v0 = vadd.f32 %v3751_v14, %v3607_v29  ;;  %v3959_v27 = vadd.f32 %v8755_v51, %v5126_v36  ;;  %v10044_v48 = vld [vmem:[#allocation48_spill] sm:$0xff] }
 0x550   : > { %v5439_v23 = vpop.f32.mrf.mxu0  ;;  %v5129_v29 = vadd.f32 %v10044_v48, %v10043_v15 }
 0x551   : > { %4476 = vst [vmem:[%s8351_s14 + $0x150] sm:$0xff] %v3752_v0  ;;  %v3767_v33 = vadd.f32 %v5439_v23, %v3622_v1  ;;  %v5483_v23 = vpop.f32.mrf.mxu1 }
 0x552   : > { %v3761_v59 = vpop.f32.mrf.mxu0  ;;  %v3964_v63 = vadd.f32 %v8755_v51, %v5129_v29 }
 0x553   : > { %4479 = vst [vmem:[%s8351_s14 + $0x168] sm:$0xff] %v3767_v33  ;;  %v3762_v28 = vadd.f32 %v3761_v59, %v3617_v11  ;;  %v10045_v33 = vld [vmem:[#allocation181_spill] sm:$0xff]  ;;  %v10046_v11 = vld [vmem:[#allocation52_spill] sm:$0xff] }
 0x554   : > { %v5442_v44 = vpop.f32.mrf.mxu0  ;;  %v5132_v59 = vadd.f32 %v10046_v11, %v10045_v33 }
 0x555   : > { %4478 = vst [vmem:[%s8351_s14 + $0x160] sm:$0xff] %v3762_v28  ;;  %v3777_v10 = vadd.f32 %v5442_v44, %v3632_v8 }
 0x556   : > { %v3771_v50 = vpop.f32.mrf.mxu0 }
 0x557   : > { %4481 = vst [vmem:[%s8351_s14 + $0x178] sm:$0xff] %v3777_v10  ;;  %v3772_v35 = vadd.f32 %v3771_v50, %v3627_v19  ;;  %v4253_v10 = vpop.f32.mrf.mxu1  ;;  %v3969_v50 = vadd.f32 %v8755_v51, %v5132_v59 }
 0x558   : > { %v5195_v42 = vpop.f32.mrf.mxu0 }
 0x559   : > { %4480 = vst [vmem:[%s8351_s14 + $0x170] sm:$0xff] %v3772_v35  ;;  %v10048_v35 = vld [vmem:[#allocation51_spill] sm:$0xff]  ;;  %v5486_v58 = vpop.f32.mrf.mxu1 }
 0x55a   : > { %v5196_v22 = vpop.f32.mrf.mxu0 }
 0x55b   : > { %v5197_v12 = vadd.f32 %v5196_v22, %v5195_v42  ;;  %v5135_v42 = vadd.f32 %v10048_v35, %v10047_v37 }
 0x55c   : > { %v5198_v43 = vpop.f32.mrf.mxu0 }
 0x55d   : > { %v4089_v47 = vadd.f32 %v5197_v12, %v3944_v2 }
 0x55e   : > { %v5199_v5 = vpop.f32.mrf.mxu0 }
 0x55f   : > { %v4234_v13 = vadd.f32 %v4233_v54, %v4089_v47  ;;  %v5200_v16 = vadd.f32 %v5199_v5, %v5198_v43  ;;  %v3974_v43 = vadd.f32 %v8755_v51, %v5135_v42  ;;  %v10049_v47 = vld [vmem:[#allocation184_spill] sm:$0xff]  ;;  %v10050_v54 = vld [vmem:[#allocation55_spill] sm:$0xff] }
 0x560   : > { %v5201_v52 = vpop.f32.mrf.mxu0  ;;  %v5138_v5 = vadd.f32 %v10050_v54, %v10049_v47 }
 0x561   : > { %4482 = vst [vmem:[%s8351_s14 + $0x180] sm:$0xff] %v4234_v13  ;;  %v4094_v7 = vadd.f32 %v5200_v16, %v3949_v49  ;;  %v4263_v13 = vpop.f32.mrf.mxu1 }
 0x562   : > { %v5202_v21 = vpop.f32.mrf.mxu0 }
 0x563   : > { %v4239_v4 = vadd.f32 %v5477_v57, %v4094_v7  ;;  %v5203_v61 = vadd.f32 %v5202_v21, %v5201_v52  ;;  %v3979_v52 = vadd.f32 %v8755_v51, %v5138_v5  ;;  %v10051_v7 = vld [vmem:[#allocation183_spill] sm:$0xff]  ;;  %v5156_v5 = vadd.f32 %v8785_v40, %v8775_v60 }
 0x564   : > { %v5204_v39 = vpop.f32.mrf.mxu0 }
 0x565   : > { %4483 = vst [vmem:[%s8351_s14 + $0x188] sm:$0xff] %v4239_v4  ;;  %v4099_v56 = vadd.f32 %v5203_v61, %v3954_v6  ;;  %v5489_v4 = vpop.f32.mrf.mxu1 }
 0x566   : > { %v5205_v17 = vpop.f32.mrf.mxu0 }
 0x567   : > { %v4244_v14 = vadd.f32 %v4243_v25, %v4099_v56  ;;  %v5206_v3 = vadd.f32 %v5205_v17, %v5204_v39  ;;  %v10053_v56 = vld [vmem:[#allocation187_spill] sm:$0xff]  ;;  %v10054_v25 = vld [vmem:[#allocation58_spill] sm:$0xff] }
 0x568   : > { %v5207_v0 = vpop.f32.mrf.mxu0  ;;  %v5144_v17 = vadd.f32 %v10054_v25, %v10053_v56 }
 0x569   : > { %4484 = vst [vmem:[%s8351_s14 + $0x190] sm:$0xff] %v4244_v14  ;;  %v4104_v1 = vadd.f32 %v5206_v3, %v3959_v27  ;;  %v4273_v14 = vpop.f32.mrf.mxu1 }
 0x56a   : > { %v5208_v62 = vpop.f32.mrf.mxu0 }
 0x56b   : > { %v4249_v46 = vadd.f32 %v5480_v24, %v4104_v1  ;;  %v5209_v28 = vadd.f32 %v5208_v62, %v5207_v0  ;;  %v10052_v24 = vld [vmem:[#allocation54_spill] sm:$0xff]  ;;  %v3989_v0 = vadd.f32 %v8755_v51, %v5144_v17 }
 0x56c   : > { %v5210_v8 = vpop.f32.mrf.mxu0  ;;  %v5141_v21 = vadd.f32 %v10052_v24, %v10051_v7  ;;  %v10055_v1 = vld [vmem:[#allocation186_spill] sm:$0xff] }
 0x56d   : > { %4485 = vst [vmem:[%s8351_s14 + $0x198] sm:$0xff] %v4249_v46  ;;  %v4109_v44 = vadd.f32 %v5209_v28, %v3964_v63  ;;  %v5492_v46 = vpop.f32.mrf.mxu1 }
 0x56e   : > { %v5211_v19 = vpop.f32.mrf.mxu0  ;;  %v3984_v39 = vadd.f32 %v8755_v51, %v5141_v21 }
 0x56f   : > { %v4254_v57 = vadd.f32 %v4253_v10, %v4109_v44  ;;  %v5212_v22 = vadd.f32 %v5211_v19, %v5210_v8  ;;  %v10057_v44 = vld [vmem:[#allocation190_spill] sm:$0xff]  ;;  %v4283_v42 = vpop.f32.mrf.mxu1 }
 0x570   : > { %v5213_v2 = vpop.f32.mrf.mxu0  ;;  %v5150_v10 = vadd.f32 %v10057_v44, %v8738_v20 }
 0x571   : > { %4486 = vst [vmem:[%s8351_s14 + $0x1a0] sm:$0xff] %v4254_v57  ;;  %v4114_v41 = vadd.f32 %v5212_v22, %v3969_v50  ;;  %v5495_v47 = vpop.f32.mrf.mxu1 }
 0x572   : > { %v5214_v12 = vpop.f32.mrf.mxu0  ;;  %v3999_v22 = vadd.f32 %v8755_v51, %v5150_v10 }
 0x573   : > { %v4259_v49 = vadd.f32 %v5483_v23, %v4114_v41  ;;  %v5215_v9 = vadd.f32 %v5214_v12, %v5213_v2  ;;  %v10056_v23 = vld [vmem:[#allocation57_spill] sm:$0xff]  ;;  %v5153_v2 = vadd.f32 %v8767_v53, %v8759_v31  ;;  %v4009_v53 = vadd.f32 %v8755_v51, %v5156_v5 }
 0x574   : > { %v5216_v38 = vpop.f32.mrf.mxu0  ;;  %v5147_v62 = vadd.f32 %v10056_v23, %v10055_v1 }
 0x575   : > { %4487 = vst [vmem:[%s8351_s14 + $0x1a8] sm:$0xff] %v4259_v49  ;;  %v4119_v30 = vadd.f32 %v5215_v9, %v3974_v43  ;;  %v4004_v54 = vadd.f32 %v8755_v51, %v5153_v2 }
 0x576   : > { %v5217_v16 = vpop.f32.mrf.mxu0  ;;  %v3994_v8 = vadd.f32 %v8755_v51, %v5147_v62 }
 0x577   : > { %v4264_v6 = vadd.f32 %v4263_v13, %v4119_v30  ;;  %v5218_v26 = vadd.f32 %v5217_v16, %v5216_v38  ;;  %v4293_v13 = vpop.f32.mrf.mxu1  ;;  %v5159_v16 = vadd.f32 %v8812_v34, %v8799_v32 }
 0x578   : > { %v5219_v55 = vpop.f32.mrf.mxu0 }
 0x579   : > { %4488 = vst [vmem:[%s8351_s14 + $0x1b0] sm:$0xff] %v4264_v6  ;;  %v4124_v36 = vadd.f32 %v5218_v26, %v3979_v52  ;;  %v5498_v60 = vpop.f32.mrf.mxu1  ;;  %v4014_v6 = vadd.f32 %v8755_v51, %v5159_v16  ;;  %v5162_v26 = vadd.f32 %v8827_v45, %v8821_v18 }
 0x57a   : > { %v5220_v61 = vpop.f32.mrf.mxu0 }
 0x57b   : > { %v4269_v27 = vadd.f32 %v5486_v58, %v4124_v36  ;;  %v5221_v15 = vadd.f32 %v5220_v61, %v5219_v55  ;;  %v4303_v34 = vpop.f32.mrf.mxu1 }
 0x57c   : > { %v5222_v48 = vpop.f32.mrf.mxu0 }
 0x57d   : > { %4489 = vst [vmem:[%s8351_s14 + $0x1b8] sm:$0xff] %v4269_v27  ;;  %v4129_v29 = vadd.f32 %v5221_v15, %v3984_v39  ;;  %v4019_v39 = vadd.f32 %v8755_v51, %v5162_v26 }
 0x57e   : > { %v5223_v3 = vpop.f32.mrf.mxu0 }
 0x57f   : > { %v4274_v63 = vadd.f32 %v4273_v14, %v4129_v29  ;;  %v5224_v33 = vadd.f32 %v5223_v3, %v5222_v48 }
 0x580   : > { %v5225_v11 = vpop.f32.mrf.mxu0 }
 0x581   : > { %4490 = vst [vmem:[%s8351_s14 + $0x1c0] sm:$0xff] %v4274_v63  ;;  %v4134_v59 = vadd.f32 %v5224_v33, %v3989_v0 }
 0x582   : > { %v5226_v28 = vpop.f32.mrf.mxu0 }
 0x583   : > { %v4279_v19 = vadd.f32 %v5489_v4, %v4134_v59  ;;  %v5227_v50 = vadd.f32 %v5226_v28, %v5225_v11 }
 0x584   : > { %v5228_v37 = vpop.f32.mrf.mxu0 }
 0x585   : > { %4491 = vst [vmem:[%s8351_s14 + $0x1c8] sm:$0xff] %v4279_v19  ;;  %v4139_v35 = vadd.f32 %v5227_v50, %v3994_v8 }
 0x586   : > { %v5229_v57 = vpop.f32.mrf.mxu0 }
 0x587   : > { %v4284_v41 = vadd.f32 %v4283_v42, %v4139_v35  ;;  %v5230_v58 = vadd.f32 %v5229_v57, %v5228_v37 }
 0x588   : > { %v5231_v12 = vpop.f32.mrf.mxu0 }
 0x589   : > { %4492 = vst [vmem:[%s8351_s14 + $0x1d0] sm:$0xff] %v4284_v41  ;;  %v4144_v43 = vadd.f32 %v5230_v58, %v3999_v22 }
 0x58a   : > { %v5232_v20 = vpop.f32.mrf.mxu0 }
 0x58b   : > { %v4289_v49 = vadd.f32 %v5492_v46, %v4144_v43  ;;  %v5233_v9 = vadd.f32 %v5232_v20, %v5231_v12 }
 0x58c   : > { %v5234_v38 = vpop.f32.mrf.mxu0 }
 0x58d   : > { %4493 = vst [vmem:[%s8351_s14 + $0x1d8] sm:$0xff] %v4289_v49  ;;  %v4149_v30 = vadd.f32 %v5233_v9, %v4004_v54 }
 0x58e   : > { %v5235_v31 = vpop.f32.mrf.mxu0 }
 0x58f   : > { %v4294_v52 = vadd.f32 %v4293_v13, %v4149_v30  ;;  %v5236_v7 = vadd.f32 %v5235_v31, %v5234_v38 }
 0x590   : > { %v5237_v24 = vpop.f32.mrf.mxu0 }
 0x591   : > { %4494 = vst [vmem:[%s8351_s14 + $0x1e0] sm:$0xff] %v4294_v52  ;;  %v4154_v21 = vadd.f32 %v5236_v7, %v4009_v53 }
 0x592   : > { %v5238_v40 = vpop.f32.mrf.mxu0 }
 0x593   : > { %v4299_v55 = vadd.f32 %v5495_v47, %v4154_v21  ;;  %v5239_v36 = vadd.f32 %v5238_v40, %v5237_v24 }
 0x594   : > { %v5240_v4 = vpop.f32.mrf.mxu0 }
 0x595   : > { %4495 = vst [vmem:[%s8351_s14 + $0x1e8] sm:$0xff] %v4299_v55  ;;  %v4159_v32 = vadd.f32 %v5239_v36, %v4014_v6 }
 0x596   : > { %v5241_v61 = vpop.f32.mrf.mxu0 }
 0x597   : > { %v4304_v56 = vadd.f32 %v4303_v34, %v4159_v32  ;;  %v5242_v25 = vadd.f32 %v5241_v61, %v5240_v4 }
 0x599   : > { %4496 = vst [vmem:[%s8351_s14 + $0x1f0] sm:$0xff] %v4304_v56  ;;  %v4164_v17 = vadd.f32 %v5242_v25, %v4019_v39 }
 0x59b   : > { %v4309_v18 = vadd.f32 %v5498_v60, %v4164_v17 }
 0x59d   : > { %4497 = vst [vmem:[%s8351_s14 + $0x1f8] sm:$0xff] %v4309_v18 }
 0x59e   : > { %5812 = shalt.err (!%p5809_p1)
}
 0x59f   : > { %s5813_s23 = scalar_lea.hbm %s8899_s9, 8192  ;;  %s5817_s29 = scalar_lea.hbm %s8949_s4, 16384 }
 0x5a0   : > { %p5814_p5 = scmp.ne.s32.totalorder %s8899_s9, %s5813_s23  ;;  %p5818_p6 = scmp.lt.s32.totalorder %s8899_s9, %s8949_s4 }
 0x5a1   : > { %p5819_p13 = scmp.lt.s32.totalorder %s5817_s29, %s5813_s23 }
 0x5a2   : > { %p5815_p0 = pnand %p5814_p5, %p10058_p7 }
 0x5a3   : > { %p5820_p8 = por %p5819_p13, %p5818_p6 }
 0x5a4   : > { %p5816_p2 = pneg %p5815_p0 }
 0x5a6   : > { %p5821_p3 = pnand %p5820_p8, %p5816_p2 }
 0x5a8   : > { %5824 = shalt.err (!%p5821_p3)
}
 0x5a9   : > { %s5879_s6 = smov 128   ;;  %s5880_s20 = smov 8  }
 0x5aa   : > { %5509 = dma.vmem_to_hbm [thread:$0]  (%p10058_p7), %s8901_s25, 8192, %s8899_s9, %s4330_s13, %s5879_s6, %s5879_s6, %s5880_s20  }
 0x5ab PF: > { %s4359_s30 = sand.u32 1, %s5855_s15   ;;  %p10059_p4 = scmp.ne.s32.totalorder %s9227_s28, 0 }
 0x5ac   : > { %p10060_p11 = scmp.ge.s32.totalorder %s5867_s18, 2  ;;  %s4360_s7 = scalar_lea.sflag [#allocation5], %s4359_s30 }
 0x5ae   : > { %p5523_p12 = pnand %p10060_p11, %p10059_p4 }
 0x5b0   : > { %p5524_p9 = pneg %p5523_p12 }
 0x5b2   : > { %5850 = dma.done.wait (%p5524_p9), %s4360_s7, 8192  }
 0x5b3   : > { %5852 = vsyncadd (%p5524_p9), %s4360_s7, 4294959104  ;;  %p18_p10 = scmp.ge.s32.totalorder %s5931_s21, 4   ;;  %s10061_s15 = smov %s5859_s16 }
 0x5b4   : > { %s10062_s16 = smov %s5863_s17  ;;  %s10063_s17 = smov %s5943_s24 }
 0x5b5   : > { %s10064_s18 = smov %s5931_s21  ;;  %20 = sbr.rel (!%p18_p10) target bundleno = 6 (0x6), region = 96 }
 0x5ba   :  { %4365 = vsyncpa [#allocation4], 1 }
 0x5bb   :  { %4367 = vsyncpa [#allocation4 + $0x1], 1 }
 0x5bc   :  { %4368 = vsyncpa [#allocation7], 1 }
 0x5bd   :  { %4369 = vsyncpa [#allocation5], 1 }
 0x5be   :  { %4371 = vsyncpa [#allocation5 + $0x1], 1 }

</bundles_post_ra>
